<compile_context>
chip_gen: v7x
topology: tpu7x:2x2x1
jax: 0.10.0
libtpu: 0.0.40
codegen_flags: <defaults>
</compile_context>

<pallas_src>
import jax
import jax.numpy as jnp
from jax.experimental import pallas as pl
from jax.experimental.pallas import tpu as pltpu

_VMEM_LIMIT = 32 * 1024 * 1024  # safe on v5e/v6e (128 MiB phys) and v7x (64 MiB phys)


# ----------------------------- Pallas kernels ------------------------------ #

def _matmul_bias_kernel(x_ref, w_ref, b_ref, o_ref):
    o_ref[...] = (
        jnp.dot(x_ref[...], w_ref[...], preferred_element_type=jnp.float32)
        + b_ref[...]
    ).astype(o_ref.dtype)


def matmul_bias(x, w, b, *, tm=256):
    """x: (M, K), w: (K, N), b: (1, N) -> (M, N), float32.

    Row-tiled over M ("parallel" grid axis); N padded to a multiple of 128 so
    output stores are lane-dense; padding removed before returning.
    """
    M, K = x.shape
    N = w.shape[1]

    # Lane-dense output: pad N up to a multiple of 128.
    Np = pl.cdiv(N, 128) * 128
    if Np != N:
        w = jnp.pad(w, ((0, 0), (0, Np - N)))
        b = jnp.pad(b, ((0, 0), (0, Np - N)))

    # Row tile: multiple of 8 sublanes, capped so tiny M doesn't over-pad.
    tm = min(tm, pl.cdiv(M, 8) * 8)
    Mp = pl.cdiv(M, tm) * tm
    if Mp != M:
        x = jnp.pad(x, ((0, Mp - M), (0, 0)))

    out = pl.pallas_call(
        _matmul_bias_kernel,
        out_shape=jax.ShapeDtypeStruct((Mp, Np), jnp.float32),
        grid=(Mp // tm,),
        in_specs=[
            pl.BlockSpec((tm, K), lambda i: (i, 0)),
            pl.BlockSpec((K, Np), lambda i: (0, 0)),   # resident weights
            pl.BlockSpec((1, Np), lambda i: (0, 0)),   # resident bias
        ],
        out_specs=pl.BlockSpec((tm, Np), lambda i: (i, 0)),
        compiler_params=pltpu.CompilerParams(
            dimension_semantics=("parallel",),
            vmem_limit_bytes=_VMEM_LIMIT),
    )(x, w, b)
    return out[:M, :N]


def _lstm_kernel(gx_ref, m_ref, whh_ref, o_ref, h_sc, c_sc):
    """Chunk of Tc timesteps per grid step; (h, c) carried in VMEM scratch.

    gx_ref already holds x_t @ W_ih + (b_ih + b_hh), so only the recurrent
    h @ W_hh matmul sits on the serial critical path.
    """
    @pl.when(pl.program_id(0) == 0)
    def _():
        h_sc[...] = jnp.zeros_like(h_sc)
        c_sc[...] = jnp.zeros_like(c_sc)

    hr = h_sc.shape[-1]
    tc = gx_ref.shape[0]
    whh = whh_ref[...]                                   # (Hr, 4*Hr), hoisted

    def step(i, carry):
        h = h_sc[...]
        c = c_sc[...]
        gates = gx_ref[i] + jnp.dot(h, whh, preferred_element_type=jnp.float32)
        # PyTorch gate order: i, f, g, o
        i_g = jax.nn.sigmoid(gates[:, 0 * hr:1 * hr])
        f_g = jax.nn.sigmoid(gates[:, 1 * hr:2 * hr])
        g_g = jnp.tanh(gates[:, 2 * hr:3 * hr])
        o_g = jax.nn.sigmoid(gates[:, 3 * hr:4 * hr])

        c_new = f_g * c + i_g * g_g
        h_new = o_g * jnp.tanh(c_new)

        keep = m_ref[i] > 0.0                            # (Bp, 1) packed-seq validity
        h_sc[...] = jnp.where(keep, h_new, h)            # freeze state when padded
        c_sc[...] = jnp.where(keep, c_new, c)
        o_ref[i] = jnp.where(keep, h_new, 0.0).astype(o_ref.dtype)  # pad_packed -> 0
        return carry

    jax.lax.fori_loop(0, tc, step, 0, unroll=True)


def lstm_layer(gx_tbg, mask_tb1, w_hh, *, tc=16):
    """gx_tbg: (T, Bp, 4*Hr) precomputed input gates (time-major).
    mask_tb1: (T, Bp, 1) validity mask.  Returns (T, Bp, Hr)."""
    T, B, G = gx_tbg.shape
    Hr = w_hh.shape[0]

    Tp = pl.cdiv(T, tc) * tc
    if Tp != T:
        # Padded steps have mask 0 -> state frozen, output 0; sliced off below.
        gx_tbg = jnp.pad(gx_tbg, ((0, Tp - T), (0, 0), (0, 0)))
        mask_tb1 = jnp.pad(mask_tb1, ((0, Tp - T), (0, 0), (0, 0)))

    out = pl.pallas_call(
        _lstm_kernel,
        out_shape=jax.ShapeDtypeStruct((Tp, B, Hr), jnp.float32),
        grid_spec=pltpu.PrefetchScalarGridSpec(
            num_scalar_prefetch=0,
            grid=(Tp // tc,),
            in_specs=[
                pl.BlockSpec((tc, B, G), lambda t: (t, 0, 0)),
                pl.BlockSpec((tc, B, 1), lambda t: (t, 0, 0)),
                pl.BlockSpec((Hr, G), lambda t: (0, 0)),     # resident W_hh
            ],
            out_specs=pl.BlockSpec((tc, B, Hr), lambda t: (t, 0, 0)),
            scratch_shapes=[
                pltpu.VMEM((B, Hr), jnp.float32),   # h
                pltpu.VMEM((B, Hr), jnp.float32),   # c
            ],
        ),
        compiler_params=pltpu.CompilerParams(
            dimension_semantics=("arbitrary",),     # sequential recurrence
            vmem_limit_bytes=_VMEM_LIMIT),
    )(gx_tbg, mask_tb1, w_hh)
    return out[:T]


# ------------------------------- JAX glue ---------------------------------- #

def conv1d_as_matmul(x_btc, w, b, kernel, stride, pad):
    """Conv1d via k shifted strided slices (no gather) + tiled Pallas matmul.
    x: (B, T, C); w: (kernel*C, Cout) with (k, c) flattening; b: (1, Cout)."""
    B, T, C = x_btc.shape
    xp = jnp.pad(x_btc, ((0, 0), (pad, pad), (0, 0)))
    t_out = (T + 2 * pad - kernel) // stride + 1
    cols = [xp[:, k::stride, :][:, :t_out, :] for k in range(kernel)]
    patches = jnp.concatenate(cols, axis=-1)             # (B, t_out, kernel*C)
    y = matmul_bias(patches.reshape(B * t_out, kernel * C), w, b)
    return y.reshape(B, t_out, -1), t_out


def conv_rnn_forward(params, x_btf, input_lengths):
    """Mirrors ConvRNN.forward. Returns (logits (B, T2, V), conv_out_lens (B,))."""
    B, T, F = x_btf.shape

    # conv1: Conv1d(F -> H, k=3, s=1, p=1)
    h1, t1 = conv1d_as_matmul(x_btf, params["w1"], params["b1"], 3, 1, 1)
    # conv2: Conv1d(H -> H, k=8, s=6, p=1)
    h2, t2 = conv1d_as_matmul(h1, params["w2"], params["b2"], 8, 6, 1)

    # get_conv_out_lens
    lens = input_lengths
    lens = (lens + 2 * 1 - 1 * (3 - 1) - 1) // 1 + 1
    lens = (lens + 2 * 1 - 1 * (8 - 1) - 1) // 6 + 1
    conv_out_lens = lens.astype(jnp.int32)

    # Pad batch up to a multiple of 8 so LSTM tiles are sublane-aligned.
    Bp = pl.cdiv(B, 8) * 8
    lens_p = jnp.pad(conv_out_lens, (0, Bp - B))         # padded rows -> length 0

    # packed-sequence validity mask: t < conv_out_lens[b]
    t_ids = jnp.arange(t2)
    mask = (t_ids[None, :] < lens_p[:, None]).astype(jnp.float32)   # (Bp, T2)
    mask_tb1 = mask.T[:, :, None]                                   # (T2, Bp, 1)

    # multi-layer LSTM: input projection hoisted out of the recurrence.
    h_tb = jnp.transpose(h2, (1, 0, 2))                  # (T2, B, H) time-major
    if Bp != B:
        h_tb = jnp.pad(h_tb, ((0, 0), (0, Bp - B), (0, 0)))
    for layer in params["lstm"]:
        gx = matmul_bias(h_tb.reshape(t2 * Bp, -1), layer["w_ih"], layer["b"])
        gx = gx.reshape(t2, Bp, -1)                      # (T2, Bp, 4*Hr)
        h_tb = lstm_layer(gx, mask_tb1, layer["w_hh"])   # (T2, Bp, Hr)
    out = jnp.transpose(h_tb[:, :B, :], (1, 0, 2))       # (B, T2, Hr)

    # fc applied to padded output (padded rows are 0 -> fc gives bias), like torch
    logits = matmul_bias(out.reshape(B * t2, -1), params["w_fc"], params["b_fc"])
    logits = logits.reshape(B, t2, -1)
    return logits, conv_out_lens


# ------------------------- pure-JAX reference ------------------------------ #

def conv_rnn_reference(params, x_btf, input_lengths):
    hp = jax.lax.Precision.HIGHEST

    def conv(x, w, b, k, s, p):
        B, T, C = x.shape
        xp = jnp.pad(x, ((0, 0), (p, p), (0, 0)))
        t_out = (T + 2 * p - k) // s + 1
        cols = [xp[:, i::s, :][:, :t_out, :] for i in range(k)]
        patches = jnp.concatenate(cols, axis=-1)
        return jnp.dot(patches, w, precision=hp) + b[0], t_out

    h1, _ = conv(x_btf, params["w1"], params["b1"], 3, 1, 1)
    h2, t2 = conv(h1, params["w2"], params["b2"], 8, 6, 1)

    lens = input_lengths
    lens = (lens + 2 - 2 - 1) // 1 + 1
    lens = (lens + 2 - 7 - 1) // 6 + 1
    lens = lens.astype(jnp.int32)

    mask = (jnp.arange(t2)[None, :] < lens[:, None]).astype(jnp.float32)  # (B, T2)
    h_tb = jnp.transpose(h2, (1, 0, 2))          # (T2, B, H)
    m_tb = mask.T[:, :, None]                    # (T2, B, 1)

    for layer in params["lstm"]:
        hr = layer["w_hh"].shape[0]
        w_ih, w_hh, bias = layer["w_ih"], layer["w_hh"], layer["b"]

        def step(carry, inp, w_ih=w_ih, w_hh=w_hh, bias=bias, hr=hr):
            h, c = carry
            x_t, m_t = inp
            gates = (jnp.dot(x_t, w_ih, precision=hp) + bias[0]
                     + jnp.dot(h, w_hh, precision=hp))
            i_g = jax.nn.sigmoid(gates[:, 0 * hr:1 * hr])
            f_g = jax.nn.sigmoid(gates[:, 1 * hr:2 * hr])
            g_g = jnp.tanh(gates[:, 2 * hr:3 * hr])
            o_g = jax.nn.sigmoid(gates[:, 3 * hr:4 * hr])
            c_new = f_g * c + i_g * g_g
            h_new = o_g * jnp.tanh(c_new)
            keep = m_t > 0.0
            return (jnp.where(keep, h_new, h), jnp.where(keep, c_new, c)), \
                   jnp.where(keep, h_new, 0.0)

        Bq = h_tb.shape[1]
        init = (jnp.zeros((Bq, hr), jnp.float32), jnp.zeros((Bq, hr), jnp.float32))
        _, h_tb = jax.lax.scan(step, init, (h_tb, m_tb))

    out = jnp.transpose(h_tb, (1, 0, 2))
    logits = jnp.dot(out, params["w_fc"], precision=hp) + params["b_fc"][0]
    return logits, lens


# --------------------------------- main ------------------------------------ #

if __name__ == "__main__":
    B, T, F = 2, 64, 4        # batch, input seq len, input_features
    H = 32                    # config.encoder_hidden_dim
    HR = 32                   # rnn_hidden_size
    V = 16                    # config.vocab_size
    NUM_LAYERS = 2            # config.num_layers

    key = jax.random.PRNGKey(0)
    keys = iter(jax.random.split(key, 32))

    def init(shape, scale=0.1):
        return scale * jax.random.normal(next(keys), shape, jnp.float32)

    # Conv weights stored already im2col-ready: (K*Cin, Cout) == torch (O,C,K)
    # transposed to (K, C, O) then flattened. Deterministic synthetic init.
    params = {
        "w1": init((3 * F, H)), "b1": init((1, H)),
        "w2": init((8 * H, H)), "b2": init((1, H)),
        "lstm": [],
        "w_fc": init((HR, V)), "b_fc": init((1, V)),
    }
    for layer in range(NUM_LAYERS):
        hin = H if layer == 0 else HR
        params["lstm"].append({
            "w_ih": init((hin, 4 * HR)),       # torch weight_ih_l{k}.T
            "w_hh": init((HR, 4 * HR)),        # torch weight_hh_l{k}.T
            "b": init((1, 4 * HR)),            # bias_ih + bias_hh
        })

    x = jax.random.normal(next(keys), (B, T, F), jnp.float32)
    input_lengths = jnp.array([T, T - 13], dtype=jnp.int32)

    fwd = jax.jit(conv_rnn_forward)
    logits, conv_out_lens = fwd(params, x, input_lengths)
    jax.block_until_ready(logits)
    jax.block_until_ready(conv_out_lens)

    # Correctness check against a pure-JAX reference.
    ref_logits, ref_lens = conv_rnn_reference(params, x, input_lengths)
    assert bool(jnp.all(conv_out_lens == ref_lens))
    max_err = float(jnp.max(jnp.abs(logits - ref_logits)))
    assert max_err < 1e-3, f"max abs err {max_err}"

    # pad_packed_sequence trims time dim to max(conv_out_lens)
    max_len = int(jax.device_get(jnp.max(conv_out_lens)))
    logits = logits[:, :max_len, :]
    jax.block_until_ready(logits)
    # TODO(synk): predict()/beam_search is host-side decoding, not part of forward.
    print("KERNEL_OK")
</pallas_src>

<mosaic_0001>
module attributes {stable_mosaic.version = 11 : i64} {
  func.func @_matmul_bias_kernel(%arg0: i32, %arg1: memref<128x12xf32, #tpu.memory_space<vmem>>, %arg2: memref<12x128xf32, #tpu.memory_space<vmem>>, %arg3: memref<1x128xf32, #tpu.memory_space<vmem>>, %arg4: memref<128x128xf32, #tpu.memory_space<vmem>>) attributes {dimension_semantics = [#tpu.dimension_semantics<parallel>], iteration_bounds = array<i64: 1>, scalar_prefetch = 0 : i64, scratch_operands = 0 : i64, tpu.core_type = #tpu.core_type<tc>, window_params = [{transform_indices = @transform_0, window_bounds = array<i64: 128, 12>}, {pipeline_mode = #tpu.pipeline_mode<synchronous>, transform_indices = @transform_1, window_bounds = array<i64: 12, 128>}, {pipeline_mode = #tpu.pipeline_mode<synchronous>, transform_indices = @transform_2, window_bounds = array<i64: 1, 128>}, {transform_indices = @transform_3, window_bounds = array<i64: 128, 128>}]} {
    %c0 = arith.constant 0 : index
    %c0_0 = arith.constant 0 : index
    %0 = vector.load %arg1[%c0, %c0_0] : memref<128x12xf32, #tpu.memory_space<vmem>>, vector<128x12xf32>
    %c0_1 = arith.constant 0 : index
    %c0_2 = arith.constant 0 : index
    %1 = vector.load %arg2[%c0_1, %c0_2] : memref<12x128xf32, #tpu.memory_space<vmem>>, vector<12x128xf32>
    %cst = arith.constant dense<0.000000e+00> : vector<128x128xf32>
    %2 = tpu.matmul %0, %1, %cst {dimension_numbers = #tpu.dot_dimension_numbers<[1], [0], [0], [1], [0, 0, 1, 1], [], []>} : vector<128x12xf32>, vector<12x128xf32>, vector<128x128xf32> -> vector<128x128xf32>
    %c0_3 = arith.constant 0 : index
    %c0_4 = arith.constant 0 : index
    %3 = vector.load %arg3[%c0_3, %c0_4] : memref<1x128xf32, #tpu.memory_space<vmem>>, vector<1x128xf32>
    %4 = vector.broadcast %3 : vector<1x128xf32> to vector<128x128xf32>
    %5 = arith.addf %2, %4 : vector<128x128xf32>
    %c0_5 = arith.constant 0 : index
    %c0_6 = arith.constant 0 : index
    %6 = vector.load %arg4[%c0_5, %c0_6] : memref<128x128xf32, #tpu.memory_space<vmem>>, vector<128x128xf32>
    tpu.vector_store %arg4[%c0_5, %c0_6], %5 {strides = array<i32>} : memref<128x128xf32, #tpu.memory_space<vmem>>, vector<128x128xf32>,
    return
  }
  func.func @transform_0(%arg0: i32) -> (i32, i32) {
    %c0_i32 = arith.constant 0 : i32
    %c0_i32_0 = arith.constant 0 : i32
    return %arg0, %c0_i32 : i32, i32
  }
  func.func @transform_1(%arg0: i32) -> (i32, i32) {
    %c0_i32 = arith.constant 0 : i32
    %c0_i32_0 = arith.constant 0 : i32
    %c0_i32_1 = arith.constant 0 : i32
    return %c0_i32, %c0_i32_0 : i32, i32
  }
  func.func @transform_2(%arg0: i32) -> (i32, i32) {
    %c0_i32 = arith.constant 0 : i32
    %c0_i32_0 = arith.constant 0 : i32
    %c0_i32_1 = arith.constant 0 : i32
    return %c0_i32, %c0_i32_0 : i32, i32
  }
  func.func @transform_3(%arg0: i32) -> (i32, i32) {
    %c0_i32 = arith.constant 0 : i32
    %c0_i32_0 = arith.constant 0 : i32
    return %arg0, %c0_i32 : i32, i32
  }
}

module attributes {stable_mosaic.version = 11 : i64} {
  func.func @_matmul_bias_kernel(%arg0: i32, %arg1: memref<24x256xf32, #tpu.memory_space<vmem>>, %arg2: memref<256x128xf32, #tpu.memory_space<vmem>>, %arg3: memref<1x128xf32, #tpu.memory_space<vmem>>, %arg4: memref<24x128xf32, #tpu.memory_space<vmem>>) attributes {dimension_semantics = [#tpu.dimension_semantics<parallel>], iteration_bounds = array<i64: 1>, scalar_prefetch = 0 : i64, scratch_operands = 0 : i64, tpu.core_type = #tpu.core_type<tc>, window_params = [{transform_indices = @transform_0, window_bounds = array<i64: 24, 256>}, {pipeline_mode = #tpu.pipeline_mode<synchronous>, transform_indices = @transform_1, window_bounds = array<i64: 256, 128>}, {pipeline_mode = #tpu.pipeline_mode<synchronous>, transform_indices = @transform_2, window_bounds = array<i64: 1, 128>}, {transform_indices = @transform_3, window_bounds = array<i64: 24, 128>}]} {
    %c0 = arith.constant 0 : index
    %c0_0 = arith.constant 0 : index
    %0 = vector.load %arg1[%c0, %c0_0] : memref<24x256xf32, #tpu.memory_space<vmem>>, vector<24x256xf32>
    %c0_1 = arith.constant 0 : index
    %c0_2 = arith.constant 0 : index
    %1 = vector.load %arg2[%c0_1, %c0_2] : memref<256x128xf32, #tpu.memory_space<vmem>>, vector<256x128xf32>
    %cst = arith.constant dense<0.000000e+00> : vector<24x128xf32>
    %2 = tpu.matmul %0, %1, %cst {dimension_numbers = #tpu.dot_dimension_numbers<[1], [0], [0], [1], [0, 0, 1, 1], [], []>} : vector<24x256xf32>, vector<256x128xf32>, vector<24x128xf32> -> vector<24x128xf32>
    %c0_3 = arith.constant 0 : index
    %c0_4 = arith.constant 0 : index
    %3 = vector.load %arg3[%c0_3, %c0_4] : memref<1x128xf32, #tpu.memory_space<vmem>>, vector<1x128xf32>
    %4 = vector.broadcast %3 : vector<1x128xf32> to vector<24x128xf32>
    %5 = arith.addf %2, %4 : vector<24x128xf32>
    %c0_5 = arith.constant 0 : index
    %c0_6 = arith.constant 0 : index
    %6 = vector.load %arg4[%c0_5, %c0_6] : memref<24x128xf32, #tpu.memory_space<vmem>>, vector<24x128xf32>
    tpu.vector_store %arg4[%c0_5, %c0_6], %5 {strides = array<i32>} : memref<24x128xf32, #tpu.memory_space<vmem>>, vector<24x128xf32>,
    return
  }
  func.func @transform_0(%arg0: i32) -> (i32, i32) {
    %c0_i32 = arith.constant 0 : i32
    %c0_i32_0 = arith.constant 0 : i32
    return %arg0, %c0_i32 : i32, i32
  }
  func.func @transform_1(%arg0: i32) -> (i32, i32) {
    %c0_i32 = arith.constant 0 : i32
    %c0_i32_0 = arith.constant 0 : i32
    %c0_i32_1 = arith.constant 0 : i32
    return %c0_i32, %c0_i32_0 : i32, i32
  }
  func.func @transform_2(%arg0: i32) -> (i32, i32) {
    %c0_i32 = arith.constant 0 : i32
    %c0_i32_0 = arith.constant 0 : i32
    %c0_i32_1 = arith.constant 0 : i32
    return %c0_i32, %c0_i32_0 : i32, i32
  }
  func.func @transform_3(%arg0: i32) -> (i32, i32) {
    %c0_i32 = arith.constant 0 : i32
    %c0_i32_0 = arith.constant 0 : i32
    return %arg0, %c0_i32 : i32, i32
  }
}

module attributes {stable_mosaic.version = 11 : i64} {
  func.func @_matmul_bias_kernel(%arg0: i32, %arg1: memref<80x32xf32, #tpu.memory_space<vmem>>, %arg2: memref<32x128xf32, #tpu.memory_space<vmem>>, %arg3: memref<1x128xf32, #tpu.memory_space<vmem>>, %arg4: memref<80x128xf32, #tpu.memory_space<vmem>>) attributes {dimension_semantics = [#tpu.dimension_semantics<parallel>], iteration_bounds = array<i64: 1>, scalar_prefetch = 0 : i64, scratch_operands = 0 : i64, tpu.core_type = #tpu.core_type<tc>, window_params = [{transform_indices = @transform_0, window_bounds = array<i64: 80, 32>}, {pipeline_mode = #tpu.pipeline_mode<synchronous>, transform_indices = @transform_1, window_bounds = array<i64: 32, 128>}, {pipeline_mode = #tpu.pipeline_mode<synchronous>, transform_indices = @transform_2, window_bounds = array<i64: 1, 128>}, {transform_indices = @transform_3, window_bounds = array<i64: 80, 128>}]} {
    %c0 = arith.constant 0 : index
    %c0_0 = arith.constant 0 : index
    %0 = vector.load %arg1[%c0, %c0_0] : memref<80x32xf32, #tpu.memory_space<vmem>>, vector<80x32xf32>
    %c0_1 = arith.constant 0 : index
    %c0_2 = arith.constant 0 : index
    %1 = vector.load %arg2[%c0_1, %c0_2] : memref<32x128xf32, #tpu.memory_space<vmem>>, vector<32x128xf32>
    %cst = arith.constant dense<0.000000e+00> : vector<80x128xf32>
    %2 = tpu.matmul %0, %1, %cst {dimension_numbers = #tpu.dot_dimension_numbers<[1], [0], [0], [1], [0, 0, 1, 1], [], []>} : vector<80x32xf32>, vector<32x128xf32>, vector<80x128xf32> -> vector<80x128xf32>
    %c0_3 = arith.constant 0 : index
    %c0_4 = arith.constant 0 : index
    %3 = vector.load %arg3[%c0_3, %c0_4] : memref<1x128xf32, #tpu.memory_space<vmem>>, vector<1x128xf32>
    %4 = vector.broadcast %3 : vector<1x128xf32> to vector<80x128xf32>
    %5 = arith.addf %2, %4 : vector<80x128xf32>
    %c0_5 = arith.constant 0 : index
    %c0_6 = arith.constant 0 : index
    %6 = vector.load %arg4[%c0_5, %c0_6] : memref<80x128xf32, #tpu.memory_space<vmem>>, vector<80x128xf32>
    tpu.vector_store %arg4[%c0_5, %c0_6], %5 {strides = array<i32>} : memref<80x128xf32, #tpu.memory_space<vmem>>, vector<80x128xf32>,
    return
  }
  func.func @transform_0(%arg0: i32) -> (i32, i32) {
    %c0_i32 = arith.constant 0 : i32
    %c0_i32_0 = arith.constant 0 : i32
    return %arg0, %c0_i32 : i32, i32
  }
  func.func @transform_1(%arg0: i32) -> (i32, i32) {
    %c0_i32 = arith.constant 0 : i32
    %c0_i32_0 = arith.constant 0 : i32
    %c0_i32_1 = arith.constant 0 : i32
    return %c0_i32, %c0_i32_0 : i32, i32
  }
  func.func @transform_2(%arg0: i32) -> (i32, i32) {
    %c0_i32 = arith.constant 0 : i32
    %c0_i32_0 = arith.constant 0 : i32
    %c0_i32_1 = arith.constant 0 : i32
    return %c0_i32, %c0_i32_0 : i32, i32
  }
  func.func @transform_3(%arg0: i32) -> (i32, i32) {
    %c0_i32 = arith.constant 0 : i32
    %c0_i32_0 = arith.constant 0 : i32
    return %arg0, %c0_i32 : i32, i32
  }
}

module attributes {stable_mosaic.version = 11 : i64} {
  func.func @_lstm_kernel(%arg0: i32, %arg1: memref<16x8x128xf32, #tpu.memory_space<vmem>>, %arg2: memref<16x8x1xf32, #tpu.memory_space<vmem>>, %arg3: memref<32x128xf32, #tpu.memory_space<vmem>>, %arg4: memref<16x8x32xf32, #tpu.memory_space<vmem>>, %arg5: memref<8x32xf32, #tpu.memory_space<vmem>>, %arg6: memref<8x32xf32, #tpu.memory_space<vmem>>) attributes {dimension_semantics = [#tpu.dimension_semantics<arbitrary>], iteration_bounds = array<i64: 1>, scalar_prefetch = 0 : i64, scratch_operands = 2 : i64, tpu.core_type = #tpu.core_type<tc>, window_params = [{transform_indices = @transform_0, window_bounds = array<i64: 16, 8, 128>}, {transform_indices = @transform_1, window_bounds = array<i64: 16, 8, 1>}, {pipeline_mode = #tpu.pipeline_mode<synchronous>, transform_indices = @transform_2, window_bounds = array<i64: 32, 128>}, {transform_indices = @transform_3, window_bounds = array<i64: 16, 8, 32>}]} {
    %c0_i32 = arith.constant 0 : i32
    %0 = arith.cmpi eq, %arg0, %c0_i32 : i32
    %1 = arith.extui %0 : i1 to i32
    %c0_i32_0 = arith.constant 0 : i32
    %2 = arith.cmpi ne, %1, %c0_i32_0 : i32
    scf.if %2 {
      %cst_322 = arith.constant 0.000000e+00 : f32
      %852 = vector.broadcast %cst_322 : f32 to vector<8x32xf32>
      %c0_323 = arith.constant 0 : index
      %c0_324 = arith.constant 0 : index
      %853 = vector.load %arg5[%c0_323, %c0_324] : memref<8x32xf32, #tpu.memory_space<vmem>>, vector<8x32xf32>
      tpu.vector_store %arg5[%c0_323, %c0_324], %852 {strides = array<i32>} : memref<8x32xf32, #tpu.memory_space<vmem>>, vector<8x32xf32>,
      %cst_325 = arith.constant 0.000000e+00 : f32
      %854 = vector.broadcast %cst_325 : f32 to vector<8x32xf32>
      %c0_326 = arith.constant 0 : index
      %c0_327 = arith.constant 0 : index
      %855 = vector.load %arg6[%c0_326, %c0_327] : memref<8x32xf32, #tpu.memory_space<vmem>>, vector<8x32xf32>
      tpu.vector_store %arg6[%c0_326, %c0_327], %854 {strides = array<i32>} : memref<8x32xf32, #tpu.memory_space<vmem>>, vector<8x32xf32>,
    } else {
    }
    %c0 = arith.constant 0 : index
    %c0_1 = arith.constant 0 : index
    %3 = vector.load %arg3[%c0, %c0_1] : memref<32x128xf32, #tpu.memory_space<vmem>>, vector<32x128xf32>
    %c0_i32_2 = arith.constant 0 : i32
    %c0_3 = arith.constant 0 : index
    %c0_4 = arith.constant 0 : index
    %4 = vector.load %arg5[%c0_3, %c0_4] : memref<8x32xf32, #tpu.memory_space<vmem>>, vector<8x32xf32>
    %c0_5 = arith.constant 0 : index
    %c0_6 = arith.constant 0 : index
    %5 = vector.load %arg6[%c0_5, %c0_6] : memref<8x32xf32, #tpu.memory_space<vmem>>, vector<8x32xf32>
    %6 = arith.index_cast %c0_i32_2 : i32 to index
    %c0_7 = arith.constant 0 : index
    %c0_8 = arith.constant 0 : index
    %7 = vector.load %arg1[%6, %c0_7, %c0_8] : memref<16x8x128xf32, #tpu.memory_space<vmem>>, vector<1x8x128xf32>
    %8 = vector.shape_cast %7 : vector<1x8x128xf32> to vector<8x128xf32>
    %cst = arith.constant dense<0.000000e+00> : vector<8x128xf32>
    %9 = tpu.matmul %4, %3, %cst {dimension_numbers = #tpu.dot_dimension_numbers<[1], [0], [0], [1], [0, 0, 1, 1], [], []>} : vector<8x32xf32>, vector<32x128xf32>, vector<8x128xf32> -> vector<8x128xf32>
    %10 = arith.addf %8, %9 : vector<8x128xf32>
    %11 = vector.extract_strided_slice %10 {offsets = [0, 0], sizes = [8, 32], strides = [1, 1]} : vector<8x128xf32> to vector<8x32xf32>
    %12 = arith.negf %11 : vector<8x32xf32>
    %13 = math.exp %12 : vector<8x32xf32>
    %cst_9 = arith.constant 1.000000e+00 : f32
    %14 = vector.broadcast %cst_9 : f32 to vector<8x32xf32>
    %15 = arith.addf %14, %13 : vector<8x32xf32>
    %16 = arith.divf %14, %15 : vector<8x32xf32>
    %17 = vector.extract_strided_slice %10 {offsets = [0, 32], sizes = [8, 32], strides = [1, 1]} : vector<8x128xf32> to vector<8x32xf32>
    %18 = arith.negf %17 : vector<8x32xf32>
    %19 = math.exp %18 : vector<8x32xf32>
    %cst_10 = arith.constant 1.000000e+00 : f32
    %20 = vector.broadcast %cst_10 : f32 to vector<8x32xf32>
    %21 = arith.addf %20, %19 : vector<8x32xf32>
    %22 = arith.divf %20, %21 : vector<8x32xf32>
    %23 = vector.extract_strided_slice %10 {offsets = [0, 64], sizes = [8, 32], strides = [1, 1]} : vector<8x128xf32> to vector<8x32xf32>
    %24 = math.tanh %23 : vector<8x32xf32>
    %25 = vector.extract_strided_slice %10 {offsets = [0, 96], sizes = [8, 32], strides = [1, 1]} : vector<8x128xf32> to vector<8x32xf32>
    %26 = arith.negf %25 : vector<8x32xf32>
    %27 = math.exp %26 : vector<8x32xf32>
    %cst_11 = arith.constant 1.000000e+00 : f32
    %28 = vector.broadcast %cst_11 : f32 to vector<8x32xf32>
    %29 = arith.addf %28, %27 : vector<8x32xf32>
    %30 = arith.divf %28, %29 : vector<8x32xf32>
    %31 = arith.mulf %22, %5 : vector<8x32xf32>
    %32 = arith.mulf %16, %24 : vector<8x32xf32>
    %33 = arith.addf %31, %32 : vector<8x32xf32>
    %34 = math.tanh %33 : vector<8x32xf32>
    %35 = arith.mulf %30, %34 : vector<8x32xf32>
    %36 = arith.index_cast %c0_i32_2 : i32 to index
    %c0_12 = arith.constant 0 : index
    %c0_13 = arith.constant 0 : index
    %37 = vector.load %arg2[%36, %c0_12, %c0_13] : memref<16x8x1xf32, #tpu.memory_space<vmem>>, vector<1x8x1xf32>
    %38 = vector.shape_cast %37 : vector<1x8x1xf32> to vector<8x1xf32>
    %cst_14 = arith.constant 0.000000e+00 : f32
    %39 = vector.broadcast %cst_14 : f32 to vector<8x1xf32>
    %40 = arith.cmpf ogt, %38, %39 : vector<8x1xf32>
    %41 = vector.shape_cast %40 : vector<8x1xi1> to vector<8x1xi1>
    %42 = vector.broadcast %41 : vector<8x1xi1> to vector<8x32xi1>
    %43 = arith.select %42, %35, %4 : vector<8x32xi1>, vector<8x32xf32>
    %c0_15 = arith.constant 0 : index
    %c0_16 = arith.constant 0 : index
    %44 = vector.load %arg5[%c0_15, %c0_16] : memref<8x32xf32, #tpu.memory_space<vmem>>, vector<8x32xf32>
    tpu.vector_store %arg5[%c0_15, %c0_16], %43 {strides = array<i32>} : memref<8x32xf32, #tpu.memory_space<vmem>>, vector<8x32xf32>,
    %45 = vector.shape_cast %40 : vector<8x1xi1> to vector<8x1xi1>
    %46 = vector.broadcast %45 : vector<8x1xi1> to vector<8x32xi1>
    %47 = arith.select %46, %33, %5 : vector<8x32xi1>, vector<8x32xf32>
    %c0_17 = arith.constant 0 : index
    %c0_18 = arith.constant 0 : index
    %48 = vector.load %arg6[%c0_17, %c0_18] : memref<8x32xf32, #tpu.memory_space<vmem>>, vector<8x32xf32>
    tpu.vector_store %arg6[%c0_17, %c0_18], %47 {strides = array<i32>} : memref<8x32xf32, #tpu.memory_space<vmem>>, vector<8x32xf32>,
    %cst_19 = arith.constant 0.000000e+00 : f32
    %49 = vector.shape_cast %40 : vector<8x1xi1> to vector<8x1xi1>
    %50 = vector.broadcast %49 : vector<8x1xi1> to vector<8x32xi1>
    %51 = vector.broadcast %cst_19 : f32 to vector<8x32xf32>
    %52 = arith.select %50, %35, %51 : vector<8x32xi1>, vector<8x32xf32>
    %53 = arith.index_cast %c0_i32_2 : i32 to index
    %c0_20 = arith.constant 0 : index
    %c0_21 = arith.constant 0 : index
    %54 = vector.load %arg4[%53, %c0_20, %c0_21] : memref<16x8x32xf32, #tpu.memory_space<vmem>>, vector<1x8x32xf32>
    %55 = vector.shape_cast %54 : vector<1x8x32xf32> to vector<8x32xf32>
    %56 = vector.shape_cast %52 : vector<8x32xf32> to vector<1x8x32xf32>
    tpu.vector_store %arg4[%53, %c0_20, %c0_21], %56 {strides = array<i32>} : memref<16x8x32xf32, #tpu.memory_space<vmem>>, vector<1x8x32xf32>,
    %c1_i32 = arith.constant 1 : i32
    %c0_22 = arith.constant 0 : index
    %c0_23 = arith.constant 0 : index
    %57 = vector.load %arg5[%c0_22, %c0_23] : memref<8x32xf32, #tpu.memory_space<vmem>>, vector<8x32xf32>
    %c0_24 = arith.constant 0 : index
    %c0_25 = arith.constant 0 : index
    %58 = vector.load %arg6[%c0_24, %c0_25] : memref<8x32xf32, #tpu.memory_space<vmem>>, vector<8x32xf32>
    %59 = arith.index_cast %c1_i32 : i32 to index
    %c0_26 = arith.constant 0 : index
    %c0_27 = arith.constant 0 : index
    %60 = vector.load %arg1[%59, %c0_26, %c0_27] : memref<16x8x128xf32, #tpu.memory_space<vmem>>, vector<1x8x128xf32>
    %61 = vector.shape_cast %60 : vector<1x8x128xf32> to vector<8x128xf32>
    %cst_28 = arith.constant dense<0.000000e+00> : vector<8x128xf32>
    %62 = tpu.matmul %57, %3, %cst_28 {dimension_numbers = #tpu.dot_dimension_numbers<[1], [0], [0], [1], [0, 0, 1, 1], [], []>} : vector<8x32xf32>, vector<32x128xf32>, vector<8x128xf32> -> vector<8x128xf32>
    %63 = arith.addf %61, %62 : vector<8x128xf32>
    %64 = vector.extract_strided_slice %63 {offsets = [0, 0], sizes = [8, 32], strides = [1, 1]} : vector<8x128xf32> to vector<8x32xf32>
    %65 = arith.negf %64 : vector<8x32xf32>
    %66 = math.exp %65 : vector<8x32xf32>
    %cst_29 = arith.constant 1.000000e+00 : f32
    %67 = vector.broadcast %cst_29 : f32 to vector<8x32xf32>
    %68 = arith.addf %67, %66 : vector<8x32xf32>
    %69 = arith.divf %67, %68 : vector<8x32xf32>
    %70 = vector.extract_strided_slice %63 {offsets = [0, 32], sizes = [8, 32], strides = [1, 1]} : vector<8x128xf32> to vector<8x32xf32>
    %71 = arith.negf %70 : vector<8x32xf32>
    %72 = math.exp %71 : vector<8x32xf32>
    %cst_30 = arith.constant 1.000000e+00 : f32
    %73 = vector.broadcast %cst_30 : f32 to vector<8x32xf32>
    %74 = arith.addf %73, %72 : vector<8x32xf32>
    %75 = arith.divf %73, %74 : vector<8x32xf32>
    %76 = vector.extract_strided_slice %63 {offsets = [0, 64], sizes = [8, 32], strides = [1, 1]} : vector<8x128xf32> to vector<8x32xf32>
    %77 = math.tanh %76 : vector<8x32xf32>
    %78 = vector.extract_strided_slice %63 {offsets = [0, 96], sizes = [8, 32], strides = [1, 1]} : vector<8x128xf32> to vector<8x32xf32>
    %79 = arith.negf %78 : vector<8x32xf32>
    %80 = math.exp %79 : vector<8x32xf32>
    %cst_31 = arith.constant 1.000000e+00 : f32
    %81 = vector.broadcast %cst_31 : f32 to vector<8x32xf32>
    %82 = arith.addf %81, %80 : vector<8x32xf32>
    %83 = arith.divf %81, %82 : vector<8x32xf32>
    %84 = arith.mulf %75, %58 : vector<8x32xf32>
    %85 = arith.mulf %69, %77 : vector<8x32xf32>
    %86 = arith.addf %84, %85 : vector<8x32xf32>
    %87 = math.tanh %86 : vector<8x32xf32>
    %88 = arith.mulf %83, %87 : vector<8x32xf32>
    %89 = arith.index_cast %c1_i32 : i32 to index
    %c0_32 = arith.constant 0 : index
    %c0_33 = arith.constant 0 : index
    %90 = vector.load %arg2[%89, %c0_32, %c0_33] : memref<16x8x1xf32, #tpu.memory_space<vmem>>, vector<1x8x1xf32>
    %91 = vector.shape_cast %90 : vector<1x8x1xf32> to vector<8x1xf32>
    %cst_34 = arith.constant 0.000000e+00 : f32
    %92 = vector.broadcast %cst_34 : f32 to vector<8x1xf32>
    %93 = arith.cmpf ogt, %91, %92 : vector<8x1xf32>
    %94 = vector.shape_cast %93 : vector<8x1xi1> to vector<8x1xi1>
    %95 = vector.broadcast %94 : vector<8x1xi1> to vector<8x32xi1>
    %96 = arith.select %95, %88, %57 : vector<8x32xi1>, vector<8x32xf32>
    %c0_35 = arith.constant 0 : index
    %c0_36 = arith.constant 0 : index
    %97 = vector.load %arg5[%c0_35, %c0_36] : memref<8x32xf32, #tpu.memory_space<vmem>>, vector<8x32xf32>
    tpu.vector_store %arg5[%c0_35, %c0_36], %96 {strides = array<i32>} : memref<8x32xf32, #tpu.memory_space<vmem>>, vector<8x32xf32>,
    %98 = vector.shape_cast %93 : vector<8x1xi1> to vector<8x1xi1>
    %99 = vector.broadcast %98 : vector<8x1xi1> to vector<8x32xi1>
    %100 = arith.select %99, %86, %58 : vector<8x32xi1>, vector<8x32xf32>
    %c0_37 = arith.constant 0 : index
    %c0_38 = arith.constant 0 : index
    %101 = vector.load %arg6[%c0_37, %c0_38] : memref<8x32xf32, #tpu.memory_space<vmem>>, vector<8x32xf32>
    tpu.vector_store %arg6[%c0_37, %c0_38], %100 {strides = array<i32>} : memref<8x32xf32, #tpu.memory_space<vmem>>, vector<8x32xf32>,
    %cst_39 = arith.constant 0.000000e+00 : f32
    %102 = vector.shape_cast %93 : vector<8x1xi1> to vector<8x1xi1>
    %103 = vector.broadcast %102 : vector<8x1xi1> to vector<8x32xi1>
    %104 = vector.broadcast %cst_39 : f32 to vector<8x32xf32>
    %105 = arith.select %103, %88, %104 : vector<8x32xi1>, vector<8x32xf32>
    %106 = arith.index_cast %c1_i32 : i32 to index
    %c0_40 = arith.constant 0 : index
    %c0_41 = arith.constant 0 : index
    %107 = vector.load %arg4[%106, %c0_40, %c0_41] : memref<16x8x32xf32, #tpu.memory_space<vmem>>, vector<1x8x32xf32>
    %108 = vector.shape_cast %107 : vector<1x8x32xf32> to vector<8x32xf32>
    %109 = vector.shape_cast %105 : vector<8x32xf32> to vector<1x8x32xf32>
    tpu.vector_store %arg4[%106, %c0_40, %c0_41], %109 {strides = array<i32>} : memref<16x8x32xf32, #tpu.memory_space<vmem>>, vector<1x8x32xf32>,
    %c2_i32 = arith.constant 2 : i32
    %c0_42 = arith.constant 0 : index
    %c0_43 = arith.constant 0 : index
    %110 = vector.load %arg5[%c0_42, %c0_43] : memref<8x32xf32, #tpu.memory_space<vmem>>, vector<8x32xf32>
    %c0_44 = arith.constant 0 : index
    %c0_45 = arith.constant 0 : index
    %111 = vector.load %arg6[%c0_44, %c0_45] : memref<8x32xf32, #tpu.memory_space<vmem>>, vector<8x32xf32>
    %112 = arith.index_cast %c2_i32 : i32 to index
    %c0_46 = arith.constant 0 : index
    %c0_47 = arith.constant 0 : index
    %113 = vector.load %arg1[%112, %c0_46, %c0_47] : memref<16x8x128xf32, #tpu.memory_space<vmem>>, vector<1x8x128xf32>
    %114 = vector.shape_cast %113 : vector<1x8x128xf32> to vector<8x128xf32>
    %cst_48 = arith.constant dense<0.000000e+00> : vector<8x128xf32>
    %115 = tpu.matmul %110, %3, %cst_48 {dimension_numbers = #tpu.dot_dimension_numbers<[1], [0], [0], [1], [0, 0, 1, 1], [], []>} : vector<8x32xf32>, vector<32x128xf32>, vector<8x128xf32> -> vector<8x128xf32>
    %116 = arith.addf %114, %115 : vector<8x128xf32>
    %117 = vector.extract_strided_slice %116 {offsets = [0, 0], sizes = [8, 32], strides = [1, 1]} : vector<8x128xf32> to vector<8x32xf32>
    %118 = arith.negf %117 : vector<8x32xf32>
    %119 = math.exp %118 : vector<8x32xf32>
    %cst_49 = arith.constant 1.000000e+00 : f32
    %120 = vector.broadcast %cst_49 : f32 to vector<8x32xf32>
    %121 = arith.addf %120, %119 : vector<8x32xf32>
    %122 = arith.divf %120, %121 : vector<8x32xf32>
    %123 = vector.extract_strided_slice %116 {offsets = [0, 32], sizes = [8, 32], strides = [1, 1]} : vector<8x128xf32> to vector<8x32xf32>
    %124 = arith.negf %123 : vector<8x32xf32>
    %125 = math.exp %124 : vector<8x32xf32>
    %cst_50 = arith.constant 1.000000e+00 : f32
    %126 = vector.broadcast %cst_50 : f32 to vector<8x32xf32>
    %127 = arith.addf %126, %125 : vector<8x32xf32>
    %128 = arith.divf %126, %127 : vector<8x32xf32>
    %129 = vector.extract_strided_slice %116 {offsets = [0, 64], sizes = [8, 32], strides = [1, 1]} : vector<8x128xf32> to vector<8x32xf32>
    %130 = math.tanh %129 : vector<8x32xf32>
    %131 = vector.extract_strided_slice %116 {offsets = [0, 96], sizes = [8, 32], strides = [1, 1]} : vector<8x128xf32> to vector<8x32xf32>
    %132 = arith.negf %131 : vector<8x32xf32>
    %133 = math.exp %132 : vector<8x32xf32>
    %cst_51 = arith.constant 1.000000e+00 : f32
    %134 = vector.broadcast %cst_51 : f32 to vector<8x32xf32>
    %135 = arith.addf %134, %133 : vector<8x32xf32>
    %136 = arith.divf %134, %135 : vector<8x32xf32>
    %137 = arith.mulf %128, %111 : vector<8x32xf32>
    %138 = arith.mulf %122, %130 : vector<8x32xf32>
    %139 = arith.addf %137, %138 : vector<8x32xf32>
    %140 = math.tanh %139 : vector<8x32xf32>
    %141 = arith.mulf %136, %140 : vector<8x32xf32>
    %142 = arith.index_cast %c2_i32 : i32 to index
    %c0_52 = arith.constant 0 : index
    %c0_53 = arith.constant 0 : index
    %143 = vector.load %arg2[%142, %c0_52, %c0_53] : memref<16x8x1xf32, #tpu.memory_space<vmem>>, vector<1x8x1xf32>
    %144 = vector.shape_cast %143 : vector<1x8x1xf32> to vector<8x1xf32>
    %cst_54 = arith.constant 0.000000e+00 : f32
    %145 = vector.broadcast %cst_54 : f32 to vector<8x1xf32>
    %146 = arith.cmpf ogt, %144, %145 : vector<8x1xf32>
    %147 = vector.shape_cast %146 : vector<8x1xi1> to vector<8x1xi1>
    %148 = vector.broadcast %147 : vector<8x1xi1> to vector<8x32xi1>
    %149 = arith.select %148, %141, %110 : vector<8x32xi1>, vector<8x32xf32>
    %c0_55 = arith.constant 0 : index
    %c0_56 = arith.constant 0 : index
    %150 = vector.load %arg5[%c0_55, %c0_56] : memref<8x32xf32, #tpu.memory_space<vmem>>, vector<8x32xf32>
    tpu.vector_store %arg5[%c0_55, %c0_56], %149 {strides = array<i32>} : memref<8x32xf32, #tpu.memory_space<vmem>>, vector<8x32xf32>,
    %151 = vector.shape_cast %146 : vector<8x1xi1> to vector<8x1xi1>
    %152 = vector.broadcast %151 : vector<8x1xi1> to vector<8x32xi1>
    %153 = arith.select %152, %139, %111 : vector<8x32xi1>, vector<8x32xf32>
    %c0_57 = arith.constant 0 : index
    %c0_58 = arith.constant 0 : index
    %154 = vector.load %arg6[%c0_57, %c0_58] : memref<8x32xf32, #tpu.memory_space<vmem>>, vector<8x32xf32>
    tpu.vector_store %arg6[%c0_57, %c0_58], %153 {strides = array<i32>} : memref<8x32xf32, #tpu.memory_space<vmem>>, vector<8x32xf32>,
    %cst_59 = arith.constant 0.000000e+00 : f32
    %155 = vector.shape_cast %146 : vector<8x1xi1> to vector<8x1xi1>
    %156 = vector.broadcast %155 : vector<8x1xi1> to vector<8x32xi1>
    %157 = vector.broadcast %cst_59 : f32 to vector<8x32xf32>
    %158 = arith.select %156, %141, %157 : vector<8x32xi1>, vector<8x32xf32>
    %159 = arith.index_cast %c2_i32 : i32 to index
    %c0_60 = arith.constant 0 : index
    %c0_61 = arith.constant 0 : index
    %160 = vector.load %arg4[%159, %c0_60, %c0_61] : memref<16x8x32xf32, #tpu.memory_space<vmem>>, vector<1x8x32xf32>
    %161 = vector.shape_cast %160 : vector<1x8x32xf32> to vector<8x32xf32>
    %162 = vector.shape_cast %158 : vector<8x32xf32> to vector<1x8x32xf32>
    tpu.vector_store %arg4[%159, %c0_60, %c0_61], %162 {strides = array<i32>} : memref<16x8x32xf32, #tpu.memory_space<vmem>>, vector<1x8x32xf32>,
    %c3_i32 = arith.constant 3 : i32
    %c0_62 = arith.constant 0 : index
    %c0_63 = arith.constant 0 : index
    %163 = vector.load %arg5[%c0_62, %c0_63] : memref<8x32xf32, #tpu.memory_space<vmem>>, vector<8x32xf32>
    %c0_64 = arith.constant 0 : index
    %c0_65 = arith.constant 0 : index
    %164 = vector.load %arg6[%c0_64, %c0_65] : memref<8x32xf32, #tpu.memory_space<vmem>>, vector<8x32xf32>
    %165 = arith.index_cast %c3_i32 : i32 to index
    %c0_66 = arith.constant 0 : index
    %c0_67 = arith.constant 0 : index
    %166 = vector.load %arg1[%165, %c0_66, %c0_67] : memref<16x8x128xf32, #tpu.memory_space<vmem>>, vector<1x8x128xf32>
    %167 = vector.shape_cast %166 : vector<1x8x128xf32> to vector<8x128xf32>
    %cst_68 = arith.constant dense<0.000000e+00> : vector<8x128xf32>
    %168 = tpu.matmul %163, %3, %cst_68 {dimension_numbers = #tpu.dot_dimension_numbers<[1], [0], [0], [1], [0, 0, 1, 1], [], []>} : vector<8x32xf32>, vector<32x128xf32>, vector<8x128xf32> -> vector<8x128xf32>
    %169 = arith.addf %167, %168 : vector<8x128xf32>
    %170 = vector.extract_strided_slice %169 {offsets = [0, 0], sizes = [8, 32], strides = [1, 1]} : vector<8x128xf32> to vector<8x32xf32>
    %171 = arith.negf %170 : vector<8x32xf32>
    %172 = math.exp %171 : vector<8x32xf32>
    %cst_69 = arith.constant 1.000000e+00 : f32
    %173 = vector.broadcast %cst_69 : f32 to vector<8x32xf32>
    %174 = arith.addf %173, %172 : vector<8x32xf32>
    %175 = arith.divf %173, %174 : vector<8x32xf32>
    %176 = vector.extract_strided_slice %169 {offsets = [0, 32], sizes = [8, 32], strides = [1, 1]} : vector<8x128xf32> to vector<8x32xf32>
    %177 = arith.negf %176 : vector<8x32xf32>
    %178 = math.exp %177 : vector<8x32xf32>
    %cst_70 = arith.constant 1.000000e+00 : f32
    %179 = vector.broadcast %cst_70 : f32 to vector<8x32xf32>
    %180 = arith.addf %179, %178 : vector<8x32xf32>
    %181 = arith.divf %179, %180 : vector<8x32xf32>
    %182 = vector.extract_strided_slice %169 {offsets = [0, 64], sizes = [8, 32], strides = [1, 1]} : vector<8x128xf32> to vector<8x32xf32>
    %183 = math.tanh %182 : vector<8x32xf32>
    %184 = vector.extract_strided_slice %169 {offsets = [0, 96], sizes = [8, 32], strides = [1, 1]} : vector<8x128xf32> to vector<8x32xf32>
    %185 = arith.negf %184 : vector<8x32xf32>
    %186 = math.exp %185 : vector<8x32xf32>
    %cst_71 = arith.constant 1.000000e+00 : f32
    %187 = vector.broadcast %cst_71 : f32 to vector<8x32xf32>
    %188 = arith.addf %187, %186 : vector<8x32xf32>
    %189 = arith.divf %187, %188 : vector<8x32xf32>
    %190 = arith.mulf %181, %164 : vector<8x32xf32>
    %191 = arith.mulf %175, %183 : vector<8x32xf32>
    %192 = arith.addf %190, %191 : vector<8x32xf32>
    %193 = math.tanh %192 : vector<8x32xf32>
    %194 = arith.mulf %189, %193 : vector<8x32xf32>
    %195 = arith.index_cast %c3_i32 : i32 to index
    %c0_72 = arith.constant 0 : index
    %c0_73 = arith.constant 0 : index
    %196 = vector.load %arg2[%195, %c0_72, %c0_73] : memref<16x8x1xf32, #tpu.memory_space<vmem>>, vector<1x8x1xf32>
    %197 = vector.shape_cast %196 : vector<1x8x1xf32> to vector<8x1xf32>
    %cst_74 = arith.constant 0.000000e+00 : f32
    %198 = vector.broadcast %cst_74 : f32 to vector<8x1xf32>
    %199 = arith.cmpf ogt, %197, %198 : vector<8x1xf32>
    %200 = vector.shape_cast %199 : vector<8x1xi1> to vector<8x1xi1>
    %201 = vector.broadcast %200 : vector<8x1xi1> to vector<8x32xi1>
    %202 = arith.select %201, %194, %163 : vector<8x32xi1>, vector<8x32xf32>
    %c0_75 = arith.constant 0 : index
    %c0_76 = arith.constant 0 : index
    %203 = vector.load %arg5[%c0_75, %c0_76] : memref<8x32xf32, #tpu.memory_space<vmem>>, vector<8x32xf32>
    tpu.vector_store %arg5[%c0_75, %c0_76], %202 {strides = array<i32>} : memref<8x32xf32, #tpu.memory_space<vmem>>, vector<8x32xf32>,
    %204 = vector.shape_cast %199 : vector<8x1xi1> to vector<8x1xi1>
    %205 = vector.broadcast %204 : vector<8x1xi1> to vector<8x32xi1>
    %206 = arith.select %205, %192, %164 : vector<8x32xi1>, vector<8x32xf32>
    %c0_77 = arith.constant 0 : index
    %c0_78 = arith.constant 0 : index
    %207 = vector.load %arg6[%c0_77, %c0_78] : memref<8x32xf32, #tpu.memory_space<vmem>>, vector<8x32xf32>
    tpu.vector_store %arg6[%c0_77, %c0_78], %206 {strides = array<i32>} : memref<8x32xf32, #tpu.memory_space<vmem>>, vector<8x32xf32>,
    %cst_79 = arith.constant 0.000000e+00 : f32
    %208 = vector.shape_cast %199 : vector<8x1xi1> to vector<8x1xi1>
    %209 = vector.broadcast %208 : vector<8x1xi1> to vector<8x32xi1>
    %210 = vector.broadcast %cst_79 : f32 to vector<8x32xf32>
    %211 = arith.select %209, %194, %210 : vector<8x32xi1>, vector<8x32xf32>
    %212 = arith.index_cast %c3_i32 : i32 to index
    %c0_80 = arith.constant 0 : index
    %c0_81 = arith.constant 0 : index
    %213 = vector.load %arg4[%212, %c0_80, %c0_81] : memref<16x8x32xf32, #tpu.memory_space<vmem>>, vector<1x8x32xf32>
    %214 = vector.shape_cast %213 : vector<1x8x32xf32> to vector<8x32xf32>
    %215 = vector.shape_cast %211 : vector<8x32xf32> to vector<1x8x32xf32>
    tpu.vector_store %arg4[%212, %c0_80, %c0_81], %215 {strides = array<i32>} : memref<16x8x32xf32, #tpu.memory_space<vmem>>, vector<1x8x32xf32>,
    %c4_i32 = arith.constant 4 : i32
    %c0_82 = arith.constant 0 : index
    %c0_83 = arith.constant 0 : index
    %216 = vector.load %arg5[%c0_82, %c0_83] : memref<8x32xf32, #tpu.memory_space<vmem>>, vector<8x32xf32>
    %c0_84 = arith.constant 0 : index
    %c0_85 = arith.constant 0 : index
    %217 = vector.load %arg6[%c0_84, %c0_85] : memref<8x32xf32, #tpu.memory_space<vmem>>, vector<8x32xf32>
    %218 = arith.index_cast %c4_i32 : i32 to index
    %c0_86 = arith.constant 0 : index
    %c0_87 = arith.constant 0 : index
    %219 = vector.load %arg1[%218, %c0_86, %c0_87] : memref<16x8x128xf32, #tpu.memory_space<vmem>>, vector<1x8x128xf32>
    %220 = vector.shape_cast %219 : vector<1x8x128xf32> to vector<8x128xf32>
    %cst_88 = arith.constant dense<0.000000e+00> : vector<8x128xf32>
    %221 = tpu.matmul %216, %3, %cst_88 {dimension_numbers = #tpu.dot_dimension_numbers<[1], [0], [0], [1], [0, 0, 1, 1], [], []>} : vector<8x32xf32>, vector<32x128xf32>, vector<8x128xf32> -> vector<8x128xf32>
    %222 = arith.addf %220, %221 : vector<8x128xf32>
    %223 = vector.extract_strided_slice %222 {offsets = [0, 0], sizes = [8, 32], strides = [1, 1]} : vector<8x128xf32> to vector<8x32xf32>
    %224 = arith.negf %223 : vector<8x32xf32>
    %225 = math.exp %224 : vector<8x32xf32>
    %cst_89 = arith.constant 1.000000e+00 : f32
    %226 = vector.broadcast %cst_89 : f32 to vector<8x32xf32>
    %227 = arith.addf %226, %225 : vector<8x32xf32>
    %228 = arith.divf %226, %227 : vector<8x32xf32>
    %229 = vector.extract_strided_slice %222 {offsets = [0, 32], sizes = [8, 32], strides = [1, 1]} : vector<8x128xf32> to vector<8x32xf32>
    %230 = arith.negf %229 : vector<8x32xf32>
    %231 = math.exp %230 : vector<8x32xf32>
    %cst_90 = arith.constant 1.000000e+00 : f32
    %232 = vector.broadcast %cst_90 : f32 to vector<8x32xf32>
    %233 = arith.addf %232, %231 : vector<8x32xf32>
    %234 = arith.divf %232, %233 : vector<8x32xf32>
    %235 = vector.extract_strided_slice %222 {offsets = [0, 64], sizes = [8, 32], strides = [1, 1]} : vector<8x128xf32> to vector<8x32xf32>
    %236 = math.tanh %235 : vector<8x32xf32>
    %237 = vector.extract_strided_slice %222 {offsets = [0, 96], sizes = [8, 32], strides = [1, 1]} : vector<8x128xf32> to vector<8x32xf32>
    %238 = arith.negf %237 : vector<8x32xf32>
    %239 = math.exp %238 : vector<8x32xf32>
    %cst_91 = arith.constant 1.000000e+00 : f32
    %240 = vector.broadcast %cst_91 : f32 to vector<8x32xf32>
    %241 = arith.addf %240, %239 : vector<8x32xf32>
    %242 = arith.divf %240, %241 : vector<8x32xf32>
    %243 = arith.mulf %234, %217 : vector<8x32xf32>
    %244 = arith.mulf %228, %236 : vector<8x32xf32>
    %245 = arith.addf %243, %244 : vector<8x32xf32>
    %246 = math.tanh %245 : vector<8x32xf32>
    %247 = arith.mulf %242, %246 : vector<8x32xf32>
    %248 = arith.index_cast %c4_i32 : i32 to index
    %c0_92 = arith.constant 0 : index
    %c0_93 = arith.constant 0 : index
    %249 = vector.load %arg2[%248, %c0_92, %c0_93] : memref<16x8x1xf32, #tpu.memory_space<vmem>>, vector<1x8x1xf32>
    %250 = vector.shape_cast %249 : vector<1x8x1xf32> to vector<8x1xf32>
    %cst_94 = arith.constant 0.000000e+00 : f32
    %251 = vector.broadcast %cst_94 : f32 to vector<8x1xf32>
    %252 = arith.cmpf ogt, %250, %251 : vector<8x1xf32>
    %253 = vector.shape_cast %252 : vector<8x1xi1> to vector<8x1xi1>
    %254 = vector.broadcast %253 : vector<8x1xi1> to vector<8x32xi1>
    %255 = arith.select %254, %247, %216 : vector<8x32xi1>, vector<8x32xf32>
    %c0_95 = arith.constant 0 : index
    %c0_96 = arith.constant 0 : index
    %256 = vector.load %arg5[%c0_95, %c0_96] : memref<8x32xf32, #tpu.memory_space<vmem>>, vector<8x32xf32>
    tpu.vector_store %arg5[%c0_95, %c0_96], %255 {strides = array<i32>} : memref<8x32xf32, #tpu.memory_space<vmem>>, vector<8x32xf32>,
    %257 = vector.shape_cast %252 : vector<8x1xi1> to vector<8x1xi1>
    %258 = vector.broadcast %257 : vector<8x1xi1> to vector<8x32xi1>
    %259 = arith.select %258, %245, %217 : vector<8x32xi1>, vector<8x32xf32>
    %c0_97 = arith.constant 0 : index
    %c0_98 = arith.constant 0 : index
    %260 = vector.load %arg6[%c0_97, %c0_98] : memref<8x32xf32, #tpu.memory_space<vmem>>, vector<8x32xf32>
    tpu.vector_store %arg6[%c0_97, %c0_98], %259 {strides = array<i32>} : memref<8x32xf32, #tpu.memory_space<vmem>>, vector<8x32xf32>,
    %cst_99 = arith.constant 0.000000e+00 : f32
    %261 = vector.shape_cast %252 : vector<8x1xi1> to vector<8x1xi1>
    %262 = vector.broadcast %261 : vector<8x1xi1> to vector<8x32xi1>
    %263 = vector.broadcast %cst_99 : f32 to vector<8x32xf32>
    %264 = arith.select %262, %247, %263 : vector<8x32xi1>, vector<8x32xf32>
    %265 = arith.index_cast %c4_i32 : i32 to index
    %c0_100 = arith.constant 0 : index
    %c0_101 = arith.constant 0 : index
    %266 = vector.load %arg4[%265, %c0_100, %c0_101] : memref<16x8x32xf32, #tpu.memory_space<vmem>>, vector<1x8x32xf32>
    %267 = vector.shape_cast %266 : vector<1x8x32xf32> to vector<8x32xf32>
    %268 = vector.shape_cast %264 : vector<8x32xf32> to vector<1x8x32xf32>
    tpu.vector_store %arg4[%265, %c0_100, %c0_101], %268 {strides = array<i32>} : memref<16x8x32xf32, #tpu.memory_space<vmem>>, vector<1x8x32xf32>,
    %c5_i32 = arith.constant 5 : i32
    %c0_102 = arith.constant 0 : index
    %c0_103 = arith.constant 0 : index
    %269 = vector.load %arg5[%c0_102, %c0_103] : memref<8x32xf32, #tpu.memory_space<vmem>>, vector<8x32xf32>
    %c0_104 = arith.constant 0 : index
    %c0_105 = arith.constant 0 : index
    %270 = vector.load %arg6[%c0_104, %c0_105] : memref<8x32xf32, #tpu.memory_space<vmem>>, vector<8x32xf32>
    %271 = arith.index_cast %c5_i32 : i32 to index
    %c0_106 = arith.constant 0 : index
    %c0_107 = arith.constant 0 : index
    %272 = vector.load %arg1[%271, %c0_106, %c0_107] : memref<16x8x128xf32, #tpu.memory_space<vmem>>, vector<1x8x128xf32>
    %273 = vector.shape_cast %272 : vector<1x8x128xf32> to vector<8x128xf32>
    %cst_108 = arith.constant dense<0.000000e+00> : vector<8x128xf32>
    %274 = tpu.matmul %269, %3, %cst_108 {dimension_numbers = #tpu.dot_dimension_numbers<[1], [0], [0], [1], [0, 0, 1, 1], [], []>} : vector<8x32xf32>, vector<32x128xf32>, vector<8x128xf32> -> vector<8x128xf32>
    %275 = arith.addf %273, %274 : vector<8x128xf32>
    %276 = vector.extract_strided_slice %275 {offsets = [0, 0], sizes = [8, 32], strides = [1, 1]} : vector<8x128xf32> to vector<8x32xf32>
    %277 = arith.negf %276 : vector<8x32xf32>
    %278 = math.exp %277 : vector<8x32xf32>
    %cst_109 = arith.constant 1.000000e+00 : f32
    %279 = vector.broadcast %cst_109 : f32 to vector<8x32xf32>
    %280 = arith.addf %279, %278 : vector<8x32xf32>
    %281 = arith.divf %279, %280 : vector<8x32xf32>
    %282 = vector.extract_strided_slice %275 {offsets = [0, 32], sizes = [8, 32], strides = [1, 1]} : vector<8x128xf32> to vector<8x32xf32>
    %283 = arith.negf %282 : vector<8x32xf32>
    %284 = math.exp %283 : vector<8x32xf32>
    %cst_110 = arith.constant 1.000000e+00 : f32
    %285 = vector.broadcast %cst_110 : f32 to vector<8x32xf32>
    %286 = arith.addf %285, %284 : vector<8x32xf32>
    %287 = arith.divf %285, %286 : vector<8x32xf32>
    %288 = vector.extract_strided_slice %275 {offsets = [0, 64], sizes = [8, 32], strides = [1, 1]} : vector<8x128xf32> to vector<8x32xf32>
    %289 = math.tanh %288 : vector<8x32xf32>
    %290 = vector.extract_strided_slice %275 {offsets = [0, 96], sizes = [8, 32], strides = [1, 1]} : vector<8x128xf32> to vector<8x32xf32>
    %291 = arith.negf %290 : vector<8x32xf32>
    %292 = math.exp %291 : vector<8x32xf32>
    %cst_111 = arith.constant 1.000000e+00 : f32
    %293 = vector.broadcast %cst_111 : f32 to vector<8x32xf32>
    %294 = arith.addf %293, %292 : vector<8x32xf32>
    %295 = arith.divf %293, %294 : vector<8x32xf32>
    %296 = arith.mulf %287, %270 : vector<8x32xf32>
    %297 = arith.mulf %281, %289 : vector<8x32xf32>
    %298 = arith.addf %296, %297 : vector<8x32xf32>
    %299 = math.tanh %298 : vector<8x32xf32>
    %300 = arith.mulf %295, %299 : vector<8x32xf32>
    %301 = arith.index_cast %c5_i32 : i32 to index
    %c0_112 = arith.constant 0 : index
    %c0_113 = arith.constant 0 : index
    %302 = vector.load %arg2[%301, %c0_112, %c0_113] : memref<16x8x1xf32, #tpu.memory_space<vmem>>, vector<1x8x1xf32>
    %303 = vector.shape_cast %302 : vector<1x8x1xf32> to vector<8x1xf32>
    %cst_114 = arith.constant 0.000000e+00 : f32
    %304 = vector.broadcast %cst_114 : f32 to vector<8x1xf32>
    %305 = arith.cmpf ogt, %303, %304 : vector<8x1xf32>
    %306 = vector.shape_cast %305 : vector<8x1xi1> to vector<8x1xi1>
    %307 = vector.broadcast %306 : vector<8x1xi1> to vector<8x32xi1>
    %308 = arith.select %307, %300, %269 : vector<8x32xi1>, vector<8x32xf32>
    %c0_115 = arith.constant 0 : index
    %c0_116 = arith.constant 0 : index
    %309 = vector.load %arg5[%c0_115, %c0_116] : memref<8x32xf32, #tpu.memory_space<vmem>>, vector<8x32xf32>
    tpu.vector_store %arg5[%c0_115, %c0_116], %308 {strides = array<i32>} : memref<8x32xf32, #tpu.memory_space<vmem>>, vector<8x32xf32>,
    %310 = vector.shape_cast %305 : vector<8x1xi1> to vector<8x1xi1>
    %311 = vector.broadcast %310 : vector<8x1xi1> to vector<8x32xi1>
    %312 = arith.select %311, %298, %270 : vector<8x32xi1>, vector<8x32xf32>
    %c0_117 = arith.constant 0 : index
    %c0_118 = arith.constant 0 : index
    %313 = vector.load %arg6[%c0_117, %c0_118] : memref<8x32xf32, #tpu.memory_space<vmem>>, vector<8x32xf32>
    tpu.vector_store %arg6[%c0_117, %c0_118], %312 {strides = array<i32>} : memref<8x32xf32, #tpu.memory_space<vmem>>, vector<8x32xf32>,
    %cst_119 = arith.constant 0.000000e+00 : f32
    %314 = vector.shape_cast %305 : vector<8x1xi1> to vector<8x1xi1>
    %315 = vector.broadcast %314 : vector<8x1xi1> to vector<8x32xi1>
    %316 = vector.broadcast %cst_119 : f32 to vector<8x32xf32>
    %317 = arith.select %315, %300, %316 : vector<8x32xi1>, vector<8x32xf32>
    %318 = arith.index_cast %c5_i32 : i32 to index
    %c0_120 = arith.constant 0 : index
    %c0_121 = arith.constant 0 : index
    %319 = vector.load %arg4[%318, %c0_120, %c0_121] : memref<16x8x32xf32, #tpu.memory_space<vmem>>, vector<1x8x32xf32>
    %320 = vector.shape_cast %319 : vector<1x8x32xf32> to vector<8x32xf32>
    %321 = vector.shape_cast %317 : vector<8x32xf32> to vector<1x8x32xf32>
    tpu.vector_store %arg4[%318, %c0_120, %c0_121], %321 {strides = array<i32>} : memref<16x8x32xf32, #tpu.memory_space<vmem>>, vector<1x8x32xf32>,
    %c6_i32 = arith.constant 6 : i32
    %c0_122 = arith.constant 0 : index
    %c0_123 = arith.constant 0 : index
    %322 = vector.load %arg5[%c0_122, %c0_123] : memref<8x32xf32, #tpu.memory_space<vmem>>, vector<8x32xf32>
    %c0_124 = arith.constant 0 : index
    %c0_125 = arith.constant 0 : index
    %323 = vector.load %arg6[%c0_124, %c0_125] : memref<8x32xf32, #tpu.memory_space<vmem>>, vector<8x32xf32>
    %324 = arith.index_cast %c6_i32 : i32 to index
    %c0_126 = arith.constant 0 : index
    %c0_127 = arith.constant 0 : index
    %325 = vector.load %arg1[%324, %c0_126, %c0_127] : memref<16x8x128xf32, #tpu.memory_space<vmem>>, vector<1x8x128xf32>
    %326 = vector.shape_cast %325 : vector<1x8x128xf32> to vector<8x128xf32>
    %cst_128 = arith.constant dense<0.000000e+00> : vector<8x128xf32>
    %327 = tpu.matmul %322, %3, %cst_128 {dimension_numbers = #tpu.dot_dimension_numbers<[1], [0], [0], [1], [0, 0, 1, 1], [], []>} : vector<8x32xf32>, vector<32x128xf32>, vector<8x128xf32> -> vector<8x128xf32>
    %328 = arith.addf %326, %327 : vector<8x128xf32>
    %329 = vector.extract_strided_slice %328 {offsets = [0, 0], sizes = [8, 32], strides = [1, 1]} : vector<8x128xf32> to vector<8x32xf32>
    %330 = arith.negf %329 : vector<8x32xf32>
    %331 = math.exp %330 : vector<8x32xf32>
    %cst_129 = arith.constant 1.000000e+00 : f32
    %332 = vector.broadcast %cst_129 : f32 to vector<8x32xf32>
    %333 = arith.addf %332, %331 : vector<8x32xf32>
    %334 = arith.divf %332, %333 : vector<8x32xf32>
    %335 = vector.extract_strided_slice %328 {offsets = [0, 32], sizes = [8, 32], strides = [1, 1]} : vector<8x128xf32> to vector<8x32xf32>
    %336 = arith.negf %335 : vector<8x32xf32>
    %337 = math.exp %336 : vector<8x32xf32>
    %cst_130 = arith.constant 1.000000e+00 : f32
    %338 = vector.broadcast %cst_130 : f32 to vector<8x32xf32>
    %339 = arith.addf %338, %337 : vector<8x32xf32>
    %340 = arith.divf %338, %339 : vector<8x32xf32>
    %341 = vector.extract_strided_slice %328 {offsets = [0, 64], sizes = [8, 32], strides = [1, 1]} : vector<8x128xf32> to vector<8x32xf32>
    %342 = math.tanh %341 : vector<8x32xf32>
    %343 = vector.extract_strided_slice %328 {offsets = [0, 96], sizes = [8, 32], strides = [1, 1]} : vector<8x128xf32> to vector<8x32xf32>
    %344 = arith.negf %343 : vector<8x32xf32>
    %345 = math.exp %344 : vector<8x32xf32>
    %cst_131 = arith.constant 1.000000e+00 : f32
    %346 = vector.broadcast %cst_131 : f32 to vector<8x32xf32>
    %347 = arith.addf %346, %345 : vector<8x32xf32>
    %348 = arith.divf %346, %347 : vector<8x32xf32>
    %349 = arith.mulf %340, %323 : vector<8x32xf32>
    %350 = arith.mulf %334, %342 : vector<8x32xf32>
    %351 = arith.addf %349, %350 : vector<8x32xf32>
    %352 = math.tanh %351 : vector<8x32xf32>
    %353 = arith.mulf %348, %352 : vector<8x32xf32>
    %354 = arith.index_cast %c6_i32 : i32 to index
    %c0_132 = arith.constant 0 : index
    %c0_133 = arith.constant 0 : index
    %355 = vector.load %arg2[%354, %c0_132, %c0_133] : memref<16x8x1xf32, #tpu.memory_space<vmem>>, vector<1x8x1xf32>
    %356 = vector.shape_cast %355 : vector<1x8x1xf32> to vector<8x1xf32>
    %cst_134 = arith.constant 0.000000e+00 : f32
    %357 = vector.broadcast %cst_134 : f32 to vector<8x1xf32>
    %358 = arith.cmpf ogt, %356, %357 : vector<8x1xf32>
    %359 = vector.shape_cast %358 : vector<8x1xi1> to vector<8x1xi1>
    %360 = vector.broadcast %359 : vector<8x1xi1> to vector<8x32xi1>
    %361 = arith.select %360, %353, %322 : vector<8x32xi1>, vector<8x32xf32>
    %c0_135 = arith.constant 0 : index
    %c0_136 = arith.constant 0 : index
    %362 = vector.load %arg5[%c0_135, %c0_136] : memref<8x32xf32, #tpu.memory_space<vmem>>, vector<8x32xf32>
    tpu.vector_store %arg5[%c0_135, %c0_136], %361 {strides = array<i32>} : memref<8x32xf32, #tpu.memory_space<vmem>>, vector<8x32xf32>,
    %363 = vector.shape_cast %358 : vector<8x1xi1> to vector<8x1xi1>
    %364 = vector.broadcast %363 : vector<8x1xi1> to vector<8x32xi1>
    %365 = arith.select %364, %351, %323 : vector<8x32xi1>, vector<8x32xf32>
    %c0_137 = arith.constant 0 : index
    %c0_138 = arith.constant 0 : index
    %366 = vector.load %arg6[%c0_137, %c0_138] : memref<8x32xf32, #tpu.memory_space<vmem>>, vector<8x32xf32>
    tpu.vector_store %arg6[%c0_137, %c0_138], %365 {strides = array<i32>} : memref<8x32xf32, #tpu.memory_space<vmem>>, vector<8x32xf32>,
    %cst_139 = arith.constant 0.000000e+00 : f32
    %367 = vector.shape_cast %358 : vector<8x1xi1> to vector<8x1xi1>
    %368 = vector.broadcast %367 : vector<8x1xi1> to vector<8x32xi1>
    %369 = vector.broadcast %cst_139 : f32 to vector<8x32xf32>
    %370 = arith.select %368, %353, %369 : vector<8x32xi1>, vector<8x32xf32>
    %371 = arith.index_cast %c6_i32 : i32 to index
    %c0_140 = arith.constant 0 : index
    %c0_141 = arith.constant 0 : index
    %372 = vector.load %arg4[%371, %c0_140, %c0_141] : memref<16x8x32xf32, #tpu.memory_space<vmem>>, vector<1x8x32xf32>
    %373 = vector.shape_cast %372 : vector<1x8x32xf32> to vector<8x32xf32>
    %374 = vector.shape_cast %370 : vector<8x32xf32> to vector<1x8x32xf32>
    tpu.vector_store %arg4[%371, %c0_140, %c0_141], %374 {strides = array<i32>} : memref<16x8x32xf32, #tpu.memory_space<vmem>>, vector<1x8x32xf32>,
    %c7_i32 = arith.constant 7 : i32
    %c0_142 = arith.constant 0 : index
    %c0_143 = arith.constant 0 : index
    %375 = vector.load %arg5[%c0_142, %c0_143] : memref<8x32xf32, #tpu.memory_space<vmem>>, vector<8x32xf32>
    %c0_144 = arith.constant 0 : index
    %c0_145 = arith.constant 0 : index
    %376 = vector.load %arg6[%c0_144, %c0_145] : memref<8x32xf32, #tpu.memory_space<vmem>>, vector<8x32xf32>
    %377 = arith.index_cast %c7_i32 : i32 to index
    %c0_146 = arith.constant 0 : index
    %c0_147 = arith.constant 0 : index
    %378 = vector.load %arg1[%377, %c0_146, %c0_147] : memref<16x8x128xf32, #tpu.memory_space<vmem>>, vector<1x8x128xf32>
    %379 = vector.shape_cast %378 : vector<1x8x128xf32> to vector<8x128xf32>
    %cst_148 = arith.constant dense<0.000000e+00> : vector<8x128xf32>
    %380 = tpu.matmul %375, %3, %cst_148 {dimension_numbers = #tpu.dot_dimension_numbers<[1], [0], [0], [1], [0, 0, 1, 1], [], []>} : vector<8x32xf32>, vector<32x128xf32>, vector<8x128xf32> -> vector<8x128xf32>
    %381 = arith.addf %379, %380 : vector<8x128xf32>
    %382 = vector.extract_strided_slice %381 {offsets = [0, 0], sizes = [8, 32], strides = [1, 1]} : vector<8x128xf32> to vector<8x32xf32>
    %383 = arith.negf %382 : vector<8x32xf32>
    %384 = math.exp %383 : vector<8x32xf32>
    %cst_149 = arith.constant 1.000000e+00 : f32
    %385 = vector.broadcast %cst_149 : f32 to vector<8x32xf32>
    %386 = arith.addf %385, %384 : vector<8x32xf32>
    %387 = arith.divf %385, %386 : vector<8x32xf32>
    %388 = vector.extract_strided_slice %381 {offsets = [0, 32], sizes = [8, 32], strides = [1, 1]} : vector<8x128xf32> to vector<8x32xf32>
    %389 = arith.negf %388 : vector<8x32xf32>
    %390 = math.exp %389 : vector<8x32xf32>
    %cst_150 = arith.constant 1.000000e+00 : f32
    %391 = vector.broadcast %cst_150 : f32 to vector<8x32xf32>
    %392 = arith.addf %391, %390 : vector<8x32xf32>
    %393 = arith.divf %391, %392 : vector<8x32xf32>
    %394 = vector.extract_strided_slice %381 {offsets = [0, 64], sizes = [8, 32], strides = [1, 1]} : vector<8x128xf32> to vector<8x32xf32>
    %395 = math.tanh %394 : vector<8x32xf32>
    %396 = vector.extract_strided_slice %381 {offsets = [0, 96], sizes = [8, 32], strides = [1, 1]} : vector<8x128xf32> to vector<8x32xf32>
    %397 = arith.negf %396 : vector<8x32xf32>
    %398 = math.exp %397 : vector<8x32xf32>
    %cst_151 = arith.constant 1.000000e+00 : f32
    %399 = vector.broadcast %cst_151 : f32 to vector<8x32xf32>
    %400 = arith.addf %399, %398 : vector<8x32xf32>
    %401 = arith.divf %399, %400 : vector<8x32xf32>
    %402 = arith.mulf %393, %376 : vector<8x32xf32>
    %403 = arith.mulf %387, %395 : vector<8x32xf32>
    %404 = arith.addf %402, %403 : vector<8x32xf32>
    %405 = math.tanh %404 : vector<8x32xf32>
    %406 = arith.mulf %401, %405 : vector<8x32xf32>
    %407 = arith.index_cast %c7_i32 : i32 to index
    %c0_152 = arith.constant 0 : index
    %c0_153 = arith.constant 0 : index
    %408 = vector.load %arg2[%407, %c0_152, %c0_153] : memref<16x8x1xf32, #tpu.memory_space<vmem>>, vector<1x8x1xf32>
    %409 = vector.shape_cast %408 : vector<1x8x1xf32> to vector<8x1xf32>
    %cst_154 = arith.constant 0.000000e+00 : f32
    %410 = vector.broadcast %cst_154 : f32 to vector<8x1xf32>
    %411 = arith.cmpf ogt, %409, %410 : vector<8x1xf32>
    %412 = vector.shape_cast %411 : vector<8x1xi1> to vector<8x1xi1>
    %413 = vector.broadcast %412 : vector<8x1xi1> to vector<8x32xi1>
    %414 = arith.select %413, %406, %375 : vector<8x32xi1>, vector<8x32xf32>
    %c0_155 = arith.constant 0 : index
    %c0_156 = arith.constant 0 : index
    %415 = vector.load %arg5[%c0_155, %c0_156] : memref<8x32xf32, #tpu.memory_space<vmem>>, vector<8x32xf32>
    tpu.vector_store %arg5[%c0_155, %c0_156], %414 {strides = array<i32>} : memref<8x32xf32, #tpu.memory_space<vmem>>, vector<8x32xf32>,
    %416 = vector.shape_cast %411 : vector<8x1xi1> to vector<8x1xi1>
    %417 = vector.broadcast %416 : vector<8x1xi1> to vector<8x32xi1>
    %418 = arith.select %417, %404, %376 : vector<8x32xi1>, vector<8x32xf32>
    %c0_157 = arith.constant 0 : index
    %c0_158 = arith.constant 0 : index
    %419 = vector.load %arg6[%c0_157, %c0_158] : memref<8x32xf32, #tpu.memory_space<vmem>>, vector<8x32xf32>
    tpu.vector_store %arg6[%c0_157, %c0_158], %418 {strides = array<i32>} : memref<8x32xf32, #tpu.memory_space<vmem>>, vector<8x32xf32>,
    %cst_159 = arith.constant 0.000000e+00 : f32
    %420 = vector.shape_cast %411 : vector<8x1xi1> to vector<8x1xi1>
    %421 = vector.broadcast %420 : vector<8x1xi1> to vector<8x32xi1>
    %422 = vector.broadcast %cst_159 : f32 to vector<8x32xf32>
    %423 = arith.select %421, %406, %422 : vector<8x32xi1>, vector<8x32xf32>
    %424 = arith.index_cast %c7_i32 : i32 to index
    %c0_160 = arith.constant 0 : index
    %c0_161 = arith.constant 0 : index
    %425 = vector.load %arg4[%424, %c0_160, %c0_161] : memref<16x8x32xf32, #tpu.memory_space<vmem>>, vector<1x8x32xf32>
    %426 = vector.shape_cast %425 : vector<1x8x32xf32> to vector<8x32xf32>
    %427 = vector.shape_cast %423 : vector<8x32xf32> to vector<1x8x32xf32>
    tpu.vector_store %arg4[%424, %c0_160, %c0_161], %427 {strides = array<i32>} : memref<16x8x32xf32, #tpu.memory_space<vmem>>, vector<1x8x32xf32>,
    %c8_i32 = arith.constant 8 : i32
    %c0_162 = arith.constant 0 : index
    %c0_163 = arith.constant 0 : index
    %428 = vector.load %arg5[%c0_162, %c0_163] : memref<8x32xf32, #tpu.memory_space<vmem>>, vector<8x32xf32>
    %c0_164 = arith.constant 0 : index
    %c0_165 = arith.constant 0 : index
    %429 = vector.load %arg6[%c0_164, %c0_165] : memref<8x32xf32, #tpu.memory_space<vmem>>, vector<8x32xf32>
    %430 = arith.index_cast %c8_i32 : i32 to index
    %c0_166 = arith.constant 0 : index
    %c0_167 = arith.constant 0 : index
    %431 = vector.load %arg1[%430, %c0_166, %c0_167] : memref<16x8x128xf32, #tpu.memory_space<vmem>>, vector<1x8x128xf32>
    %432 = vector.shape_cast %431 : vector<1x8x128xf32> to vector<8x128xf32>
    %cst_168 = arith.constant dense<0.000000e+00> : vector<8x128xf32>
    %433 = tpu.matmul %428, %3, %cst_168 {dimension_numbers = #tpu.dot_dimension_numbers<[1], [0], [0], [1], [0, 0, 1, 1], [], []>} : vector<8x32xf32>, vector<32x128xf32>, vector<8x128xf32> -> vector<8x128xf32>
    %434 = arith.addf %432, %433 : vector<8x128xf32>
    %435 = vector.extract_strided_slice %434 {offsets = [0, 0], sizes = [8, 32], strides = [1, 1]} : vector<8x128xf32> to vector<8x32xf32>
    %436 = arith.negf %435 : vector<8x32xf32>
    %437 = math.exp %436 : vector<8x32xf32>
    %cst_169 = arith.constant 1.000000e+00 : f32
    %438 = vector.broadcast %cst_169 : f32 to vector<8x32xf32>
    %439 = arith.addf %438, %437 : vector<8x32xf32>
    %440 = arith.divf %438, %439 : vector<8x32xf32>
    %441 = vector.extract_strided_slice %434 {offsets = [0, 32], sizes = [8, 32], strides = [1, 1]} : vector<8x128xf32> to vector<8x32xf32>
    %442 = arith.negf %441 : vector<8x32xf32>
    %443 = math.exp %442 : vector<8x32xf32>
    %cst_170 = arith.constant 1.000000e+00 : f32
    %444 = vector.broadcast %cst_170 : f32 to vector<8x32xf32>
    %445 = arith.addf %444, %443 : vector<8x32xf32>
    %446 = arith.divf %444, %445 : vector<8x32xf32>
    %447 = vector.extract_strided_slice %434 {offsets = [0, 64], sizes = [8, 32], strides = [1, 1]} : vector<8x128xf32> to vector<8x32xf32>
    %448 = math.tanh %447 : vector<8x32xf32>
    %449 = vector.extract_strided_slice %434 {offsets = [0, 96], sizes = [8, 32], strides = [1, 1]} : vector<8x128xf32> to vector<8x32xf32>
    %450 = arith.negf %449 : vector<8x32xf32>
    %451 = math.exp %450 : vector<8x32xf32>
    %cst_171 = arith.constant 1.000000e+00 : f32
    %452 = vector.broadcast %cst_171 : f32 to vector<8x32xf32>
    %453 = arith.addf %452, %451 : vector<8x32xf32>
    %454 = arith.divf %452, %453 : vector<8x32xf32>
    %455 = arith.mulf %446, %429 : vector<8x32xf32>
    %456 = arith.mulf %440, %448 : vector<8x32xf32>
    %457 = arith.addf %455, %456 : vector<8x32xf32>
    %458 = math.tanh %457 : vector<8x32xf32>
    %459 = arith.mulf %454, %458 : vector<8x32xf32>
    %460 = arith.index_cast %c8_i32 : i32 to index
    %c0_172 = arith.constant 0 : index
    %c0_173 = arith.constant 0 : index
    %461 = vector.load %arg2[%460, %c0_172, %c0_173] : memref<16x8x1xf32, #tpu.memory_space<vmem>>, vector<1x8x1xf32>
    %462 = vector.shape_cast %461 : vector<1x8x1xf32> to vector<8x1xf32>
    %cst_174 = arith.constant 0.000000e+00 : f32
    %463 = vector.broadcast %cst_174 : f32 to vector<8x1xf32>
    %464 = arith.cmpf ogt, %462, %463 : vector<8x1xf32>
    %465 = vector.shape_cast %464 : vector<8x1xi1> to vector<8x1xi1>
    %466 = vector.broadcast %465 : vector<8x1xi1> to vector<8x32xi1>
    %467 = arith.select %466, %459, %428 : vector<8x32xi1>, vector<8x32xf32>
    %c0_175 = arith.constant 0 : index
    %c0_176 = arith.constant 0 : index
    %468 = vector.load %arg5[%c0_175, %c0_176] : memref<8x32xf32, #tpu.memory_space<vmem>>, vector<8x32xf32>
    tpu.vector_store %arg5[%c0_175, %c0_176], %467 {strides = array<i32>} : memref<8x32xf32, #tpu.memory_space<vmem>>, vector<8x32xf32>,
    %469 = vector.shape_cast %464 : vector<8x1xi1> to vector<8x1xi1>
    %470 = vector.broadcast %469 : vector<8x1xi1> to vector<8x32xi1>
    %471 = arith.select %470, %457, %429 : vector<8x32xi1>, vector<8x32xf32>
    %c0_177 = arith.constant 0 : index
    %c0_178 = arith.constant 0 : index
    %472 = vector.load %arg6[%c0_177, %c0_178] : memref<8x32xf32, #tpu.memory_space<vmem>>, vector<8x32xf32>
    tpu.vector_store %arg6[%c0_177, %c0_178], %471 {strides = array<i32>} : memref<8x32xf32, #tpu.memory_space<vmem>>, vector<8x32xf32>,
    %cst_179 = arith.constant 0.000000e+00 : f32
    %473 = vector.shape_cast %464 : vector<8x1xi1> to vector<8x1xi1>
    %474 = vector.broadcast %473 : vector<8x1xi1> to vector<8x32xi1>
    %475 = vector.broadcast %cst_179 : f32 to vector<8x32xf32>
    %476 = arith.select %474, %459, %475 : vector<8x32xi1>, vector<8x32xf32>
    %477 = arith.index_cast %c8_i32 : i32 to index
    %c0_180 = arith.constant 0 : index
    %c0_181 = arith.constant 0 : index
    %478 = vector.load %arg4[%477, %c0_180, %c0_181] : memref<16x8x32xf32, #tpu.memory_space<vmem>>, vector<1x8x32xf32>
    %479 = vector.shape_cast %478 : vector<1x8x32xf32> to vector<8x32xf32>
    %480 = vector.shape_cast %476 : vector<8x32xf32> to vector<1x8x32xf32>
    tpu.vector_store %arg4[%477, %c0_180, %c0_181], %480 {strides = array<i32>} : memref<16x8x32xf32, #tpu.memory_space<vmem>>, vector<1x8x32xf32>,
    %c9_i32 = arith.constant 9 : i32
    %c0_182 = arith.constant 0 : index
    %c0_183 = arith.constant 0 : index
    %481 = vector.load %arg5[%c0_182, %c0_183] : memref<8x32xf32, #tpu.memory_space<vmem>>, vector<8x32xf32>
    %c0_184 = arith.constant 0 : index
    %c0_185 = arith.constant 0 : index
    %482 = vector.load %arg6[%c0_184, %c0_185] : memref<8x32xf32, #tpu.memory_space<vmem>>, vector<8x32xf32>
    %483 = arith.index_cast %c9_i32 : i32 to index
    %c0_186 = arith.constant 0 : index
    %c0_187 = arith.constant 0 : index
    %484 = vector.load %arg1[%483, %c0_186, %c0_187] : memref<16x8x128xf32, #tpu.memory_space<vmem>>, vector<1x8x128xf32>
    %485 = vector.shape_cast %484 : vector<1x8x128xf32> to vector<8x128xf32>
    %cst_188 = arith.constant dense<0.000000e+00> : vector<8x128xf32>
    %486 = tpu.matmul %481, %3, %cst_188 {dimension_numbers = #tpu.dot_dimension_numbers<[1], [0], [0], [1], [0, 0, 1, 1], [], []>} : vector<8x32xf32>, vector<32x128xf32>, vector<8x128xf32> -> vector<8x128xf32>
    %487 = arith.addf %485, %486 : vector<8x128xf32>
    %488 = vector.extract_strided_slice %487 {offsets = [0, 0], sizes = [8, 32], strides = [1, 1]} : vector<8x128xf32> to vector<8x32xf32>
    %489 = arith.negf %488 : vector<8x32xf32>
    %490 = math.exp %489 : vector<8x32xf32>
    %cst_189 = arith.constant 1.000000e+00 : f32
    %491 = vector.broadcast %cst_189 : f32 to vector<8x32xf32>
    %492 = arith.addf %491, %490 : vector<8x32xf32>
    %493 = arith.divf %491, %492 : vector<8x32xf32>
    %494 = vector.extract_strided_slice %487 {offsets = [0, 32], sizes = [8, 32], strides = [1, 1]} : vector<8x128xf32> to vector<8x32xf32>
    %495 = arith.negf %494 : vector<8x32xf32>
    %496 = math.exp %495 : vector<8x32xf32>
    %cst_190 = arith.constant 1.000000e+00 : f32
    %497 = vector.broadcast %cst_190 : f32 to vector<8x32xf32>
    %498 = arith.addf %497, %496 : vector<8x32xf32>
    %499 = arith.divf %497, %498 : vector<8x32xf32>
    %500 = vector.extract_strided_slice %487 {offsets = [0, 64], sizes = [8, 32], strides = [1, 1]} : vector<8x128xf32> to vector<8x32xf32>
    %501 = math.tanh %500 : vector<8x32xf32>
    %502 = vector.extract_strided_slice %487 {offsets = [0, 96], sizes = [8, 32], strides = [1, 1]} : vector<8x128xf32> to vector<8x32xf32>
    %503 = arith.negf %502 : vector<8x32xf32>
    %504 = math.exp %503 : vector<8x32xf32>
    %cst_191 = arith.constant 1.000000e+00 : f32
    %505 = vector.broadcast %cst_191 : f32 to vector<8x32xf32>
    %506 = arith.addf %505, %504 : vector<8x32xf32>
    %507 = arith.divf %505, %506 : vector<8x32xf32>
    %508 = arith.mulf %499, %482 : vector<8x32xf32>
    %509 = arith.mulf %493, %501 : vector<8x32xf32>
    %510 = arith.addf %508, %509 : vector<8x32xf32>
    %511 = math.tanh %510 : vector<8x32xf32>
    %512 = arith.mulf %507, %511 : vector<8x32xf32>
    %513 = arith.index_cast %c9_i32 : i32 to index
    %c0_192 = arith.constant 0 : index
    %c0_193 = arith.constant 0 : index
    %514 = vector.load %arg2[%513, %c0_192, %c0_193] : memref<16x8x1xf32, #tpu.memory_space<vmem>>, vector<1x8x1xf32>
    %515 = vector.shape_cast %514 : vector<1x8x1xf32> to vector<8x1xf32>
    %cst_194 = arith.constant 0.000000e+00 : f32
    %516 = vector.broadcast %cst_194 : f32 to vector<8x1xf32>
    %517 = arith.cmpf ogt, %515, %516 : vector<8x1xf32>
    %518 = vector.shape_cast %517 : vector<8x1xi1> to vector<8x1xi1>
    %519 = vector.broadcast %518 : vector<8x1xi1> to vector<8x32xi1>
    %520 = arith.select %519, %512, %481 : vector<8x32xi1>, vector<8x32xf32>
    %c0_195 = arith.constant 0 : index
    %c0_196 = arith.constant 0 : index
    %521 = vector.load %arg5[%c0_195, %c0_196] : memref<8x32xf32, #tpu.memory_space<vmem>>, vector<8x32xf32>
    tpu.vector_store %arg5[%c0_195, %c0_196], %520 {strides = array<i32>} : memref<8x32xf32, #tpu.memory_space<vmem>>, vector<8x32xf32>,
    %522 = vector.shape_cast %517 : vector<8x1xi1> to vector<8x1xi1>
    %523 = vector.broadcast %522 : vector<8x1xi1> to vector<8x32xi1>
    %524 = arith.select %523, %510, %482 : vector<8x32xi1>, vector<8x32xf32>
    %c0_197 = arith.constant 0 : index
    %c0_198 = arith.constant 0 : index
    %525 = vector.load %arg6[%c0_197, %c0_198] : memref<8x32xf32, #tpu.memory_space<vmem>>, vector<8x32xf32>
    tpu.vector_store %arg6[%c0_197, %c0_198], %524 {strides = array<i32>} : memref<8x32xf32, #tpu.memory_space<vmem>>, vector<8x32xf32>,
    %cst_199 = arith.constant 0.000000e+00 : f32
    %526 = vector.shape_cast %517 : vector<8x1xi1> to vector<8x1xi1>
    %527 = vector.broadcast %526 : vector<8x1xi1> to vector<8x32xi1>
    %528 = vector.broadcast %cst_199 : f32 to vector<8x32xf32>
    %529 = arith.select %527, %512, %528 : vector<8x32xi1>, vector<8x32xf32>
    %530 = arith.index_cast %c9_i32 : i32 to index
    %c0_200 = arith.constant 0 : index
    %c0_201 = arith.constant 0 : index
    %531 = vector.load %arg4[%530, %c0_200, %c0_201] : memref<16x8x32xf32, #tpu.memory_space<vmem>>, vector<1x8x32xf32>
    %532 = vector.shape_cast %531 : vector<1x8x32xf32> to vector<8x32xf32>
    %533 = vector.shape_cast %529 : vector<8x32xf32> to vector<1x8x32xf32>
    tpu.vector_store %arg4[%530, %c0_200, %c0_201], %533 {strides = array<i32>} : memref<16x8x32xf32, #tpu.memory_space<vmem>>, vector<1x8x32xf32>,
    %c10_i32 = arith.constant 10 : i32
    %c0_202 = arith.constant 0 : index
    %c0_203 = arith.constant 0 : index
    %534 = vector.load %arg5[%c0_202, %c0_203] : memref<8x32xf32, #tpu.memory_space<vmem>>, vector<8x32xf32>
    %c0_204 = arith.constant 0 : index
    %c0_205 = arith.constant 0 : index
    %535 = vector.load %arg6[%c0_204, %c0_205] : memref<8x32xf32, #tpu.memory_space<vmem>>, vector<8x32xf32>
    %536 = arith.index_cast %c10_i32 : i32 to index
    %c0_206 = arith.constant 0 : index
    %c0_207 = arith.constant 0 : index
    %537 = vector.load %arg1[%536, %c0_206, %c0_207] : memref<16x8x128xf32, #tpu.memory_space<vmem>>, vector<1x8x128xf32>
    %538 = vector.shape_cast %537 : vector<1x8x128xf32> to vector<8x128xf32>
    %cst_208 = arith.constant dense<0.000000e+00> : vector<8x128xf32>
    %539 = tpu.matmul %534, %3, %cst_208 {dimension_numbers = #tpu.dot_dimension_numbers<[1], [0], [0], [1], [0, 0, 1, 1], [], []>} : vector<8x32xf32>, vector<32x128xf32>, vector<8x128xf32> -> vector<8x128xf32>
    %540 = arith.addf %538, %539 : vector<8x128xf32>
    %541 = vector.extract_strided_slice %540 {offsets = [0, 0], sizes = [8, 32], strides = [1, 1]} : vector<8x128xf32> to vector<8x32xf32>
    %542 = arith.negf %541 : vector<8x32xf32>
    %543 = math.exp %542 : vector<8x32xf32>
    %cst_209 = arith.constant 1.000000e+00 : f32
    %544 = vector.broadcast %cst_209 : f32 to vector<8x32xf32>
    %545 = arith.addf %544, %543 : vector<8x32xf32>
    %546 = arith.divf %544, %545 : vector<8x32xf32>
    %547 = vector.extract_strided_slice %540 {offsets = [0, 32], sizes = [8, 32], strides = [1, 1]} : vector<8x128xf32> to vector<8x32xf32>
    %548 = arith.negf %547 : vector<8x32xf32>
    %549 = math.exp %548 : vector<8x32xf32>
    %cst_210 = arith.constant 1.000000e+00 : f32
    %550 = vector.broadcast %cst_210 : f32 to vector<8x32xf32>
    %551 = arith.addf %550, %549 : vector<8x32xf32>
    %552 = arith.divf %550, %551 : vector<8x32xf32>
    %553 = vector.extract_strided_slice %540 {offsets = [0, 64], sizes = [8, 32], strides = [1, 1]} : vector<8x128xf32> to vector<8x32xf32>
    %554 = math.tanh %553 : vector<8x32xf32>
    %555 = vector.extract_strided_slice %540 {offsets = [0, 96], sizes = [8, 32], strides = [1, 1]} : vector<8x128xf32> to vector<8x32xf32>
    %556 = arith.negf %555 : vector<8x32xf32>
    %557 = math.exp %556 : vector<8x32xf32>
    %cst_211 = arith.constant 1.000000e+00 : f32
    %558 = vector.broadcast %cst_211 : f32 to vector<8x32xf32>
    %559 = arith.addf %558, %557 : vector<8x32xf32>
    %560 = arith.divf %558, %559 : vector<8x32xf32>
    %561 = arith.mulf %552, %535 : vector<8x32xf32>
    %562 = arith.mulf %546, %554 : vector<8x32xf32>
    %563 = arith.addf %561, %562 : vector<8x32xf32>
    %564 = math.tanh %563 : vector<8x32xf32>
    %565 = arith.mulf %560, %564 : vector<8x32xf32>
    %566 = arith.index_cast %c10_i32 : i32 to index
    %c0_212 = arith.constant 0 : index
    %c0_213 = arith.constant 0 : index
    %567 = vector.load %arg2[%566, %c0_212, %c0_213] : memref<16x8x1xf32, #tpu.memory_space<vmem>>, vector<1x8x1xf32>
    %568 = vector.shape_cast %567 : vector<1x8x1xf32> to vector<8x1xf32>
    %cst_214 = arith.constant 0.000000e+00 : f32
    %569 = vector.broadcast %cst_214 : f32 to vector<8x1xf32>
    %570 = arith.cmpf ogt, %568, %569 : vector<8x1xf32>
    %571 = vector.shape_cast %570 : vector<8x1xi1> to vector<8x1xi1>
    %572 = vector.broadcast %571 : vector<8x1xi1> to vector<8x32xi1>
    %573 = arith.select %572, %565, %534 : vector<8x32xi1>, vector<8x32xf32>
    %c0_215 = arith.constant 0 : index
    %c0_216 = arith.constant 0 : index
    %574 = vector.load %arg5[%c0_215, %c0_216] : memref<8x32xf32, #tpu.memory_space<vmem>>, vector<8x32xf32>
    tpu.vector_store %arg5[%c0_215, %c0_216], %573 {strides = array<i32>} : memref<8x32xf32, #tpu.memory_space<vmem>>, vector<8x32xf32>,
    %575 = vector.shape_cast %570 : vector<8x1xi1> to vector<8x1xi1>
    %576 = vector.broadcast %575 : vector<8x1xi1> to vector<8x32xi1>
    %577 = arith.select %576, %563, %535 : vector<8x32xi1>, vector<8x32xf32>
    %c0_217 = arith.constant 0 : index
    %c0_218 = arith.constant 0 : index
    %578 = vector.load %arg6[%c0_217, %c0_218] : memref<8x32xf32, #tpu.memory_space<vmem>>, vector<8x32xf32>
    tpu.vector_store %arg6[%c0_217, %c0_218], %577 {strides = array<i32>} : memref<8x32xf32, #tpu.memory_space<vmem>>, vector<8x32xf32>,
    %cst_219 = arith.constant 0.000000e+00 : f32
    %579 = vector.shape_cast %570 : vector<8x1xi1> to vector<8x1xi1>
    %580 = vector.broadcast %579 : vector<8x1xi1> to vector<8x32xi1>
    %581 = vector.broadcast %cst_219 : f32 to vector<8x32xf32>
    %582 = arith.select %580, %565, %581 : vector<8x32xi1>, vector<8x32xf32>
    %583 = arith.index_cast %c10_i32 : i32 to index
    %c0_220 = arith.constant 0 : index
    %c0_221 = arith.constant 0 : index
    %584 = vector.load %arg4[%583, %c0_220, %c0_221] : memref<16x8x32xf32, #tpu.memory_space<vmem>>, vector<1x8x32xf32>
    %585 = vector.shape_cast %584 : vector<1x8x32xf32> to vector<8x32xf32>
    %586 = vector.shape_cast %582 : vector<8x32xf32> to vector<1x8x32xf32>
    tpu.vector_store %arg4[%583, %c0_220, %c0_221], %586 {strides = array<i32>} : memref<16x8x32xf32, #tpu.memory_space<vmem>>, vector<1x8x32xf32>,
    %c11_i32 = arith.constant 11 : i32
    %c0_222 = arith.constant 0 : index
    %c0_223 = arith.constant 0 : index
    %587 = vector.load %arg5[%c0_222, %c0_223] : memref<8x32xf32, #tpu.memory_space<vmem>>, vector<8x32xf32>
    %c0_224 = arith.constant 0 : index
    %c0_225 = arith.constant 0 : index
    %588 = vector.load %arg6[%c0_224, %c0_225] : memref<8x32xf32, #tpu.memory_space<vmem>>, vector<8x32xf32>
    %589 = arith.index_cast %c11_i32 : i32 to index
    %c0_226 = arith.constant 0 : index
    %c0_227 = arith.constant 0 : index
    %590 = vector.load %arg1[%589, %c0_226, %c0_227] : memref<16x8x128xf32, #tpu.memory_space<vmem>>, vector<1x8x128xf32>
    %591 = vector.shape_cast %590 : vector<1x8x128xf32> to vector<8x128xf32>
    %cst_228 = arith.constant dense<0.000000e+00> : vector<8x128xf32>
    %592 = tpu.matmul %587, %3, %cst_228 {dimension_numbers = #tpu.dot_dimension_numbers<[1], [0], [0], [1], [0, 0, 1, 1], [], []>} : vector<8x32xf32>, vector<32x128xf32>, vector<8x128xf32> -> vector<8x128xf32>
    %593 = arith.addf %591, %592 : vector<8x128xf32>
    %594 = vector.extract_strided_slice %593 {offsets = [0, 0], sizes = [8, 32], strides = [1, 1]} : vector<8x128xf32> to vector<8x32xf32>
    %595 = arith.negf %594 : vector<8x32xf32>
    %596 = math.exp %595 : vector<8x32xf32>
    %cst_229 = arith.constant 1.000000e+00 : f32
    %597 = vector.broadcast %cst_229 : f32 to vector<8x32xf32>
    %598 = arith.addf %597, %596 : vector<8x32xf32>
    %599 = arith.divf %597, %598 : vector<8x32xf32>
    %600 = vector.extract_strided_slice %593 {offsets = [0, 32], sizes = [8, 32], strides = [1, 1]} : vector<8x128xf32> to vector<8x32xf32>
    %601 = arith.negf %600 : vector<8x32xf32>
    %602 = math.exp %601 : vector<8x32xf32>
    %cst_230 = arith.constant 1.000000e+00 : f32
    %603 = vector.broadcast %cst_230 : f32 to vector<8x32xf32>
    %604 = arith.addf %603, %602 : vector<8x32xf32>
    %605 = arith.divf %603, %604 : vector<8x32xf32>
    %606 = vector.extract_strided_slice %593 {offsets = [0, 64], sizes = [8, 32], strides = [1, 1]} : vector<8x128xf32> to vector<8x32xf32>
    %607 = math.tanh %606 : vector<8x32xf32>
    %608 = vector.extract_strided_slice %593 {offsets = [0, 96], sizes = [8, 32], strides = [1, 1]} : vector<8x128xf32> to vector<8x32xf32>
    %609 = arith.negf %608 : vector<8x32xf32>
    %610 = math.exp %609 : vector<8x32xf32>
    %cst_231 = arith.constant 1.000000e+00 : f32
    %611 = vector.broadcast %cst_231 : f32 to vector<8x32xf32>
    %612 = arith.addf %611, %610 : vector<8x32xf32>
    %613 = arith.divf %611, %612 : vector<8x32xf32>
    %614 = arith.mulf %605, %588 : vector<8x32xf32>
    %615 = arith.mulf %599, %607 : vector<8x32xf32>
    %616 = arith.addf %614, %615 : vector<8x32xf32>
    %617 = math.tanh %616 : vector<8x32xf32>
    %618 = arith.mulf %613, %617 : vector<8x32xf32>
    %619 = arith.index_cast %c11_i32 : i32 to index
    %c0_232 = arith.constant 0 : index
    %c0_233 = arith.constant 0 : index
    %620 = vector.load %arg2[%619, %c0_232, %c0_233] : memref<16x8x1xf32, #tpu.memory_space<vmem>>, vector<1x8x1xf32>
    %621 = vector.shape_cast %620 : vector<1x8x1xf32> to vector<8x1xf32>
    %cst_234 = arith.constant 0.000000e+00 : f32
    %622 = vector.broadcast %cst_234 : f32 to vector<8x1xf32>
    %623 = arith.cmpf ogt, %621, %622 : vector<8x1xf32>
    %624 = vector.shape_cast %623 : vector<8x1xi1> to vector<8x1xi1>
    %625 = vector.broadcast %624 : vector<8x1xi1> to vector<8x32xi1>
    %626 = arith.select %625, %618, %587 : vector<8x32xi1>, vector<8x32xf32>
    %c0_235 = arith.constant 0 : index
    %c0_236 = arith.constant 0 : index
    %627 = vector.load %arg5[%c0_235, %c0_236] : memref<8x32xf32, #tpu.memory_space<vmem>>, vector<8x32xf32>
    tpu.vector_store %arg5[%c0_235, %c0_236], %626 {strides = array<i32>} : memref<8x32xf32, #tpu.memory_space<vmem>>, vector<8x32xf32>,
    %628 = vector.shape_cast %623 : vector<8x1xi1> to vector<8x1xi1>
    %629 = vector.broadcast %628 : vector<8x1xi1> to vector<8x32xi1>
    %630 = arith.select %629, %616, %588 : vector<8x32xi1>, vector<8x32xf32>
    %c0_237 = arith.constant 0 : index
    %c0_238 = arith.constant 0 : index
    %631 = vector.load %arg6[%c0_237, %c0_238] : memref<8x32xf32, #tpu.memory_space<vmem>>, vector<8x32xf32>
    tpu.vector_store %arg6[%c0_237, %c0_238], %630 {strides = array<i32>} : memref<8x32xf32, #tpu.memory_space<vmem>>, vector<8x32xf32>,
    %cst_239 = arith.constant 0.000000e+00 : f32
    %632 = vector.shape_cast %623 : vector<8x1xi1> to vector<8x1xi1>
    %633 = vector.broadcast %632 : vector<8x1xi1> to vector<8x32xi1>
    %634 = vector.broadcast %cst_239 : f32 to vector<8x32xf32>
    %635 = arith.select %633, %618, %634 : vector<8x32xi1>, vector<8x32xf32>
    %636 = arith.index_cast %c11_i32 : i32 to index
    %c0_240 = arith.constant 0 : index
    %c0_241 = arith.constant 0 : index
    %637 = vector.load %arg4[%636, %c0_240, %c0_241] : memref<16x8x32xf32, #tpu.memory_space<vmem>>, vector<1x8x32xf32>
    %638 = vector.shape_cast %637 : vector<1x8x32xf32> to vector<8x32xf32>
    %639 = vector.shape_cast %635 : vector<8x32xf32> to vector<1x8x32xf32>
    tpu.vector_store %arg4[%636, %c0_240, %c0_241], %639 {strides = array<i32>} : memref<16x8x32xf32, #tpu.memory_space<vmem>>, vector<1x8x32xf32>,
    %c12_i32 = arith.constant 12 : i32
    %c0_242 = arith.constant 0 : index
    %c0_243 = arith.constant 0 : index
    %640 = vector.load %arg5[%c0_242, %c0_243] : memref<8x32xf32, #tpu.memory_space<vmem>>, vector<8x32xf32>
    %c0_244 = arith.constant 0 : index
    %c0_245 = arith.constant 0 : index
    %641 = vector.load %arg6[%c0_244, %c0_245] : memref<8x32xf32, #tpu.memory_space<vmem>>, vector<8x32xf32>
    %642 = arith.index_cast %c12_i32 : i32 to index
    %c0_246 = arith.constant 0 : index
    %c0_247 = arith.constant 0 : index
    %643 = vector.load %arg1[%642, %c0_246, %c0_247] : memref<16x8x128xf32, #tpu.memory_space<vmem>>, vector<1x8x128xf32>
    %644 = vector.shape_cast %643 : vector<1x8x128xf32> to vector<8x128xf32>
    %cst_248 = arith.constant dense<0.000000e+00> : vector<8x128xf32>
    %645 = tpu.matmul %640, %3, %cst_248 {dimension_numbers = #tpu.dot_dimension_numbers<[1], [0], [0], [1], [0, 0, 1, 1], [], []>} : vector<8x32xf32>, vector<32x128xf32>, vector<8x128xf32> -> vector<8x128xf32>
    %646 = arith.addf %644, %645 : vector<8x128xf32>
    %647 = vector.extract_strided_slice %646 {offsets = [0, 0], sizes = [8, 32], strides = [1, 1]} : vector<8x128xf32> to vector<8x32xf32>
    %648 = arith.negf %647 : vector<8x32xf32>
    %649 = math.exp %648 : vector<8x32xf32>
    %cst_249 = arith.constant 1.000000e+00 : f32
    %650 = vector.broadcast %cst_249 : f32 to vector<8x32xf32>
    %651 = arith.addf %650, %649 : vector<8x32xf32>
    %652 = arith.divf %650, %651 : vector<8x32xf32>
    %653 = vector.extract_strided_slice %646 {offsets = [0, 32], sizes = [8, 32], strides = [1, 1]} : vector<8x128xf32> to vector<8x32xf32>
    %654 = arith.negf %653 : vector<8x32xf32>
    %655 = math.exp %654 : vector<8x32xf32>
    %cst_250 = arith.constant 1.000000e+00 : f32
    %656 = vector.broadcast %cst_250 : f32 to vector<8x32xf32>
    %657 = arith.addf %656, %655 : vector<8x32xf32>
    %658 = arith.divf %656, %657 : vector<8x32xf32>
    %659 = vector.extract_strided_slice %646 {offsets = [0, 64], sizes = [8, 32], strides = [1, 1]} : vector<8x128xf32> to vector<8x32xf32>
    %660 = math.tanh %659 : vector<8x32xf32>
    %661 = vector.extract_strided_slice %646 {offsets = [0, 96], sizes = [8, 32], strides = [1, 1]} : vector<8x128xf32> to vector<8x32xf32>
    %662 = arith.negf %661 : vector<8x32xf32>
    %663 = math.exp %662 : vector<8x32xf32>
    %cst_251 = arith.constant 1.000000e+00 : f32
    %664 = vector.broadcast %cst_251 : f32 to vector<8x32xf32>
    %665 = arith.addf %664, %663 : vector<8x32xf32>
    %666 = arith.divf %664, %665 : vector<8x32xf32>
    %667 = arith.mulf %658, %641 : vector<8x32xf32>
    %668 = arith.mulf %652, %660 : vector<8x32xf32>
    %669 = arith.addf %667, %668 : vector<8x32xf32>
    %670 = math.tanh %669 : vector<8x32xf32>
    %671 = arith.mulf %666, %670 : vector<8x32xf32>
    %672 = arith.index_cast %c12_i32 : i32 to index
    %c0_252 = arith.constant 0 : index
    %c0_253 = arith.constant 0 : index
    %673 = vector.load %arg2[%672, %c0_252, %c0_253] : memref<16x8x1xf32, #tpu.memory_space<vmem>>, vector<1x8x1xf32>
    %674 = vector.shape_cast %673 : vector<1x8x1xf32> to vector<8x1xf32>
    %cst_254 = arith.constant 0.000000e+00 : f32
    %675 = vector.broadcast %cst_254 : f32 to vector<8x1xf32>
    %676 = arith.cmpf ogt, %674, %675 : vector<8x1xf32>
    %677 = vector.shape_cast %676 : vector<8x1xi1> to vector<8x1xi1>
    %678 = vector.broadcast %677 : vector<8x1xi1> to vector<8x32xi1>
    %679 = arith.select %678, %671, %640 : vector<8x32xi1>, vector<8x32xf32>
    %c0_255 = arith.constant 0 : index
    %c0_256 = arith.constant 0 : index
    %680 = vector.load %arg5[%c0_255, %c0_256] : memref<8x32xf32, #tpu.memory_space<vmem>>, vector<8x32xf32>
    tpu.vector_store %arg5[%c0_255, %c0_256], %679 {strides = array<i32>} : memref<8x32xf32, #tpu.memory_space<vmem>>, vector<8x32xf32>,
    %681 = vector.shape_cast %676 : vector<8x1xi1> to vector<8x1xi1>
    %682 = vector.broadcast %681 : vector<8x1xi1> to vector<8x32xi1>
    %683 = arith.select %682, %669, %641 : vector<8x32xi1>, vector<8x32xf32>
    %c0_257 = arith.constant 0 : index
    %c0_258 = arith.constant 0 : index
    %684 = vector.load %arg6[%c0_257, %c0_258] : memref<8x32xf32, #tpu.memory_space<vmem>>, vector<8x32xf32>
    tpu.vector_store %arg6[%c0_257, %c0_258], %683 {strides = array<i32>} : memref<8x32xf32, #tpu.memory_space<vmem>>, vector<8x32xf32>,
    %cst_259 = arith.constant 0.000000e+00 : f32
    %685 = vector.shape_cast %676 : vector<8x1xi1> to vector<8x1xi1>
    %686 = vector.broadcast %685 : vector<8x1xi1> to vector<8x32xi1>
    %687 = vector.broadcast %cst_259 : f32 to vector<8x32xf32>
    %688 = arith.select %686, %671, %687 : vector<8x32xi1>, vector<8x32xf32>
    %689 = arith.index_cast %c12_i32 : i32 to index
    %c0_260 = arith.constant 0 : index
    %c0_261 = arith.constant 0 : index
    %690 = vector.load %arg4[%689, %c0_260, %c0_261] : memref<16x8x32xf32, #tpu.memory_space<vmem>>, vector<1x8x32xf32>
    %691 = vector.shape_cast %690 : vector<1x8x32xf32> to vector<8x32xf32>
    %692 = vector.shape_cast %688 : vector<8x32xf32> to vector<1x8x32xf32>
    tpu.vector_store %arg4[%689, %c0_260, %c0_261], %692 {strides = array<i32>} : memref<16x8x32xf32, #tpu.memory_space<vmem>>, vector<1x8x32xf32>,
    %c13_i32 = arith.constant 13 : i32
    %c0_262 = arith.constant 0 : index
    %c0_263 = arith.constant 0 : index
    %693 = vector.load %arg5[%c0_262, %c0_263] : memref<8x32xf32, #tpu.memory_space<vmem>>, vector<8x32xf32>
    %c0_264 = arith.constant 0 : index
    %c0_265 = arith.constant 0 : index
    %694 = vector.load %arg6[%c0_264, %c0_265] : memref<8x32xf32, #tpu.memory_space<vmem>>, vector<8x32xf32>
    %695 = arith.index_cast %c13_i32 : i32 to index
    %c0_266 = arith.constant 0 : index
    %c0_267 = arith.constant 0 : index
    %696 = vector.load %arg1[%695, %c0_266, %c0_267] : memref<16x8x128xf32, #tpu.memory_space<vmem>>, vector<1x8x128xf32>
    %697 = vector.shape_cast %696 : vector<1x8x128xf32> to vector<8x128xf32>
    %cst_268 = arith.constant dense<0.000000e+00> : vector<8x128xf32>
    %698 = tpu.matmul %693, %3, %cst_268 {dimension_numbers = #tpu.dot_dimension_numbers<[1], [0], [0], [1], [0, 0, 1, 1], [], []>} : vector<8x32xf32>, vector<32x128xf32>, vector<8x128xf32> -> vector<8x128xf32>
    %699 = arith.addf %697, %698 : vector<8x128xf32>
    %700 = vector.extract_strided_slice %699 {offsets = [0, 0], sizes = [8, 32], strides = [1, 1]} : vector<8x128xf32> to vector<8x32xf32>
    %701 = arith.negf %700 : vector<8x32xf32>
    %702 = math.exp %701 : vector<8x32xf32>
    %cst_269 = arith.constant 1.000000e+00 : f32
    %703 = vector.broadcast %cst_269 : f32 to vector<8x32xf32>
    %704 = arith.addf %703, %702 : vector<8x32xf32>
    %705 = arith.divf %703, %704 : vector<8x32xf32>
    %706 = vector.extract_strided_slice %699 {offsets = [0, 32], sizes = [8, 32], strides = [1, 1]} : vector<8x128xf32> to vector<8x32xf32>
    %707 = arith.negf %706 : vector<8x32xf32>
    %708 = math.exp %707 : vector<8x32xf32>
    %cst_270 = arith.constant 1.000000e+00 : f32
    %709 = vector.broadcast %cst_270 : f32 to vector<8x32xf32>
    %710 = arith.addf %709, %708 : vector<8x32xf32>
    %711 = arith.divf %709, %710 : vector<8x32xf32>
    %712 = vector.extract_strided_slice %699 {offsets = [0, 64], sizes = [8, 32], strides = [1, 1]} : vector<8x128xf32> to vector<8x32xf32>
    %713 = math.tanh %712 : vector<8x32xf32>
    %714 = vector.extract_strided_slice %699 {offsets = [0, 96], sizes = [8, 32], strides = [1, 1]} : vector<8x128xf32> to vector<8x32xf32>
    %715 = arith.negf %714 : vector<8x32xf32>
    %716 = math.exp %715 : vector<8x32xf32>
    %cst_271 = arith.constant 1.000000e+00 : f32
    %717 = vector.broadcast %cst_271 : f32 to vector<8x32xf32>
    %718 = arith.addf %717, %716 : vector<8x32xf32>
    %719 = arith.divf %717, %718 : vector<8x32xf32>
    %720 = arith.mulf %711, %694 : vector<8x32xf32>
    %721 = arith.mulf %705, %713 : vector<8x32xf32>
    %722 = arith.addf %720, %721 : vector<8x32xf32>
    %723 = math.tanh %722 : vector<8x32xf32>
    %724 = arith.mulf %719, %723 : vector<8x32xf32>
    %725 = arith.index_cast %c13_i32 : i32 to index
    %c0_272 = arith.constant 0 : index
    %c0_273 = arith.constant 0 : index
    %726 = vector.load %arg2[%725, %c0_272, %c0_273] : memref<16x8x1xf32, #tpu.memory_space<vmem>>, vector<1x8x1xf32>
    %727 = vector.shape_cast %726 : vector<1x8x1xf32> to vector<8x1xf32>
    %cst_274 = arith.constant 0.000000e+00 : f32
    %728 = vector.broadcast %cst_274 : f32 to vector<8x1xf32>
    %729 = arith.cmpf ogt, %727, %728 : vector<8x1xf32>
    %730 = vector.shape_cast %729 : vector<8x1xi1> to vector<8x1xi1>
    %731 = vector.broadcast %730 : vector<8x1xi1> to vector<8x32xi1>
    %732 = arith.select %731, %724, %693 : vector<8x32xi1>, vector<8x32xf32>
    %c0_275 = arith.constant 0 : index
    %c0_276 = arith.constant 0 : index
    %733 = vector.load %arg5[%c0_275, %c0_276] : memref<8x32xf32, #tpu.memory_space<vmem>>, vector<8x32xf32>
    tpu.vector_store %arg5[%c0_275, %c0_276], %732 {strides = array<i32>} : memref<8x32xf32, #tpu.memory_space<vmem>>, vector<8x32xf32>,
    %734 = vector.shape_cast %729 : vector<8x1xi1> to vector<8x1xi1>
    %735 = vector.broadcast %734 : vector<8x1xi1> to vector<8x32xi1>
    %736 = arith.select %735, %722, %694 : vector<8x32xi1>, vector<8x32xf32>
    %c0_277 = arith.constant 0 : index
    %c0_278 = arith.constant 0 : index
    %737 = vector.load %arg6[%c0_277, %c0_278] : memref<8x32xf32, #tpu.memory_space<vmem>>, vector<8x32xf32>
    tpu.vector_store %arg6[%c0_277, %c0_278], %736 {strides = array<i32>} : memref<8x32xf32, #tpu.memory_space<vmem>>, vector<8x32xf32>,
    %cst_279 = arith.constant 0.000000e+00 : f32
    %738 = vector.shape_cast %729 : vector<8x1xi1> to vector<8x1xi1>
    %739 = vector.broadcast %738 : vector<8x1xi1> to vector<8x32xi1>
    %740 = vector.broadcast %cst_279 : f32 to vector<8x32xf32>
    %741 = arith.select %739, %724, %740 : vector<8x32xi1>, vector<8x32xf32>
    %742 = arith.index_cast %c13_i32 : i32 to index
    %c0_280 = arith.constant 0 : index
    %c0_281 = arith.constant 0 : index
    %743 = vector.load %arg4[%742, %c0_280, %c0_281] : memref<16x8x32xf32, #tpu.memory_space<vmem>>, vector<1x8x32xf32>
    %744 = vector.shape_cast %743 : vector<1x8x32xf32> to vector<8x32xf32>
    %745 = vector.shape_cast %741 : vector<8x32xf32> to vector<1x8x32xf32>
    tpu.vector_store %arg4[%742, %c0_280, %c0_281], %745 {strides = array<i32>} : memref<16x8x32xf32, #tpu.memory_space<vmem>>, vector<1x8x32xf32>,
    %c14_i32 = arith.constant 14 : i32
    %c0_282 = arith.constant 0 : index
    %c0_283 = arith.constant 0 : index
    %746 = vector.load %arg5[%c0_282, %c0_283] : memref<8x32xf32, #tpu.memory_space<vmem>>, vector<8x32xf32>
    %c0_284 = arith.constant 0 : index
    %c0_285 = arith.constant 0 : index
    %747 = vector.load %arg6[%c0_284, %c0_285] : memref<8x32xf32, #tpu.memory_space<vmem>>, vector<8x32xf32>
    %748 = arith.index_cast %c14_i32 : i32 to index
    %c0_286 = arith.constant 0 : index
    %c0_287 = arith.constant 0 : index
    %749 = vector.load %arg1[%748, %c0_286, %c0_287] : memref<16x8x128xf32, #tpu.memory_space<vmem>>, vector<1x8x128xf32>
    %750 = vector.shape_cast %749 : vector<1x8x128xf32> to vector<8x128xf32>
    %cst_288 = arith.constant dense<0.000000e+00> : vector<8x128xf32>
    %751 = tpu.matmul %746, %3, %cst_288 {dimension_numbers = #tpu.dot_dimension_numbers<[1], [0], [0], [1], [0, 0, 1, 1], [], []>} : vector<8x32xf32>, vector<32x128xf32>, vector<8x128xf32> -> vector<8x128xf32>
    %752 = arith.addf %750, %751 : vector<8x128xf32>
    %753 = vector.extract_strided_slice %752 {offsets = [0, 0], sizes = [8, 32], strides = [1, 1]} : vector<8x128xf32> to vector<8x32xf32>
    %754 = arith.negf %753 : vector<8x32xf32>
    %755 = math.exp %754 : vector<8x32xf32>
    %cst_289 = arith.constant 1.000000e+00 : f32
    %756 = vector.broadcast %cst_289 : f32 to vector<8x32xf32>
    %757 = arith.addf %756, %755 : vector<8x32xf32>
    %758 = arith.divf %756, %757 : vector<8x32xf32>
    %759 = vector.extract_strided_slice %752 {offsets = [0, 32], sizes = [8, 32], strides = [1, 1]} : vector<8x128xf32> to vector<8x32xf32>
    %760 = arith.negf %759 : vector<8x32xf32>
    %761 = math.exp %760 : vector<8x32xf32>
    %cst_290 = arith.constant 1.000000e+00 : f32
    %762 = vector.broadcast %cst_290 : f32 to vector<8x32xf32>
    %763 = arith.addf %762, %761 : vector<8x32xf32>
    %764 = arith.divf %762, %763 : vector<8x32xf32>
    %765 = vector.extract_strided_slice %752 {offsets = [0, 64], sizes = [8, 32], strides = [1, 1]} : vector<8x128xf32> to vector<8x32xf32>
    %766 = math.tanh %765 : vector<8x32xf32>
    %767 = vector.extract_strided_slice %752 {offsets = [0, 96], sizes = [8, 32], strides = [1, 1]} : vector<8x128xf32> to vector<8x32xf32>
    %768 = arith.negf %767 : vector<8x32xf32>
    %769 = math.exp %768 : vector<8x32xf32>
    %cst_291 = arith.constant 1.000000e+00 : f32
    %770 = vector.broadcast %cst_291 : f32 to vector<8x32xf32>
    %771 = arith.addf %770, %769 : vector<8x32xf32>
    %772 = arith.divf %770, %771 : vector<8x32xf32>
    %773 = arith.mulf %764, %747 : vector<8x32xf32>
    %774 = arith.mulf %758, %766 : vector<8x32xf32>
    %775 = arith.addf %773, %774 : vector<8x32xf32>
    %776 = math.tanh %775 : vector<8x32xf32>
    %777 = arith.mulf %772, %776 : vector<8x32xf32>
    %778 = arith.index_cast %c14_i32 : i32 to index
    %c0_292 = arith.constant 0 : index
    %c0_293 = arith.constant 0 : index
    %779 = vector.load %arg2[%778, %c0_292, %c0_293] : memref<16x8x1xf32, #tpu.memory_space<vmem>>, vector<1x8x1xf32>
    %780 = vector.shape_cast %779 : vector<1x8x1xf32> to vector<8x1xf32>
    %cst_294 = arith.constant 0.000000e+00 : f32
    %781 = vector.broadcast %cst_294 : f32 to vector<8x1xf32>
    %782 = arith.cmpf ogt, %780, %781 : vector<8x1xf32>
    %783 = vector.shape_cast %782 : vector<8x1xi1> to vector<8x1xi1>
    %784 = vector.broadcast %783 : vector<8x1xi1> to vector<8x32xi1>
    %785 = arith.select %784, %777, %746 : vector<8x32xi1>, vector<8x32xf32>
    %c0_295 = arith.constant 0 : index
    %c0_296 = arith.constant 0 : index
    %786 = vector.load %arg5[%c0_295, %c0_296] : memref<8x32xf32, #tpu.memory_space<vmem>>, vector<8x32xf32>
    tpu.vector_store %arg5[%c0_295, %c0_296], %785 {strides = array<i32>} : memref<8x32xf32, #tpu.memory_space<vmem>>, vector<8x32xf32>,
    %787 = vector.shape_cast %782 : vector<8x1xi1> to vector<8x1xi1>
    %788 = vector.broadcast %787 : vector<8x1xi1> to vector<8x32xi1>
    %789 = arith.select %788, %775, %747 : vector<8x32xi1>, vector<8x32xf32>
    %c0_297 = arith.constant 0 : index
    %c0_298 = arith.constant 0 : index
    %790 = vector.load %arg6[%c0_297, %c0_298] : memref<8x32xf32, #tpu.memory_space<vmem>>, vector<8x32xf32>
    tpu.vector_store %arg6[%c0_297, %c0_298], %789 {strides = array<i32>} : memref<8x32xf32, #tpu.memory_space<vmem>>, vector<8x32xf32>,
    %cst_299 = arith.constant 0.000000e+00 : f32
    %791 = vector.shape_cast %782 : vector<8x1xi1> to vector<8x1xi1>
    %792 = vector.broadcast %791 : vector<8x1xi1> to vector<8x32xi1>
    %793 = vector.broadcast %cst_299 : f32 to vector<8x32xf32>
    %794 = arith.select %792, %777, %793 : vector<8x32xi1>, vector<8x32xf32>
    %795 = arith.index_cast %c14_i32 : i32 to index
    %c0_300 = arith.constant 0 : index
    %c0_301 = arith.constant 0 : index
    %796 = vector.load %arg4[%795, %c0_300, %c0_301] : memref<16x8x32xf32, #tpu.memory_space<vmem>>, vector<1x8x32xf32>
    %797 = vector.shape_cast %796 : vector<1x8x32xf32> to vector<8x32xf32>
    %798 = vector.shape_cast %794 : vector<8x32xf32> to vector<1x8x32xf32>
    tpu.vector_store %arg4[%795, %c0_300, %c0_301], %798 {strides = array<i32>} : memref<16x8x32xf32, #tpu.memory_space<vmem>>, vector<1x8x32xf32>,
    %c15_i32 = arith.constant 15 : i32
    %c0_302 = arith.constant 0 : index
    %c0_303 = arith.constant 0 : index
    %799 = vector.load %arg5[%c0_302, %c0_303] : memref<8x32xf32, #tpu.memory_space<vmem>>, vector<8x32xf32>
    %c0_304 = arith.constant 0 : index
    %c0_305 = arith.constant 0 : index
    %800 = vector.load %arg6[%c0_304, %c0_305] : memref<8x32xf32, #tpu.memory_space<vmem>>, vector<8x32xf32>
    %801 = arith.index_cast %c15_i32 : i32 to index
    %c0_306 = arith.constant 0 : index
    %c0_307 = arith.constant 0 : index
    %802 = vector.load %arg1[%801, %c0_306, %c0_307] : memref<16x8x128xf32, #tpu.memory_space<vmem>>, vector<1x8x128xf32>
    %803 = vector.shape_cast %802 : vector<1x8x128xf32> to vector<8x128xf32>
    %cst_308 = arith.constant dense<0.000000e+00> : vector<8x128xf32>
    %804 = tpu.matmul %799, %3, %cst_308 {dimension_numbers = #tpu.dot_dimension_numbers<[1], [0], [0], [1], [0, 0, 1, 1], [], []>} : vector<8x32xf32>, vector<32x128xf32>, vector<8x128xf32> -> vector<8x128xf32>
    %805 = arith.addf %803, %804 : vector<8x128xf32>
    %806 = vector.extract_strided_slice %805 {offsets = [0, 0], sizes = [8, 32], strides = [1, 1]} : vector<8x128xf32> to vector<8x32xf32>
    %807 = arith.negf %806 : vector<8x32xf32>
    %808 = math.exp %807 : vector<8x32xf32>
    %cst_309 = arith.constant 1.000000e+00 : f32
    %809 = vector.broadcast %cst_309 : f32 to vector<8x32xf32>
    %810 = arith.addf %809, %808 : vector<8x32xf32>
    %811 = arith.divf %809, %810 : vector<8x32xf32>
    %812 = vector.extract_strided_slice %805 {offsets = [0, 32], sizes = [8, 32], strides = [1, 1]} : vector<8x128xf32> to vector<8x32xf32>
    %813 = arith.negf %812 : vector<8x32xf32>
    %814 = math.exp %813 : vector<8x32xf32>
    %cst_310 = arith.constant 1.000000e+00 : f32
    %815 = vector.broadcast %cst_310 : f32 to vector<8x32xf32>
    %816 = arith.addf %815, %814 : vector<8x32xf32>
    %817 = arith.divf %815, %816 : vector<8x32xf32>
    %818 = vector.extract_strided_slice %805 {offsets = [0, 64], sizes = [8, 32], strides = [1, 1]} : vector<8x128xf32> to vector<8x32xf32>
    %819 = math.tanh %818 : vector<8x32xf32>
    %820 = vector.extract_strided_slice %805 {offsets = [0, 96], sizes = [8, 32], strides = [1, 1]} : vector<8x128xf32> to vector<8x32xf32>
    %821 = arith.negf %820 : vector<8x32xf32>
    %822 = math.exp %821 : vector<8x32xf32>
    %cst_311 = arith.constant 1.000000e+00 : f32
    %823 = vector.broadcast %cst_311 : f32 to vector<8x32xf32>
    %824 = arith.addf %823, %822 : vector<8x32xf32>
    %825 = arith.divf %823, %824 : vector<8x32xf32>
    %826 = arith.mulf %817, %800 : vector<8x32xf32>
    %827 = arith.mulf %811, %819 : vector<8x32xf32>
    %828 = arith.addf %826, %827 : vector<8x32xf32>
    %829 = math.tanh %828 : vector<8x32xf32>
    %830 = arith.mulf %825, %829 : vector<8x32xf32>
    %831 = arith.index_cast %c15_i32 : i32 to index
    %c0_312 = arith.constant 0 : index
    %c0_313 = arith.constant 0 : index
    %832 = vector.load %arg2[%831, %c0_312, %c0_313] : memref<16x8x1xf32, #tpu.memory_space<vmem>>, vector<1x8x1xf32>
    %833 = vector.shape_cast %832 : vector<1x8x1xf32> to vector<8x1xf32>
    %cst_314 = arith.constant 0.000000e+00 : f32
    %834 = vector.broadcast %cst_314 : f32 to vector<8x1xf32>
    %835 = arith.cmpf ogt, %833, %834 : vector<8x1xf32>
    %836 = vector.shape_cast %835 : vector<8x1xi1> to vector<8x1xi1>
    %837 = vector.broadcast %836 : vector<8x1xi1> to vector<8x32xi1>
    %838 = arith.select %837, %830, %799 : vector<8x32xi1>, vector<8x32xf32>
    %c0_315 = arith.constant 0 : index
    %c0_316 = arith.constant 0 : index
    %839 = vector.load %arg5[%c0_315, %c0_316] : memref<8x32xf32, #tpu.memory_space<vmem>>, vector<8x32xf32>
    tpu.vector_store %arg5[%c0_315, %c0_316], %838 {strides = array<i32>} : memref<8x32xf32, #tpu.memory_space<vmem>>, vector<8x32xf32>,
    %840 = vector.shape_cast %835 : vector<8x1xi1> to vector<8x1xi1>
    %841 = vector.broadcast %840 : vector<8x1xi1> to vector<8x32xi1>
    %842 = arith.select %841, %828, %800 : vector<8x32xi1>, vector<8x32xf32>
    %c0_317 = arith.constant 0 : index
    %c0_318 = arith.constant 0 : index
    %843 = vector.load %arg6[%c0_317, %c0_318] : memref<8x32xf32, #tpu.memory_space<vmem>>, vector<8x32xf32>
    tpu.vector_store %arg6[%c0_317, %c0_318], %842 {strides = array<i32>} : memref<8x32xf32, #tpu.memory_space<vmem>>, vector<8x32xf32>,
    %cst_319 = arith.constant 0.000000e+00 : f32
    %844 = vector.shape_cast %835 : vector<8x1xi1> to vector<8x1xi1>
    %845 = vector.broadcast %844 : vector<8x1xi1> to vector<8x32xi1>
    %846 = vector.broadcast %cst_319 : f32 to vector<8x32xf32>
    %847 = arith.select %845, %830, %846 : vector<8x32xi1>, vector<8x32xf32>
    %848 = arith.index_cast %c15_i32 : i32 to index
    %c0_320 = arith.constant 0 : index
    %c0_321 = arith.constant 0 : index
    %849 = vector.load %arg4[%848, %c0_320, %c0_321] : memref<16x8x32xf32, #tpu.memory_space<vmem>>, vector<1x8x32xf32>
    %850 = vector.shape_cast %849 : vector<1x8x32xf32> to vector<8x32xf32>
    %851 = vector.shape_cast %847 : vector<8x32xf32> to vector<1x8x32xf32>
    tpu.vector_store %arg4[%848, %c0_320, %c0_321], %851 {strides = array<i32>} : memref<16x8x32xf32, #tpu.memory_space<vmem>>, vector<1x8x32xf32>,
    %c16_i32 = arith.constant 16 : i32
    return
  }
  func.func @transform_0(%arg0: i32) -> (i32, i32, i32) {
    %c0_i32 = arith.constant 0 : i32
    %c0_i32_0 = arith.constant 0 : i32
    %c0_i32_1 = arith.constant 0 : i32
    return %arg0, %c0_i32, %c0_i32_0 : i32, i32, i32
  }
  func.func @transform_1(%arg0: i32) -> (i32, i32, i32) {
    %c0_i32 = arith.constant 0 : i32
    %c0_i32_0 = arith.constant 0 : i32
    %c0_i32_1 = arith.constant 0 : i32
    return %arg0, %c0_i32, %c0_i32_0 : i32, i32, i32
  }
  func.func @transform_2(%arg0: i32) -> (i32, i32) {
    %c0_i32 = arith.constant 0 : i32
    %c0_i32_0 = arith.constant 0 : i32
    %c0_i32_1 = arith.constant 0 : i32
    return %c0_i32, %c0_i32_0 : i32, i32
  }
  func.func @transform_3(%arg0: i32) -> (i32, i32, i32) {
    %c0_i32 = arith.constant 0 : i32
    %c0_i32_0 = arith.constant 0 : i32
    %c0_i32_1 = arith.constant 0 : i32
    return %arg0, %c0_i32, %c0_i32_0 : i32, i32, i32
  }
}

module attributes {stable_mosaic.version = 11 : i64} {
  func.func @_matmul_bias_kernel(%arg0: i32, %arg1: memref<24x32xf32, #tpu.memory_space<vmem>>, %arg2: memref<32x128xf32, #tpu.memory_space<vmem>>, %arg3: memref<1x128xf32, #tpu.memory_space<vmem>>, %arg4: memref<24x128xf32, #tpu.memory_space<vmem>>) attributes {dimension_semantics = [#tpu.dimension_semantics<parallel>], iteration_bounds = array<i64: 1>, scalar_prefetch = 0 : i64, scratch_operands = 0 : i64, tpu.core_type = #tpu.core_type<tc>, window_params = [{transform_indices = @transform_0, window_bounds = array<i64: 24, 32>}, {pipeline_mode = #tpu.pipeline_mode<synchronous>, transform_indices = @transform_1, window_bounds = array<i64: 32, 128>}, {pipeline_mode = #tpu.pipeline_mode<synchronous>, transform_indices = @transform_2, window_bounds = array<i64: 1, 128>}, {transform_indices = @transform_3, window_bounds = array<i64: 24, 128>}]} {
    %c0 = arith.constant 0 : index
    %c0_0 = arith.constant 0 : index
    %0 = vector.load %arg1[%c0, %c0_0] : memref<24x32xf32, #tpu.memory_space<vmem>>, vector<24x32xf32>
    %c0_1 = arith.constant 0 : index
    %c0_2 = arith.constant 0 : index
    %1 = vector.load %arg2[%c0_1, %c0_2] : memref<32x128xf32, #tpu.memory_space<vmem>>, vector<32x128xf32>
    %cst = arith.constant dense<0.000000e+00> : vector<24x128xf32>
    %2 = tpu.matmul %0, %1, %cst {dimension_numbers = #tpu.dot_dimension_numbers<[1], [0], [0], [1], [0, 0, 1, 1], [], []>} : vector<24x32xf32>, vector<32x128xf32>, vector<24x128xf32> -> vector<24x128xf32>
    %c0_3 = arith.constant 0 : index
    %c0_4 = arith.constant 0 : index
    %3 = vector.load %arg3[%c0_3, %c0_4] : memref<1x128xf32, #tpu.memory_space<vmem>>, vector<1x128xf32>
    %4 = vector.broadcast %3 : vector<1x128xf32> to vector<24x128xf32>
    %5 = arith.addf %2, %4 : vector<24x128xf32>
    %c0_5 = arith.constant 0 : index
    %c0_6 = arith.constant 0 : index
    %6 = vector.load %arg4[%c0_5, %c0_6] : memref<24x128xf32, #tpu.memory_space<vmem>>, vector<24x128xf32>
    tpu.vector_store %arg4[%c0_5, %c0_6], %5 {strides = array<i32>} : memref<24x128xf32, #tpu.memory_space<vmem>>, vector<24x128xf32>,
    return
  }
  func.func @transform_0(%arg0: i32) -> (i32, i32) {
    %c0_i32 = arith.constant 0 : i32
    %c0_i32_0 = arith.constant 0 : i32
    return %arg0, %c0_i32 : i32, i32
  }
  func.func @transform_1(%arg0: i32) -> (i32, i32) {
    %c0_i32 = arith.constant 0 : i32
    %c0_i32_0 = arith.constant 0 : i32
    %c0_i32_1 = arith.constant 0 : i32
    return %c0_i32, %c0_i32_0 : i32, i32
  }
  func.func @transform_2(%arg0: i32) -> (i32, i32) {
    %c0_i32 = arith.constant 0 : i32
    %c0_i32_0 = arith.constant 0 : i32
    %c0_i32_1 = arith.constant 0 : i32
    return %c0_i32, %c0_i32_0 : i32, i32
  }
  func.func @transform_3(%arg0: i32) -> (i32, i32) {
    %c0_i32 = arith.constant 0 : i32
    %c0_i32_0 = arith.constant 0 : i32
    return %arg0, %c0_i32 : i32, i32
  }
}

</mosaic_0001>

<bundles_post_ra>
// kernel: conv_rnn_forward.7
= control target key start
LH: loop header
LB: loop body
LE: loop exit
PB: predicated region body
PF: predicated region fallthrough
CT: control target
= control target key end

     0   :  { %vm88_vm0 = vcmask 1043456   ;;  %vm39_vm1 = vcmask 97280   ;;  %vm330_vm2 = vmmov 1   ;;  %s472_s1 = inlined_call_operand.vmem [shape: f32[12,128], index: 1, kind: input, shape index: {}]   ;;  %s473_s0 = inlined_call_operand.vmem [shape: f32[128,12], index: 0, kind: input, shape index: {}]   ;;  %s474_s2 = inlined_call_operand.vmem [shape: f32[1,128], index: 2, kind: input, shape index: {}]   ;;  %s475_s3 = inlined_call_operand.vmem [shape: f32[128,128], index: 3, kind: output, shape index: {}]  }
   0x1   :  { %v30_v0 = vld [vmem:[%s472_s1] sm:$0xff]  ;;  %v31_v1 = vld [vmem:[%s472_s1 + $0x8] sm:$0xf]  ;;  %vm322_vm3 = vmpackc.low %vm88_vm0, %vm330_vm2 }
   0x2   :  { %v321_v2 = vpack.c.bf16 %v31_v1, %v30_v0  ;;  %v14_v3 = vld [vmem:[%s473_s0] sm:$0xff]  ;;  %v15_v5 = vld [vmem:[%s473_s0 + $0x8] sm:$0xff]  ;;  %v16_v7 = vld [vmem:[%s473_s0 + $0x10] sm:$0xff] }
   0x3   :  { %v22_v4 = vld [vmem:[%s473_s0 + $0x40] sm:$0xff]  ;;  %297 = vmatprep.mubr.msk.f32.mxu0 %vm39_vm1, %v14_v3  ;;  %v23_v6 = vld [vmem:[%s473_s0 + $0x48] sm:$0xff]  ;;  %v24_v8 = vld [vmem:[%s473_s0 + $0x50] sm:$0xff] }
   0x4   :  { %309 = vmatprep.mubr.msk.f32.mxu1 %vm39_vm1, %v22_v4  ;;  %323 = vmatprep.subr.msk.bf16.mxu0 %vm322_vm3, %v321_v2  ;;  %v17_v9 = vld [vmem:[%s473_s0 + $0x18] sm:$0xff]  ;;  %v18_v11 = vld [vmem:[%s473_s0 + $0x20] sm:$0xff]  ;;  %v19_v13 = vld [vmem:[%s473_s0 + $0x28] sm:$0xff] }
   0x5   :  { %327 = vmatprep.subr.msk.bf16.mxu1 %vm322_vm3, %v321_v2  ;;  %326 = vmatpush3.bf16.msk.msra.mxu0 %vm322_vm3, %v321_v2  ;;  %v25_v10 = vld [vmem:[%s473_s0 + $0x58] sm:$0xff]  ;;  %v26_v12 = vld [vmem:[%s473_s0 + $0x60] sm:$0xff]  ;;  %v27_v14 = vld [vmem:[%s473_s0 + $0x68] sm:$0xff] }
   0x6   :  { %328 = vmatpush3.bf16.msk.msra.mxu1 %vm322_vm3, %v321_v2  ;;  %v20_v15 = vld [vmem:[%s473_s0 + $0x30] sm:$0xff]  ;;  %v21_v17 = vld [vmem:[%s473_s0 + $0x38] sm:$0xff]  ;;  %v257_v19 = vld [vmem:[%s474_s2] ss:$0 sm:$0xff] }
   0x7   :  { %v28_v16 = vld [vmem:[%s473_s0 + $0x70] sm:$0xff]  ;;  %v29_v18 = vld [vmem:[%s473_s0 + $0x78] sm:$0xff] }
   0x8   :  { %298 = vmatmul.mubr.msk.f32.vlgmr.msra.gmra.mrb[0].mxu0 %vm39_vm1, %v15_v5 }
   0x9   :  { %310 = vmatmul.mubr.msk.f32.vlgmr.msra.gmra.mrb[0].mxu1 %vm39_vm1, %v23_v6  ;;  %300 = vmatprep.mubr.msk.f32.mxu0 %vm39_vm1, %v16_v7 }
   0xa   :  { %312 = vmatprep.mubr.msk.f32.mxu1 %vm39_vm1, %v24_v8 }
   0xc   :  { %301 = vmatmul.mubr.msk.f32.gmra.mrb[2].mxu0 %vm39_vm1, %v17_v9 }
   0xd   :  { %313 = vmatmul.mubr.msk.f32.gmra.mrb[2].mxu1 %vm39_vm1, %v25_v10  ;;  %303 = vmatprep.mubr.msk.f32.mxu0 %vm39_vm1, %v18_v11 }
   0xe   :  { %315 = vmatprep.mubr.msk.f32.mxu1 %vm39_vm1, %v26_v12 }
  0x10   :  { %304 = vmatmul.mubr.msk.f32.gmra.mrb[4].mxu0 %vm39_vm1, %v19_v13 }
  0x11   :  { %316 = vmatmul.mubr.msk.f32.gmra.mrb[4].mxu1 %vm39_vm1, %v27_v14  ;;  %306 = vmatprep.mubr.msk.f32.mxu0 %vm39_vm1, %v20_v15 }
  0x12   :  { %318 = vmatprep.mubr.msk.f32.mxu1 %vm39_vm1, %v28_v16 }
  0x14   :  { %307 = vmatmul.mubr.msk.f32.gmra.mrb[6].mxu0 %vm39_vm1, %v21_v17 }
  0x15   :  { %319 = vmatmul.mubr.msk.f32.gmra.mrb[6].mxu1 %vm39_vm1, %v29_v18 }
  0xdb   :  { %v299_v20 = vpop.f32.mrb[0].mxu0 }
  0xdc   :  { %v311_v21 = vpop.f32.mrb[0].mxu1  ;;  %v164_v22 = vadd.f32 %v299_v20, %v257_v19  ;;  %v158_v24 = vpop.f32.mrb[1].mxu0 }
  0xdd   :  { %v204_v23 = vadd.f32 %v311_v21, %v257_v19  ;;  %v198_v25 = vpop.f32.mrb[1].mxu1  ;;  %v159_v26 = vadd.f32 %v257_v19, %v158_v24 }
  0xde   :  { %v199_v27 = vadd.f32 %v257_v19, %v198_v25  ;;  %238 = vst [vmem:[%s475_s3 + $0x8] sm:$0xff] %v164_v22 }
  0xdf   :  { %246 = vst [vmem:[%s475_s3 + $0x48] sm:$0xff] %v204_v23  ;;  %237 = vst [vmem:[%s475_s3] sm:$0xff] %v159_v26  ;;  %v302_v28 = vpop.f32.mrb[2].mxu0 }
  0xe0   :  { %245 = vst [vmem:[%s475_s3 + $0x40] sm:$0xff] %v199_v27  ;;  %v314_v29 = vpop.f32.mrb[2].mxu1  ;;  %v174_v30 = vadd.f32 %v302_v28, %v257_v19  ;;  %v168_v32 = vpop.f32.mrb[3].mxu0 }
  0xe1   :  { %v214_v31 = vadd.f32 %v314_v29, %v257_v19  ;;  %v208_v33 = vpop.f32.mrb[3].mxu1  ;;  %v169_v34 = vadd.f32 %v257_v19, %v168_v32 }
  0xe2   :  { %v209_v35 = vadd.f32 %v257_v19, %v208_v33  ;;  %240 = vst [vmem:[%s475_s3 + $0x18] sm:$0xff] %v174_v30 }
  0xe3   :  { %248 = vst [vmem:[%s475_s3 + $0x58] sm:$0xff] %v214_v31  ;;  %239 = vst [vmem:[%s475_s3 + $0x10] sm:$0xff] %v169_v34  ;;  %v305_v36 = vpop.f32.mrb[4].mxu0 }
  0xe4   :  { %247 = vst [vmem:[%s475_s3 + $0x50] sm:$0xff] %v209_v35  ;;  %v317_v37 = vpop.f32.mrb[4].mxu1  ;;  %v184_v38 = vadd.f32 %v305_v36, %v257_v19  ;;  %v178_v40 = vpop.f32.mrb[5].mxu0 }
  0xe5   :  { %v224_v39 = vadd.f32 %v317_v37, %v257_v19  ;;  %v218_v41 = vpop.f32.mrb[5].mxu1  ;;  %v179_v42 = vadd.f32 %v257_v19, %v178_v40 }
  0xe6   :  { %v219_v43 = vadd.f32 %v257_v19, %v218_v41  ;;  %242 = vst [vmem:[%s475_s3 + $0x28] sm:$0xff] %v184_v38 }
  0xe7   :  { %250 = vst [vmem:[%s475_s3 + $0x68] sm:$0xff] %v224_v39  ;;  %241 = vst [vmem:[%s475_s3 + $0x20] sm:$0xff] %v179_v42  ;;  %v308_v44 = vpop.f32.mrb[6].mxu0 }
  0xe8   :  { %249 = vst [vmem:[%s475_s3 + $0x60] sm:$0xff] %v219_v43  ;;  %v320_v45 = vpop.f32.mrb[6].mxu1  ;;  %v194_v46 = vadd.f32 %v308_v44, %v257_v19  ;;  %v188_v48 = vpop.f32.mrb[7].mxu0 }
  0xe9   :  { %v234_v47 = vadd.f32 %v320_v45, %v257_v19  ;;  %v228_v49 = vpop.f32.mrb[7].mxu1  ;;  %v189_v50 = vadd.f32 %v257_v19, %v188_v48 }
  0xea   :  { %v229_v51 = vadd.f32 %v257_v19, %v228_v49  ;;  %244 = vst [vmem:[%s475_s3 + $0x38] sm:$0xff] %v194_v46 }
  0xeb   :  { %252 = vst [vmem:[%s475_s3 + $0x78] sm:$0xff] %v234_v47  ;;  %243 = vst [vmem:[%s475_s3 + $0x30] sm:$0xff] %v189_v50 }
  0xec   :  { %251 = vst [vmem:[%s475_s3 + $0x70] sm:$0xff] %v229_v51 }

// kernel: conv_rnn_forward.8
= control target key start
LH: loop header
LB: loop body
LE: loop exit
PB: predicated region body
PF: predicated region fallthrough
CT: control target
= control target key end

     0   :  { %s382_s1 = inlined_call_operand.vmem [shape: f32[256,128], index: 1, kind: input, shape index: {}]   ;;  %s383_s0 = inlined_call_operand.vmem [shape: f32[24,256], index: 0, kind: input, shape index: {}]   ;;  %s384_s2 = inlined_call_operand.vmem [shape: f32[1,128], index: 2, kind: input, shape index: {}]   ;;  %s385_s3 = inlined_call_operand.vmem [shape: f32[24,128], index: 3, kind: output, shape index: {}]  }
   0x1   :  { %v36_v0 = vld [vmem:[%s382_s1 + $0x80] sm:$0xff]  ;;  %v37_v1 = vld [vmem:[%s382_s1 + $0x88] sm:$0xff]  ;;  %v38_v5 = vld [vmem:[%s382_s1 + $0x90] sm:$0xff] }
   0x2   :  { %v20_v2 = vld [vmem:[%s382_s1] sm:$0xff]  ;;  %v188_v3 = vpack.c.bf16 %v37_v1, %v36_v0  ;;  %v21_v4 = vld [vmem:[%s382_s1 + $0x8] sm:$0xff]  ;;  %v39_v6 = vld [vmem:[%s382_s1 + $0x98] sm:$0xff] }
   0x3   :  { %v190_v7 = vpack.c.bf16 %v21_v4, %v20_v2  ;;  %v192_v8 = vpack.c.bf16 %v39_v6, %v38_v5  ;;  %v22_v9 = vld [vmem:[%s382_s1 + $0x10] sm:$0xff]  ;;  %v23_v10 = vld [vmem:[%s382_s1 + $0x18] sm:$0xff]  ;;  %v40_v11 = vld [vmem:[%s382_s1 + $0xa0] sm:$0xff] }
   0x4   :  { %220 = vmatprep.subr.bf16.mxu1 %v188_v3  ;;  %189 = vmatprep.subr.bf16.mxu0 %v188_v3  ;;  %v41_v12 = vld [vmem:[%s382_s1 + $0xa8] sm:$0xff]  ;;  %v194_v13 = vpack.c.bf16 %v23_v10, %v22_v9  ;;  %v24_v15 = vld [vmem:[%s382_s1 + $0x20] sm:$0xff]  ;;  %v42_v17 = vld [vmem:[%s382_s1 + $0xb0] sm:$0xff] }
   0x5   :  { %228 = vmatpush3.bf16.msra.mxu1 %v190_v7  ;;  %191 = vmatpush3.bf16.msra.mxu0 %v190_v7  ;;  %v196_v14 = vpack.c.bf16 %v41_v12, %v40_v11  ;;  %v25_v16 = vld [vmem:[%s382_s1 + $0x28] sm:$0xff]  ;;  %v43_v18 = vld [vmem:[%s382_s1 + $0xb8] sm:$0xff]  ;;  %v26_v21 = vld [vmem:[%s382_s1 + $0x30] sm:$0xff] }
   0x6   :  { %221 = vmatprep.subr.bf16.mxu1 %v192_v8  ;;  %193 = vmatprep.subr.bf16.mxu0 %v192_v8  ;;  %v198_v19 = vpack.c.bf16 %v25_v16, %v24_v15  ;;  %v200_v20 = vpack.c.bf16 %v43_v18, %v42_v17  ;;  %v27_v22 = vld [vmem:[%s382_s1 + $0x38] sm:$0xff]  ;;  %v44_v23 = vld [vmem:[%s382_s1 + $0xc0] sm:$0xff]  ;;  %v45_v24 = vld [vmem:[%s382_s1 + $0xc8] sm:$0xff] }
   0x7   :  { %v17_v25 = vld [vmem:[%s383_s0 + $0x18] sm:$0xff]  ;;  %v15_v26 = vld [vmem:[%s383_s0 + $0x8] sm:$0xff]  ;;  %v202_v27 = vpack.c.bf16 %v27_v22, %v26_v21  ;;  %v204_v28 = vpack.c.bf16 %v45_v24, %v44_v23  ;;  %v28_v29 = vld [vmem:[%s382_s1 + $0x40] sm:$0xff] }
   0x8   :  { %128 = vmatprep.mubr.f32.mxu1 %v17_v25  ;;  %v29_v30 = vld [vmem:[%s382_s1 + $0x48] sm:$0xff]  ;;  %v46_v31 = vld [vmem:[%s382_s1 + $0xd0] sm:$0xff]  ;;  %v47_v32 = vld [vmem:[%s382_s1 + $0xd8] sm:$0xff]  ;;  %123 = vmatprep.mubr.f32.mxu0 %v15_v26 }
   0x9   :  { %229 = vmatpush3.bf16.msra.mxu1 %v194_v13  ;;  %195 = vmatpush3.bf16.msra.mxu0 %v194_v13  ;;  %v206_v33 = vpack.c.bf16 %v29_v30, %v28_v29  ;;  %v208_v34 = vpack.c.bf16 %v47_v32, %v46_v31  ;;  %v30_v35 = vld [vmem:[%s382_s1 + $0x50] sm:$0xff]  ;;  %v31_v36 = vld [vmem:[%s382_s1 + $0x58] sm:$0xff]  ;;  %v48_v37 = vld [vmem:[%s382_s1 + $0xe0] sm:$0xff] }
   0xa   :  { %222 = vmatprep.subr.bf16.mxu1 %v196_v14  ;;  %197 = vmatprep.subr.bf16.mxu0 %v196_v14  ;;  %v49_v38 = vld [vmem:[%s382_s1 + $0xe8] sm:$0xff]  ;;  %v210_v39 = vpack.c.bf16 %v31_v36, %v30_v35  ;;  %v32_v41 = vld [vmem:[%s382_s1 + $0x60] sm:$0xff]  ;;  %v50_v43 = vld [vmem:[%s382_s1 + $0xf0] sm:$0xff] }
   0xb   :  { %v212_v40 = vpack.c.bf16 %v49_v38, %v48_v37  ;;  %v33_v42 = vld [vmem:[%s382_s1 + $0x68] sm:$0xff]  ;;  %v51_v44 = vld [vmem:[%s382_s1 + $0xf8] sm:$0xff]  ;;  %v34_v47 = vld [vmem:[%s382_s1 + $0x70] sm:$0xff] }
   0xc   :  { %v214_v45 = vpack.c.bf16 %v33_v42, %v32_v41  ;;  %v216_v46 = vpack.c.bf16 %v51_v44, %v50_v43  ;;  %v35_v48 = vld [vmem:[%s382_s1 + $0x78] sm:$0xff]  ;;  %v16_v50 = vld [vmem:[%s383_s0 + $0x10] sm:$0xff]  ;;  %v14_v51 = vld [vmem:[%s383_s0] sm:$0xff] }
   0xd   :  { %230 = vmatpush3.bf16.msra.mxu1 %v198_v19  ;;  %199 = vmatpush3.bf16.msra.mxu0 %v198_v19  ;;  %v218_v49 = vpack.c.bf16 %v35_v48, %v34_v47  ;;  %v19_v52 = vld [vmem:[%s383_s0 + $0x28] sm:$0xff]  ;;  %v18_v53 = vld [vmem:[%s383_s0 + $0x20] sm:$0xff] }
   0xe   :  { %223 = vmatprep.subr.bf16.mxu1 %v200_v20  ;;  %201 = vmatprep.subr.bf16.mxu0 %v200_v20  ;;  %v146_v56 = vld [vmem:[%s384_s2] ss:$0 sm:$0xff] }
  0x11   :  { %231 = vmatpush3.bf16.msra.mxu1 %v202_v27  ;;  %203 = vmatpush3.bf16.msra.mxu0 %v202_v27 }
  0x12   :  { %224 = vmatprep.subr.bf16.mxu1 %v204_v28  ;;  %205 = vmatprep.subr.bf16.mxu0 %v204_v28 }
  0x15   :  { %232 = vmatpush3.bf16.msra.mxu1 %v206_v33  ;;  %207 = vmatpush3.bf16.msra.mxu0 %v206_v33 }
  0x16   :  { %225 = vmatprep.subr.bf16.mxu1 %v208_v34  ;;  %209 = vmatprep.subr.bf16.mxu0 %v208_v34 }
  0x19   :  { %233 = vmatpush3.bf16.msra.mxu1 %v210_v39  ;;  %211 = vmatpush3.bf16.msra.mxu0 %v210_v39 }
  0x1a   :  { %226 = vmatprep.subr.bf16.mxu1 %v212_v40  ;;  %213 = vmatprep.subr.bf16.mxu0 %v212_v40 }
  0x1d   :  { %234 = vmatpush3.bf16.msra.mxu1 %v214_v45  ;;  %215 = vmatpush3.bf16.msra.mxu0 %v214_v45 }
  0x1e   :  { %227 = vmatprep.subr.bf16.mxu1 %v216_v46  ;;  %217 = vmatprep.subr.bf16.mxu0 %v216_v46 }
  0x21   :  { %235 = vmatpush3.bf16.msra.mxu1 %v218_v49  ;;  %219 = vmatpush3.bf16.msra.mxu0 %v218_v49 }
  0x24   :  { %129 = vmatmul.mubr.f32.vlgmr.msra.gmra.mrb[0].mxu1 %v16_v50  ;;  %124 = vmatmul.mubr.f32.vlgmr.msra.gmra.mrb[0].mxu0 %v14_v51 }
  0x25   :  { %133 = vmatprep.mubr.f32.mxu1 %v19_v52 }
  0x28   :  { %134 = vmatmul.mubr.f32.gmra.mrb[2].mxu1 %v18_v53 }
  0xf7   :  { %v182_v54 = vpop.f32.mrb[0].mxu1  ;;  %v179_v55 = vpop.f32.mrb[0].mxu0 }
  0xf8   :  { %v183_v57 = vpop.f32.mrb[1].mxu1  ;;  %v180_v58 = vpop.f32.mrb[1].mxu0 }
  0xf9   :  { %v184_v59 = vadd.f32 %v183_v57, %v182_v54  ;;  %v181_v60 = vadd.f32 %v180_v58, %v179_v55 }
  0xfb   :  { %v131_v61 = vadd.f32 %v184_v59, %v146_v56  ;;  %v126_v62 = vadd.f32 %v181_v60, %v146_v56  ;;  %v185_v63 = vpop.f32.mrb[2].mxu1 }
  0xfc   :  { %v186_v0 = vpop.f32.mrb[3].mxu1 }
  0xfd   :  { %140 = vst [vmem:[%s385_s3 + $0x8] sm:$0xff] %v131_v61  ;;  %139 = vst [vmem:[%s385_s3] sm:$0xff] %v126_v62  ;;  %v187_v1 = vadd.f32 %v186_v0, %v185_v63 }
  0xff   :  { %v136_v2 = vadd.f32 %v187_v1, %v146_v56 }
 0x101   :  { %141 = vst [vmem:[%s385_s3 + $0x10] sm:$0xff] %v136_v2 }

// kernel: conv_rnn_forward.9
= control target key start
LH: loop header
LB: loop body
LE: loop exit
PB: predicated region body
PF: predicated region fallthrough
CT: control target
= control target key end

     0   :  { %vm35_vm0 = vcmask 261120   ;;  %s360_s1 = inlined_call_operand.vmem [shape: f32[32,128], index: 1, kind: input, shape index: {}]   ;;  %s361_s0 = inlined_call_operand.vmem [shape: f32[80,32], index: 0, kind: input, shape index: {}]   ;;  %s362_s2 = inlined_call_operand.vmem [shape: f32[1,128], index: 2, kind: input, shape index: {}]   ;;  %s363_s3 = inlined_call_operand.vmem [shape: f32[80,128], index: 3, kind: output, shape index: {}]  }
   0x1   :  { %v24_v0 = vld [vmem:[%s360_s1] sm:$0xff]  ;;  %v25_v1 = vld [vmem:[%s360_s1 + $0x8] sm:$0xff]  ;;  %v26_v2 = vld [vmem:[%s360_s1 + $0x10] sm:$0xff] }
   0x2   :  { %v243_v3 = vpack.c.bf16 %v25_v1, %v24_v0  ;;  %v27_v4 = vld [vmem:[%s360_s1 + $0x18] sm:$0xff]  ;;  %v14_v5 = vld [vmem:[%s361_s0] sm:$0xff]  ;;  %v20_v7 = vld [vmem:[%s361_s0 + $0x30] sm:$0xff] }
   0x3   :  { %v247_v6 = vpack.c.bf16 %v27_v4, %v26_v2  ;;  %228 = vmatprep.mubr.msk.f32.mxu0 %vm35_vm0, %v14_v5  ;;  %237 = vmatprep.mubr.msk.f32.mxu1 %vm35_vm0, %v20_v7  ;;  %v15_v8 = vld [vmem:[%s361_s0 + $0x8] sm:$0xff]  ;;  %v21_v9 = vld [vmem:[%s361_s0 + $0x38] sm:$0xff]  ;;  %v16_v10 = vld [vmem:[%s361_s0 + $0x10] sm:$0xff] }
   0x4   :  { %244 = vmatprep.subr.bf16.mxu0 %v243_v3  ;;  %251 = vmatprep.subr.bf16.mxu1 %v243_v3  ;;  %v22_v11 = vld [vmem:[%s361_s0 + $0x40] sm:$0xff]  ;;  %v17_v12 = vld [vmem:[%s361_s0 + $0x18] sm:$0xff]  ;;  %v23_v13 = vld [vmem:[%s361_s0 + $0x48] sm:$0xff] }
   0x5   :  { %246 = vmatpush3.bf16.msra.mxu0 %v243_v3  ;;  %253 = vmatpush3.bf16.msra.mxu1 %v243_v3  ;;  %v18_v14 = vld [vmem:[%s361_s0 + $0x20] sm:$0xff]  ;;  %v19_v15 = vld [vmem:[%s361_s0 + $0x28] sm:$0xff] }
   0x6   :  { %248 = vmatprep.subr.bf16.mxu0 %v247_v6  ;;  %252 = vmatprep.subr.bf16.mxu1 %v247_v6  ;;  %v195_v16 = vld [vmem:[%s362_s2] ss:$0 sm:$0xff] }
   0x9   :  { %250 = vmatpush3.bf16.msra.mxu0 %v247_v6  ;;  %254 = vmatpush3.bf16.msra.mxu1 %v247_v6 }
   0xc   :  { %229 = vmatmul.mubr.msk.f32.vlgmr.msra.gmra.mrb[0].mxu0 %vm35_vm0, %v15_v8  ;;  %238 = vmatmul.mubr.msk.f32.vlgmr.msra.gmra.mrb[0].mxu1 %vm35_vm0, %v21_v9 }
   0xd   :  { %231 = vmatprep.mubr.msk.f32.mxu0 %vm35_vm0, %v16_v10  ;;  %240 = vmatprep.mubr.msk.f32.mxu1 %vm35_vm0, %v22_v11 }
  0x10   :  { %232 = vmatmul.mubr.msk.f32.gmra.mrb[2].mxu0 %vm35_vm0, %v17_v12  ;;  %241 = vmatmul.mubr.msk.f32.gmra.mrb[2].mxu1 %vm35_vm0, %v23_v13 }
  0x11   :  { %234 = vmatprep.mubr.msk.f32.mxu0 %vm35_vm0, %v18_v14 }
  0x14   :  { %235 = vmatmul.mubr.msk.f32.gmra.mrb[4].mxu0 %vm35_vm0, %v19_v15 }
  0xdf   :  { %v230_v17 = vpop.f32.mrb[0].mxu0  ;;  %v239_v18 = vpop.f32.mrb[0].mxu1 }
  0xe0   :  { %v138_v19 = vadd.f32 %v230_v17, %v195_v16  ;;  %v132_v20 = vpop.f32.mrb[1].mxu0  ;;  %v168_v21 = vadd.f32 %v239_v18, %v195_v16  ;;  %v162_v22 = vpop.f32.mrb[1].mxu1 }
  0xe1   :  { %v133_v23 = vadd.f32 %v195_v16, %v132_v20  ;;  %v163_v24 = vadd.f32 %v195_v16, %v162_v22 }
  0xe2   :  { %182 = vst [vmem:[%s363_s3 + $0x8] sm:$0xff] %v138_v19  ;;  %188 = vst [vmem:[%s363_s3 + $0x38] sm:$0xff] %v168_v21 }
  0xe3   :  { %181 = vst [vmem:[%s363_s3] sm:$0xff] %v133_v23  ;;  %v233_v25 = vpop.f32.mrb[2].mxu0  ;;  %187 = vst [vmem:[%s363_s3 + $0x30] sm:$0xff] %v163_v24  ;;  %v242_v26 = vpop.f32.mrb[2].mxu1 }
  0xe4   :  { %v148_v27 = vadd.f32 %v233_v25, %v195_v16  ;;  %v142_v28 = vpop.f32.mrb[3].mxu0  ;;  %v178_v29 = vadd.f32 %v242_v26, %v195_v16  ;;  %v172_v30 = vpop.f32.mrb[3].mxu1 }
  0xe5   :  { %v143_v31 = vadd.f32 %v195_v16, %v142_v28  ;;  %v173_v32 = vadd.f32 %v195_v16, %v172_v30 }
  0xe6   :  { %184 = vst [vmem:[%s363_s3 + $0x18] sm:$0xff] %v148_v27  ;;  %190 = vst [vmem:[%s363_s3 + $0x48] sm:$0xff] %v178_v29 }
  0xe7   :  { %183 = vst [vmem:[%s363_s3 + $0x10] sm:$0xff] %v143_v31  ;;  %v236_v33 = vpop.f32.mrb[4].mxu0  ;;  %189 = vst [vmem:[%s363_s3 + $0x40] sm:$0xff] %v173_v32 }
  0xe8   :  { %v158_v34 = vadd.f32 %v236_v33, %v195_v16  ;;  %v152_v35 = vpop.f32.mrb[5].mxu0 }
  0xe9   :  { %v153_v36 = vadd.f32 %v195_v16, %v152_v35 }
  0xea   :  { %186 = vst [vmem:[%s363_s3 + $0x28] sm:$0xff] %v158_v34 }
  0xeb   :  { %185 = vst [vmem:[%s363_s3 + $0x20] sm:$0xff] %v153_v36 }

// kernel: conv_rnn_forward.13
= control target key start
LH: loop header
LB: loop body
LE: loop exit
PB: predicated region body
PF: predicated region fallthrough
CT: control target
= control target key end

     0   :  { %v166_v0 = vmov 0.0|0.0   ;;  %vm167_vm0 = vmmov 0   ;;  %v168_v6 = vmov 0.0   ;;  %vm28_vm1 = vcmask 261120   ;;  %s225_s1 = inlined_call_operand.vmem [shape: f32[32,128], index: 1, kind: input, shape index: {}]   ;;  %s226_s0 = inlined_call_operand.vmem [shape: f32[24,32], index: 0, kind: input, shape index: {}]   ;;  %s227_s2 = inlined_call_operand.vmem [shape: f32[1,128], index: 2, kind: input, shape index: {}]   ;;  %s228_s3 = inlined_call_operand.vmem [shape: f32[24,128], index: 3, kind: output, shape index: {}]  }
   0x1   :  { %159 = vmatprep.subr.bf16.mxu1 %v166_v0  ;;  %v17_v1 = vld [vmem:[%s225_s1] sm:$0xff]  ;;  %v18_v2 = vld [vmem:[%s225_s1 + $0x8] sm:$0xff]  ;;  %153 = vmatprep.subr.bf16.mxu0 %v166_v0  ;;  %v19_v3 = vld [vmem:[%s225_s1 + $0x10] sm:$0xff] }
   0x2   :  { %v154_v4 = vpack.c.bf16 %v18_v2, %v17_v1  ;;  %v20_v5 = vld [vmem:[%s225_s1 + $0x18] sm:$0xff]  ;;  %147 = vmatprep.mubr.msk.f32.mxu1 %vm167_vm0, %v168_v6  ;;  %144 = vmatprep.mubr.msk.f32.mxu0 %vm167_vm0, %v168_v6  ;;  %v15_v8 = vld [vmem:[%s226_s0 + $0x8] sm:$0xff]  ;;  %v14_v9 = vld [vmem:[%s226_s0] sm:$0xff] }
   0x3   :  { %v157_v7 = vpack.c.bf16 %v20_v5, %v19_v3  ;;  %v16_v10 = vld [vmem:[%s226_s0 + $0x10] sm:$0xff]  ;;  %v125_v11 = vld [vmem:[%s227_s2] ss:$0 sm:$0xff] }
   0x4   :  { %161 = vmatpush3.bf16.msra.mxu1 %v154_v4  ;;  %155 = vmatpush3.bf16.msra.mxu0 %v154_v4 }
   0x5   :  { %160 = vmatprep.subr.bf16.mxu1 %v166_v0  ;;  %156 = vmatprep.subr.bf16.mxu0 %v166_v0 }
   0x8   :  { %162 = vmatpush3.bf16.msra.mxu1 %v157_v7  ;;  %158 = vmatpush3.bf16.msra.mxu0 %v157_v7 }
   0xb   :  { %148 = vmatmul.mubr.msk.f32.vlgmr.msra.gmra.mrb[0].mxu1 %vm28_vm1, %v15_v8  ;;  %145 = vmatmul.mubr.msk.f32.vlgmr.msra.gmra.mrb[0].mxu0 %vm28_vm1, %v14_v9 }
   0xc   :  { %150 = vmatprep.mubr.msk.f32.mxu1 %vm167_vm0, %v168_v6 }
   0xf   :  { %151 = vmatmul.mubr.msk.f32.gmra.mrb[2].mxu1 %vm28_vm1, %v16_v10 }
  0xde   :  { %v109_v12 = vpop.f32.mrb[0].mxu1  ;;  %v104_v13 = vpop.f32.mrb[0].mxu0 }
  0xdf   :  { %v110_v14 = vadd.f32 %v125_v11, %v109_v12  ;;  %v149_v15 = vpop.f32.mrb[1].mxu1  ;;  %v105_v16 = vadd.f32 %v125_v11, %v104_v13  ;;  %v146_v17 = vpop.f32.mrb[1].mxu0 }
  0xe1   :  { %119 = vst [vmem:[%s228_s3 + $0x8] sm:$0xff] %v110_v14  ;;  %118 = vst [vmem:[%s228_s3] sm:$0xff] %v105_v16 }
  0xe2   :  { %v114_v18 = vpop.f32.mrb[2].mxu1 }
  0xe3   :  { %v115_v19 = vadd.f32 %v125_v11, %v114_v18  ;;  %v152_v20 = vpop.f32.mrb[3].mxu1 }
  0xe5   :  { %120 = vst [vmem:[%s228_s3 + $0x10] sm:$0xff] %v115_v19 }

// kernel: conv_rnn_forward.10
= control target key start
LH: loop header
LB: loop body
LE: loop exit
PB: predicated region body
PF: predicated region fallthrough
CT: control target
= control target key end

     0   :  { %vm18_vm0 = vcmask 261120   ;;  %v2769_v0 = vmov 0.0|0.0   ;;  %vm2770_vm1 = vmmov 0   ;;  %v2771_v4 = vmov 0.0   ;;  %s2773_s21 = smov 64   ;;  %s2774_s22 = smov 32   ;;  %s3464_s2 = inlined_call_operand.vmem [shape: f32[32,128], index: 2, kind: input, shape index: {}]   ;;  %s3465_s0 = inlined_call_operand.vmem [shape: f32[16,8,128], index: 0, kind: input, shape index: {}]   ;;  %s3466_s1 = inlined_call_operand.vmem [shape: f32[16,8,1], index: 1, kind: input, shape index: {}]   ;;  %s3467_s3 = inlined_call_operand.vmem [shape: f32[16,8,32], index: 3, kind: output, shape index: {}]  }
   0x1   :  { %2536 = vmatprep.subr.bf16.mxu0 %v2769_v0  ;;  %v21_v1 = vld [vmem:[%s3464_s2] sm:$0xff]  ;;  %v22_v2 = vld [vmem:[%s3464_s2 + $0x8] sm:$0xff]  ;;  %v23_v3 = vld [vmem:[%s3464_s2 + $0x10] sm:$0xff]  ;;  %2368 = vmatprep.mubr.msk.f32.mxu0 %vm2770_vm1, %v2771_v4  ;;  %19 = vst.msk [vmem:[#allocation2] sm:$0xff] %vm18_vm0, %v2771_v4  ;;  %v2772_v13 = vmov 0   ;;  %s2775_s25 = smov 96  }
   0x2   :  { %20 = vst.msk [vmem:[#allocation3] sm:$0xff] %vm18_vm0, %v2771_v4  ;;  %v2812_v5 = vpack.c.bf16 %v22_v2, %v21_v1  ;;  %v24_v6 = vld [vmem:[%s3464_s2 + $0x18] sm:$0xff]  ;;  %2542 = vmatprep.subr.bf16.mxu1 %v2769_v0  ;;  %2379 = vmatprep.mubr.msk.f32.mxu1 %vm2770_vm1, %v2771_v4  ;;  %v27_v9 = vld [vmem:[%s3465_s0] sm:$0xff]  ;;  %v2208_v36 = vld [vmem:[%s3466_s1 + $0x8] sm:$0xff] }
   0x3   :  { %v2821_v7 = vpack.c.bf16 %v24_v6, %v23_v3  ;;  %2639 = vset.pattern.permute.xlu1 %v2772_v13  ;;  %2640 = vset.pattern.permute.xlu0 %v2772_v13  ;;  %v131_v19 = vld [vmem:[%s3466_s1] sm:$0xff]  ;;  %vm267_vm4 = vcmp.gt.f32.partialorder %v2208_v36, 0.0  ;;  %v2205_v41 = vld [vmem:[%s3465_s0 + $0x8] sm:$0xff]  ;;  %v2213_v61 = vld [vmem:[%s3466_s1 + $0x10] sm:$0xff] }
   0x4   :  { %2538 = vmatpush3.bf16.msra.mxu0 %v2812_v5  ;;  %2544 = vmatpush3.bf16.msra.mxu1 %v2812_v5  ;;  %vm132_vm2 = vcmp.gt.f32.partialorder %v131_v19, 0.0  ;;  %v268_v38 = vsel %vm267_vm4, 1, %v2772_v13  ;;  %vm403_vm6 = vcmp.gt.f32.partialorder %v2213_v61, 0.0  ;;  %v2223_v61 = vld [vmem:[%s3466_s1 + $0x20] sm:$0xff] }
   0x5   :  { %2539 = vmatprep.subr.bf16.mxu0 %v2769_v0  ;;  %2545 = vmatprep.subr.bf16.mxu1 %v2769_v0  ;;  %v133_v23 = vsel %vm132_vm2, 1, %v2772_v13  ;;  %v404_v1 = vsel %vm403_vm6, 1, %v2772_v13  ;;  %vm675_vm10 = vcmp.gt.f32.partialorder %v2223_v61, 0.0 }
   0x8   :  { %2541 = vmatpush3.bf16.msra.mxu0 %v2821_v7  ;;  %v25_v8 = vld [vmem:[#allocation2] sm:$0xff]  ;;  %2547 = vmatpush3.bf16.msra.mxu1 %v2821_v7 }
   0x9   :  { %2548 = vmatprep.subr.bf16.mxu0 %v2769_v0  ;;  %2554 = vmatprep.subr.bf16.mxu1 %v2769_v0  ;;  %v26_v15 = vld [vmem:[#allocation3] sm:$0xff] }
   0xb   :  { %2369 = vmatmul.mubr.msk.f32.vlgmr.msra.gmra.mrb[0].mxu0 %vm18_vm0, %v25_v8 }
   0xc   :  { %2550 = vmatpush3.bf16.msra.mxu0 %v2812_v5  ;;  %2390 = vmatprep.mubr.msk.f32.mxu0 %vm2770_vm1, %v2771_v4 }
   0xd   :  { %2551 = vmatprep.subr.bf16.mxu0 %v2769_v0 }
  0x10   :  { %2553 = vmatpush3.bf16.msra.mxu0 %v2821_v7 }
  0x11   :  { %2560 = vmatprep.subr.bf16.mxu0 %v2769_v0 }
  0xde   :  { %v98_v10 = vpop.f32.mrb[0].mxu0 }
  0xdf   :  { %v102_v11 = vadd.f32 %v98_v10, %v27_v9  ;;  %v2370_v12 = vpop.f32.mrb[1].mxu0  ;;  %v2210_v9 = vld [vmem:[%s3465_s0 + $0x10] sm:$0xff] }
  0xe1   :  { %2641 = vtanh.f32 %v102_v11  ;;  %v2204_v16 = vmul.f32 -1.442695, %v102_v11 }
  0xe3   :  { %2643 = vpow2.f32 %v2204_v16 }
  0xeb   :  { %v2642_v14 = vpop.eup %2641 }
  0xec   :  { %116 = vrot.lane.b32.xlu0 %v2642_v14, %s2773_s21 }
  0xed   :  { %v2644_v17 = vpop.eup %2643 }
  0xee   :  { %v106_v18 = vadd.f32 1.0, %v2644_v17 }
  0xf0   :  { %111 = vrot.lane.b32.xlu0 %v26_v15, %s2774_s22  ;;  %2645 = vrcp.f32 %v106_v18 }
  0xfa   :  { %v2646_v20 = vpop.eup %2645 }
 0x15e   :  { %v117_v21 = vpop.permute.xlu0 %116 }
 0x15f   :  { %v119_v22 = vmul.f32 %v2646_v20, %v117_v21 }
 0x161   :  { %121 = vrot.lane.b32.xlu1 %v119_v22, %s2774_s22 }
 0x162   :  { %v112_v24 = vpop.permute.xlu0 %111 }
 0x163   :  { %v114_v25 = vmul.f32 %v2646_v20, %v112_v24 }
 0x165   :  { %135 = vperm.xlu1 %2639, %v133_v23  }
 0x169   :  { %138 = vrot.lane.b32.xlu1 %v25_v8, %s2775_s25 }
 0x1d3   :  { %v122_v26 = vpop.permute.xlu1 %121 }
 0x1d4   :  { %v124_v27 = vadd.f32 %v122_v26, %v114_v25 }
 0x1d6   :  { %2647 = vtanh.f32 %v124_v27 }
 0x1e0   :  { %v2648_v28 = vpop.eup %2647 }
 0x1e1   :  { %127 = vrot.lane.b32.xlu0 %v2648_v28, %s2773_s21 }
 0x1e4   :  { %v2851_v29 = vpop.permute.xlu1 %135 }
 0x1e5   :  { %vm137_vm3 = vcmp.eq.s32.totalorder %v2851_v29, 1 }
 0x1e6   :  { %v147_v30 = vsel %vm137_vm3, %v124_v27, %v112_v24 }
 0x1e7   :  { %149 = vrot.lane.b32.xlu1 %v147_v30, %s2775_s25 }
 0x1e8   :  { %v139_v32 = vpop.permute.xlu1 %138 }
 0x253   :  { %v128_v31 = vpop.permute.xlu0 %127 }
 0x254   :  { %v2857_v33 = vmul.f32 %v2646_v20, %v128_v31  ;;  %v2218_v31 = vld [vmem:[%s3466_s1 + $0x18] sm:$0xff] }
 0x255   :  { %vm539_vm8 = vcmp.gt.f32.partialorder %v2218_v31, 0.0 }
 0x256   :  { %v141_v34 = vsel %vm137_vm3, %v2857_v33, %v139_v32 }
 0x257   :  { %143 = vrot.lane.b32.xlu0 %v141_v34, %s2774_s22 }
 0x259   :  { %v150_v35 = vpop.permute.xlu1 %149 }
 0x25a   :  { %152 = vst.msk [vmem:[#allocation3] sm:$0xff] %vm18_vm0, %v150_v35  ;;  %v540_v35 = vsel %vm539_vm8, 1, %v2772_v13 }
 0x261   :  { %v160_v37 = vld [vmem:[#allocation3] sm:$0xff] }
 0x262   :  { %245 = vrot.lane.b32.xlu1 %v160_v37, %s2774_s22 }
 0x266   :  { %270 = vperm.xlu1 %2639, %v268_v38  }
 0x2c9   :  { %v144_v39 = vpop.permute.xlu0 %143 }
 0x2ca   :  { %146 = vst.msk [vmem:[#allocation2] sm:$0xff] %vm18_vm0, %v144_v39 }
 0x2d1   :  { %v159_v40 = vld [vmem:[#allocation2] sm:$0xff] }
 0x2d2   :  { %273 = vrot.lane.b32.xlu1 %v159_v40, %s2775_s25  ;;  %2380 = vmatmul.mubr.msk.f32.vlgmr.msra.gmra.mrb[0].mxu1 %vm18_vm0, %v159_v40  ;;  %v2215_v40 = vld [vmem:[%s3465_s0 + $0x18] sm:$0xff] }
 0x2d3   :  { %2556 = vmatpush3.bf16.msra.mxu1 %v2812_v5  ;;  %2401 = vmatprep.mubr.msk.f32.mxu1 %vm2770_vm1, %v2771_v4 }
 0x2d4   :  { %2557 = vmatprep.subr.bf16.mxu1 %v2769_v0  ;;  %v246_v52 = vpop.permute.xlu1 %245 }
 0x2d7   :  { %2559 = vmatpush3.bf16.msra.mxu1 %v2821_v7 }
 0x2d8   :  { %2566 = vmatprep.subr.bf16.mxu1 %v2769_v0 }
 0x2e5   :  { %v2883_v53 = vpop.permute.xlu1 %270 }
 0x2e6   :  { %vm272_vm5 = vcmp.eq.s32.totalorder %v2883_v53, 1 }
 0x344   :  { %v274_v59 = vpop.permute.xlu1 %273 }
 0x3a5   :  { %v232_v42 = vpop.f32.mrb[0].mxu1 }
 0x3a6   :  { %v236_v43 = vadd.f32 %v2205_v41, %v232_v42  ;;  %v2381_v44 = vpop.f32.mrb[1].mxu1 }
 0x3a8   :  { %2649 = vtanh.f32 %v236_v43  ;;  %v2207_v46 = vmul.f32 -1.442695, %v236_v43 }
 0x3aa   :  { %2651 = vpow2.f32 %v2207_v46 }
 0x3b2   :  { %v2650_v45 = vpop.eup %2649 }
 0x3b3   :  { %250 = vrot.lane.b32.xlu0 %v2650_v45, %s2773_s21 }
 0x3b4   :  { %v2652_v47 = vpop.eup %2651 }
 0x3b5   :  { %v240_v48 = vadd.f32 1.0, %v2652_v47 }
 0x3b7   :  { %2653 = vrcp.f32 %v240_v48 }
 0x3c1   :  { %v2654_v49 = vpop.eup %2653 }
 0x3c2   :  { %v248_v54 = vmul.f32 %v2654_v49, %v246_v52 }
 0x425   :  { %v251_v50 = vpop.permute.xlu0 %250 }
 0x426   :  { %v253_v51 = vmul.f32 %v2654_v49, %v251_v50 }
 0x428   :  { %255 = vrot.lane.b32.xlu0 %v253_v51, %s2774_s22 }
 0x49a   :  { %v256_v55 = vpop.permute.xlu0 %255 }
 0x49b   :  { %v258_v56 = vadd.f32 %v256_v55, %v248_v54 }
 0x49d   :  { %2655 = vtanh.f32 %v258_v56  ;;  %v282_v57 = vsel %vm272_vm5, %v258_v56, %v246_v52 }
 0x49e   :  { %284 = vrot.lane.b32.xlu1 %v282_v57, %s2775_s25 }
 0x4a7   :  { %v2656_v58 = vpop.eup %2655 }
 0x4a8   :  { %261 = vrot.lane.b32.xlu0 %v2656_v58, %s2773_s21 }
 0x510   :  { %v285_v60 = vpop.permute.xlu1 %284 }
 0x511   :  { %287 = vst.msk [vmem:[#allocation3] sm:$0xff] %vm18_vm0, %v285_v60 }
 0x518   :  { %v296_v62 = vld [vmem:[#allocation3] sm:$0xff] }
 0x519   :  { %381 = vrot.lane.b32.xlu1 %v296_v62, %s2774_s22 }
 0x51a   :  { %v262_v63 = vpop.permute.xlu0 %261 }
 0x51b   :  { %v2896_v2 = vmul.f32 %v2654_v49, %v262_v63 }
 0x51d   :  { %406 = vperm.xlu1 %2639, %v404_v1   ;;  %v276_v3 = vsel %vm272_vm5, %v2896_v2, %v274_v59  ;;  %v676_v1 = vsel %vm675_vm10, 1, %v2772_v13 }
 0x51e   :  { %278 = vrot.lane.b32.xlu0 %v276_v3, %s2774_s22 }
 0x58b   :  { %v382_v21 = vpop.permute.xlu1 %381 }
 0x590   :  { %v279_v6 = vpop.permute.xlu0 %278 }
 0x591   :  { %281 = vst.msk [vmem:[#allocation2] sm:$0xff] %vm18_vm0, %v279_v6 }
 0x598   :  { %v295_v8 = vld [vmem:[#allocation2] sm:$0xff] }
 0x599   :  { %409 = vrot.lane.b32.xlu1 %v295_v8, %s2775_s25  ;;  %2391 = vmatmul.mubr.msk.f32.vlgmr.msra.gmra.mrb[2].mxu0 %vm18_vm0, %v295_v8 }
 0x59a   :  { %2562 = vmatpush3.bf16.msra.mxu0 %v2812_v5  ;;  %2412 = vmatprep.mubr.msk.f32.mxu0 %vm2770_vm1, %v2771_v4 }
 0x59b   :  { %2563 = vmatprep.subr.bf16.mxu0 %v2769_v0 }
 0x59c   :  { %v2916_v22 = vpop.permute.xlu1 %406 }
 0x59d   :  { %vm408_vm7 = vcmp.eq.s32.totalorder %v2916_v22, 1 }
 0x59e   :  { %2565 = vmatpush3.bf16.msra.mxu0 %v2821_v7 }
 0x59f   :  { %2572 = vmatprep.subr.bf16.mxu0 %v2769_v0 }
 0x60b   :  { %v410_v28 = vpop.permute.xlu1 %409 }
 0x66c   :  { %v368_v10 = vpop.f32.mrb[2].mxu0 }
 0x66d   :  { %v372_v11 = vadd.f32 %v2210_v9, %v368_v10  ;;  %v2392_v12 = vpop.f32.mrb[3].mxu0  ;;  %v2220_v10 = vld [vmem:[%s3465_s0 + $0x20] sm:$0xff] }
 0x66f   :  { %2657 = vtanh.f32 %v372_v11  ;;  %v2212_v15 = vmul.f32 -1.442695, %v372_v11 }
 0x671   :  { %2659 = vpow2.f32 %v2212_v15 }
 0x679   :  { %v2658_v14 = vpop.eup %2657 }
 0x67a   :  { %386 = vrot.lane.b32.xlu0 %v2658_v14, %s2773_s21 }
 0x67b   :  { %v2660_v16 = vpop.eup %2659 }
 0x67c   :  { %v376_v17 = vadd.f32 1.0, %v2660_v16 }
 0x67e   :  { %2661 = vrcp.f32 %v376_v17 }
 0x688   :  { %v2662_v18 = vpop.eup %2661 }
 0x689   :  { %v384_v23 = vmul.f32 %v2662_v18, %v382_v21 }
 0x6ec   :  { %v387_v19 = vpop.permute.xlu0 %386 }
 0x6ed   :  { %v389_v20 = vmul.f32 %v2662_v18, %v387_v19 }
 0x6ef   :  { %391 = vrot.lane.b32.xlu0 %v389_v20, %s2774_s22 }
 0x761   :  { %v392_v24 = vpop.permute.xlu0 %391 }
 0x762   :  { %v394_v25 = vadd.f32 %v392_v24, %v384_v23 }
 0x764   :  { %2663 = vtanh.f32 %v394_v25  ;;  %v418_v26 = vsel %vm408_vm7, %v394_v25, %v382_v21 }
 0x765   :  { %420 = vrot.lane.b32.xlu1 %v418_v26, %s2775_s25 }
 0x76e   :  { %v2664_v27 = vpop.eup %2663 }
 0x76f   :  { %397 = vrot.lane.b32.xlu0 %v2664_v27, %s2773_s21 }
 0x7d7   :  { %v421_v30 = vpop.permute.xlu1 %420 }
 0x7d8   :  { %423 = vst.msk [vmem:[#allocation3] sm:$0xff] %vm18_vm0, %v421_v30 }
 0x7df   :  { %v432_v32 = vld [vmem:[#allocation3] sm:$0xff] }
 0x7e0   :  { %517 = vrot.lane.b32.xlu1 %v432_v32, %s2774_s22 }
 0x7e1   :  { %v398_v34 = vpop.permute.xlu0 %397 }
 0x7e2   :  { %v2929_v36 = vmul.f32 %v2662_v18, %v398_v34  ;;  %v2228_v34 = vld [vmem:[%s3466_s1 + $0x28] sm:$0xff] }
 0x7e3   :  { %vm811_vm12 = vcmp.gt.f32.partialorder %v2228_v34, 0.0 }
 0x7e4   :  { %542 = vperm.xlu1 %2639, %v540_v35   ;;  %v412_v37 = vsel %vm408_vm7, %v2929_v36, %v410_v28 }
 0x7e5   :  { %414 = vrot.lane.b32.xlu0 %v412_v37, %s2774_s22 }
 0x852   :  { %v518_v51 = vpop.permute.xlu1 %517 }
 0x857   :  { %v415_v38 = vpop.permute.xlu0 %414 }
 0x858   :  { %417 = vst.msk [vmem:[#allocation2] sm:$0xff] %vm18_vm0, %v415_v38  ;;  %v812_v38 = vsel %vm811_vm12, 1, %v2772_v13 }
 0x85f   :  { %v431_v39 = vld [vmem:[#allocation2] sm:$0xff] }
 0x860   :  { %545 = vrot.lane.b32.xlu1 %v431_v39, %s2775_s25  ;;  %2402 = vmatmul.mubr.msk.f32.vlgmr.msra.gmra.mrb[2].mxu1 %vm18_vm0, %v431_v39 }
 0x861   :  { %2568 = vmatpush3.bf16.msra.mxu1 %v2812_v5  ;;  %2423 = vmatprep.mubr.msk.f32.mxu1 %vm2770_vm1, %v2771_v4 }
 0x862   :  { %2569 = vmatprep.subr.bf16.mxu1 %v2769_v0 }
 0x863   :  { %v2949_v52 = vpop.permute.xlu1 %542 }
 0x864   :  { %vm544_vm9 = vcmp.eq.s32.totalorder %v2949_v52, 1 }
 0x865   :  { %2571 = vmatpush3.bf16.msra.mxu1 %v2821_v7 }
 0x866   :  { %2578 = vmatprep.subr.bf16.mxu1 %v2769_v0 }
 0x8d2   :  { %v546_v59 = vpop.permute.xlu1 %545 }
 0x933   :  { %v504_v41 = vpop.f32.mrb[2].mxu1 }
 0x934   :  { %v508_v42 = vadd.f32 %v2215_v40, %v504_v41  ;;  %v2403_v43 = vpop.f32.mrb[3].mxu1 }
 0x935   :  { %v2225_v43 = vld [vmem:[%s3465_s0 + $0x28] sm:$0xff] }
 0x936   :  { %2665 = vtanh.f32 %v508_v42  ;;  %v2217_v45 = vmul.f32 -1.442695, %v508_v42 }
 0x938   :  { %2667 = vpow2.f32 %v2217_v45 }
 0x940   :  { %v2666_v44 = vpop.eup %2665 }
 0x941   :  { %522 = vrot.lane.b32.xlu0 %v2666_v44, %s2773_s21 }
 0x942   :  { %v2668_v46 = vpop.eup %2667 }
 0x943   :  { %v512_v47 = vadd.f32 1.0, %v2668_v46 }
 0x945   :  { %2669 = vrcp.f32 %v512_v47 }
 0x94f   :  { %v2670_v48 = vpop.eup %2669 }
 0x950   :  { %v520_v54 = vmul.f32 %v2670_v48, %v518_v51 }
 0x9b3   :  { %v523_v49 = vpop.permute.xlu0 %522 }
 0x9b4   :  { %v525_v50 = vmul.f32 %v2670_v48, %v523_v49 }
 0x9b6   :  { %527 = vrot.lane.b32.xlu0 %v525_v50, %s2774_s22 }
 0xa28   :  { %v528_v55 = vpop.permute.xlu0 %527 }
 0xa29   :  { %v530_v56 = vadd.f32 %v528_v55, %v520_v54 }
 0xa2b   :  { %2671 = vtanh.f32 %v530_v56  ;;  %v554_v57 = vsel %vm544_vm9, %v530_v56, %v518_v51 }
 0xa2c   :  { %556 = vrot.lane.b32.xlu1 %v554_v57, %s2775_s25 }
 0xa35   :  { %v2672_v58 = vpop.eup %2671 }
 0xa36   :  { %533 = vrot.lane.b32.xlu0 %v2672_v58, %s2773_s21 }
 0xa9e   :  { %v557_v60 = vpop.permute.xlu1 %556 }
 0xa9f   :  { %559 = vst.msk [vmem:[#allocation3] sm:$0xff] %vm18_vm0, %v557_v60 }
 0xaa6   :  { %v568_v62 = vld [vmem:[#allocation3] sm:$0xff] }
 0xaa7   :  { %653 = vrot.lane.b32.xlu1 %v568_v62, %s2774_s22 }
 0xaa8   :  { %v534_v63 = vpop.permute.xlu0 %533 }
 0xaa9   :  { %v2962_v3 = vmul.f32 %v2670_v48, %v534_v63 }
 0xaab   :  { %678 = vperm.xlu1 %2639, %v676_v1   ;;  %v548_v6 = vsel %vm544_vm9, %v2962_v3, %v546_v59 }
 0xaac   :  { %550 = vrot.lane.b32.xlu0 %v548_v6, %s2774_s22  ;;  %v2233_v6 = vld [vmem:[%s3466_s1 + $0x30] sm:$0xff] }
 0xaad   :  { %vm947_vm14 = vcmp.gt.f32.partialorder %v2233_v6, 0.0 }
 0xb19   :  { %v654_v23 = vpop.permute.xlu1 %653 }
 0xb1e   :  { %v551_v8 = vpop.permute.xlu0 %550 }
 0xb1f   :  { %553 = vst.msk [vmem:[#allocation2] sm:$0xff] %vm18_vm0, %v551_v8 }
 0xb26   :  { %v567_v9 = vld [vmem:[#allocation2] sm:$0xff] }
 0xb27   :  { %681 = vrot.lane.b32.xlu1 %v567_v9, %s2775_s25  ;;  %2413 = vmatmul.mubr.msk.f32.vlgmr.msra.gmra.mrb[4].mxu0 %vm18_vm0, %v567_v9 }
 0xb28   :  { %2574 = vmatpush3.bf16.msra.mxu0 %v2812_v5  ;;  %2434 = vmatprep.mubr.msk.f32.mxu0 %vm2770_vm1, %v2771_v4 }
 0xb29   :  { %2575 = vmatprep.subr.bf16.mxu0 %v2769_v0 }
 0xb2a   :  { %v2982_v24 = vpop.permute.xlu1 %678 }
 0xb2b   :  { %vm680_vm11 = vcmp.eq.s32.totalorder %v2982_v24, 1 }
 0xb2c   :  { %2577 = vmatpush3.bf16.msra.mxu0 %v2821_v7 }
 0xb2d   :  { %2584 = vmatprep.subr.bf16.mxu0 %v2769_v0 }
 0xb99   :  { %v682_v31 = vpop.permute.xlu1 %681 }
 0xbfa   :  { %v640_v11 = vpop.f32.mrb[4].mxu0 }
 0xbfb   :  { %v644_v12 = vadd.f32 %v2220_v10, %v640_v11  ;;  %v2414_v14 = vpop.f32.mrb[5].mxu0  ;;  %v948_v10 = vsel %vm947_vm14, 1, %v2772_v13 }
 0xbfd   :  { %2673 = vtanh.f32 %v644_v12  ;;  %v2222_v16 = vmul.f32 -1.442695, %v644_v12 }
 0xbff   :  { %2675 = vpow2.f32 %v2222_v16  ;;  %v2230_v16 = vld [vmem:[%s3465_s0 + $0x30] sm:$0xff] }
 0xc07   :  { %v2674_v15 = vpop.eup %2673 }
 0xc08   :  { %658 = vrot.lane.b32.xlu0 %v2674_v15, %s2773_s21 }
 0xc09   :  { %v2676_v17 = vpop.eup %2675 }
 0xc0a   :  { %v648_v18 = vadd.f32 1.0, %v2676_v17 }
 0xc0c   :  { %2677 = vrcp.f32 %v648_v18 }
 0xc16   :  { %v2678_v19 = vpop.eup %2677 }
 0xc17   :  { %v656_v25 = vmul.f32 %v2678_v19, %v654_v23 }
 0xc7a   :  { %v659_v20 = vpop.permute.xlu0 %658 }
 0xc7b   :  { %v661_v21 = vmul.f32 %v2678_v19, %v659_v20 }
 0xc7d   :  { %663 = vrot.lane.b32.xlu0 %v661_v21, %s2774_s22 }
 0xcef   :  { %v664_v26 = vpop.permute.xlu0 %663 }
 0xcf0   :  { %v666_v27 = vadd.f32 %v664_v26, %v656_v25 }
 0xcf2   :  { %2679 = vtanh.f32 %v666_v27  ;;  %v690_v28 = vsel %vm680_vm11, %v666_v27, %v654_v23 }
 0xcf3   :  { %692 = vrot.lane.b32.xlu1 %v690_v28, %s2775_s25 }
 0xcfc   :  { %v2680_v30 = vpop.eup %2679 }
 0xcfd   :  { %669 = vrot.lane.b32.xlu0 %v2680_v30, %s2773_s21 }
 0xd65   :  { %v693_v32 = vpop.permute.xlu1 %692 }
 0xd66   :  { %695 = vst.msk [vmem:[#allocation3] sm:$0xff] %vm18_vm0, %v693_v32 }
 0xd6d   :  { %v704_v35 = vld [vmem:[#allocation3] sm:$0xff] }
 0xd6e   :  { %789 = vrot.lane.b32.xlu1 %v704_v35, %s2774_s22 }
 0xd6f   :  { %v670_v37 = vpop.permute.xlu0 %669 }
 0xd70   :  { %v2995_v39 = vmul.f32 %v2678_v19, %v670_v37 }
 0xd72   :  { %814 = vperm.xlu1 %2639, %v812_v38   ;;  %v684_v40 = vsel %vm680_vm11, %v2995_v39, %v682_v31 }
 0xd73   :  { %686 = vrot.lane.b32.xlu0 %v684_v40, %s2774_s22 }
 0xde0   :  { %v790_v56 = vpop.permute.xlu1 %789 }
 0xde5   :  { %v687_v41 = vpop.permute.xlu0 %686 }
 0xde6   :  { %689 = vst.msk [vmem:[#allocation2] sm:$0xff] %vm18_vm0, %v687_v41 }
 0xded   :  { %v703_v42 = vld [vmem:[#allocation2] sm:$0xff] }
 0xdee   :  { %817 = vrot.lane.b32.xlu1 %v703_v42, %s2775_s25  ;;  %2424 = vmatmul.mubr.msk.f32.vlgmr.msra.gmra.mrb[4].mxu1 %vm18_vm0, %v703_v42  ;;  %v2238_v42 = vld [vmem:[%s3466_s1 + $0x38] sm:$0xff] }
 0xdef   :  { %2580 = vmatpush3.bf16.msra.mxu1 %v2812_v5  ;;  %2445 = vmatprep.mubr.msk.f32.mxu1 %vm2770_vm1, %v2771_v4  ;;  %vm1083_vm2 = vcmp.gt.f32.partialorder %v2238_v42, 0.0 }
 0xdf0   :  { %2581 = vmatprep.subr.bf16.mxu1 %v2769_v0 }
 0xdf1   :  { %v3015_v57 = vpop.permute.xlu1 %814 }
 0xdf2   :  { %vm816_vm13 = vcmp.eq.s32.totalorder %v3015_v57, 1 }
 0xdf3   :  { %2583 = vmatpush3.bf16.msra.mxu1 %v2821_v7 }
 0xdf4   :  { %2590 = vmatprep.subr.bf16.mxu1 %v2769_v0 }
 0xe60   :  { %v818_v63 = vpop.permute.xlu1 %817 }
 0xec1   :  { %v776_v44 = vpop.f32.mrb[4].mxu1 }
 0xec2   :  { %v780_v45 = vadd.f32 %v2225_v43, %v776_v44  ;;  %v2425_v46 = vpop.f32.mrb[5].mxu1 }
 0xec4   :  { %2681 = vtanh.f32 %v780_v45  ;;  %v2227_v48 = vmul.f32 -1.442695, %v780_v45  ;;  %v1084_v45 = vsel %vm1083_vm2, 1, %v2772_v13 }
 0xec6   :  { %2683 = vpow2.f32 %v2227_v48 }
 0xece   :  { %v2682_v47 = vpop.eup %2681 }
 0xecf   :  { %794 = vrot.lane.b32.xlu0 %v2682_v47, %s2773_s21 }
 0xed0   :  { %v2684_v49 = vpop.eup %2683 }
 0xed1   :  { %v784_v50 = vadd.f32 1.0, %v2684_v49 }
 0xed3   :  { %2685 = vrcp.f32 %v784_v50  ;;  %v2235_v50 = vld [vmem:[%s3465_s0 + $0x38] sm:$0xff] }
 0xedd   :  { %v2686_v51 = vpop.eup %2685 }
 0xede   :  { %v792_v58 = vmul.f32 %v2686_v51, %v790_v56 }
 0xf41   :  { %v795_v54 = vpop.permute.xlu0 %794 }
 0xf42   :  { %v797_v55 = vmul.f32 %v2686_v51, %v795_v54 }
 0xf44   :  { %799 = vrot.lane.b32.xlu0 %v797_v55, %s2774_s22 }
 0xfb6   :  { %v800_v59 = vpop.permute.xlu0 %799 }
 0xfb7   :  { %v802_v60 = vadd.f32 %v800_v59, %v792_v58 }
 0xfb9   :  { %2687 = vtanh.f32 %v802_v60  ;;  %v826_v61 = vsel %vm816_vm13, %v802_v60, %v790_v56 }
 0xfba   :  { %828 = vrot.lane.b32.xlu1 %v826_v61, %s2775_s25 }
 0xfc3   :  { %v2688_v62 = vpop.eup %2687 }
 0xfc4   :  { %805 = vrot.lane.b32.xlu0 %v2688_v62, %s2773_s21 }
0x102c   :  { %v829_v1 = vpop.permute.xlu1 %828 }
0x102d   :  { %831 = vst.msk [vmem:[#allocation3] sm:$0xff] %vm18_vm0, %v829_v1 }
0x1034   :  { %v840_v8 = vld [vmem:[#allocation3] sm:$0xff] }
0x1035   :  { %925 = vrot.lane.b32.xlu1 %v840_v8, %s2774_s22 }
0x1036   :  { %v806_v9 = vpop.permute.xlu0 %805 }
0x1037   :  { %v3028_v11 = vmul.f32 %v2686_v51, %v806_v9 }
0x1039   :  { %950 = vperm.xlu1 %2639, %v948_v10   ;;  %v820_v12 = vsel %vm816_vm13, %v3028_v11, %v818_v63 }
0x103a   :  { %822 = vrot.lane.b32.xlu0 %v820_v12, %s2774_s22 }
0x10a7   :  { %v926_v30 = vpop.permute.xlu1 %925 }
0x10ac   :  { %v823_v14 = vpop.permute.xlu0 %822 }
0x10ad   :  { %825 = vst.msk [vmem:[#allocation2] sm:$0xff] %vm18_vm0, %v823_v14 }
0x10b4   :  { %v839_v15 = vld [vmem:[#allocation2] sm:$0xff] }
0x10b5   :  { %953 = vrot.lane.b32.xlu1 %v839_v15, %s2775_s25  ;;  %2435 = vmatmul.mubr.msk.f32.vlgmr.msra.gmra.mrb[6].mxu0 %vm18_vm0, %v839_v15 }
0x10b6   :  { %2586 = vmatpush3.bf16.msra.mxu0 %v2812_v5  ;;  %2456 = vmatprep.mubr.msk.f32.mxu0 %vm2770_vm1, %v2771_v4 }
0x10b7   :  { %2587 = vmatprep.subr.bf16.mxu0 %v2769_v0 }
0x10b8   :  { %v3048_v31 = vpop.permute.xlu1 %950 }
0x10b9   :  { %vm952_vm15 = vcmp.eq.s32.totalorder %v3048_v31, 1 }
0x10ba   :  { %2589 = vmatpush3.bf16.msra.mxu0 %v2821_v7 }
0x10bb   :  { %2596 = vmatprep.subr.bf16.mxu0 %v2769_v0 }
0x1127   :  { %v954_v40 = vpop.permute.xlu1 %953 }
0x1188   :  { %v912_v17 = vpop.f32.mrb[6].mxu0 }
0x1189   :  { %v916_v18 = vadd.f32 %v2230_v16, %v912_v17  ;;  %v2436_v19 = vpop.f32.mrb[7].mxu0  ;;  %v2243_v17 = vld [vmem:[%s3466_s1 + $0x40] sm:$0xff] }
0x118a   :  { %vm1219_vm6 = vcmp.gt.f32.partialorder %v2243_v17, 0.0 }
0x118b   :  { %2689 = vtanh.f32 %v916_v18  ;;  %v2232_v21 = vmul.f32 -1.442695, %v916_v18 }
0x118d   :  { %2691 = vpow2.f32 %v2232_v21 }
0x1195   :  { %v2690_v20 = vpop.eup %2689 }
0x1196   :  { %930 = vrot.lane.b32.xlu0 %v2690_v20, %s2773_s21  ;;  %v1220_v20 = vsel %vm1219_vm6, 1, %v2772_v13 }
0x1197   :  { %v2692_v23 = vpop.eup %2691 }
0x1198   :  { %v920_v25 = vadd.f32 1.0, %v2692_v23 }
0x119a   :  { %2693 = vrcp.f32 %v920_v25 }
0x11a4   :  { %v2694_v26 = vpop.eup %2693 }
0x11a5   :  { %v928_v32 = vmul.f32 %v2694_v26, %v926_v30 }
0x1208   :  { %v931_v27 = vpop.permute.xlu0 %930 }
0x1209   :  { %v933_v28 = vmul.f32 %v2694_v26, %v931_v27  ;;  %v2240_v27 = vld [vmem:[%s3465_s0 + $0x40] sm:$0xff] }
0x120b   :  { %935 = vrot.lane.b32.xlu0 %v933_v28, %s2774_s22 }
0x127d   :  { %v936_v34 = vpop.permute.xlu0 %935 }
0x127e   :  { %v938_v35 = vadd.f32 %v936_v34, %v928_v32 }
0x1280   :  { %2695 = vtanh.f32 %v938_v35  ;;  %v962_v37 = vsel %vm952_vm15, %v938_v35, %v926_v30 }
0x1281   :  { %964 = vrot.lane.b32.xlu1 %v962_v37, %s2775_s25 }
0x128a   :  { %v2696_v38 = vpop.eup %2695 }
0x128b   :  { %941 = vrot.lane.b32.xlu0 %v2696_v38, %s2773_s21 }
0x12f3   :  { %v965_v41 = vpop.permute.xlu1 %964 }
0x12f4   :  { %967 = vst.msk [vmem:[#allocation3] sm:$0xff] %vm18_vm0, %v965_v41 }
0x12fb   :  { %v976_v43 = vld [vmem:[#allocation3] sm:$0xff] }
0x12fc   :  { %1061 = vrot.lane.b32.xlu1 %v976_v43, %s2774_s22 }
0x12fd   :  { %v942_v44 = vpop.permute.xlu0 %941 }
0x12fe   :  { %v3061_v46 = vmul.f32 %v2694_v26, %v942_v44 }
0x1300   :  { %1086 = vperm.xlu1 %2639, %v1084_v45   ;;  %v956_v47 = vsel %vm952_vm15, %v3061_v46, %v954_v40 }
0x1301   :  { %958 = vrot.lane.b32.xlu0 %v956_v47, %s2774_s22 }
0x136e   :  { %v1062_v1 = vpop.permute.xlu1 %1061 }
0x1373   :  { %v959_v48 = vpop.permute.xlu0 %958 }
0x1374   :  { %961 = vst.msk [vmem:[#allocation2] sm:$0xff] %vm18_vm0, %v959_v48 }
0x137b   :  { %v975_v49 = vld [vmem:[#allocation2] sm:$0xff] }
0x137c   :  { %1089 = vrot.lane.b32.xlu1 %v975_v49, %s2775_s25  ;;  %2446 = vmatmul.mubr.msk.f32.vlgmr.msra.gmra.mrb[6].mxu1 %vm18_vm0, %v975_v49 }
0x137d   :  { %2592 = vmatpush3.bf16.msra.mxu1 %v2812_v5  ;;  %2467 = vmatprep.mubr.msk.f32.mxu1 %vm2770_vm1, %v2771_v4 }
0x137e   :  { %2593 = vmatprep.subr.bf16.mxu1 %v2769_v0 }
0x137f   :  { %v3081_v6 = vpop.permute.xlu1 %1086 }
0x1380   :  { %vm1088_vm4 = vcmp.eq.s32.totalorder %v3081_v6, 1 }
0x1381   :  { %2595 = vmatpush3.bf16.msra.mxu1 %v2821_v7 }
0x1382   :  { %2602 = vmatprep.subr.bf16.mxu1 %v2769_v0 }
0x13ee   :  { %v1090_v15 = vpop.permute.xlu1 %1089 }
0x144f   :  { %v1048_v51 = vpop.f32.mrb[6].mxu1 }
0x1450   :  { %v1052_v54 = vadd.f32 %v2235_v50, %v1048_v51  ;;  %v2447_v55 = vpop.f32.mrb[7].mxu1 }
0x1451   :  { %v2248_v55 = vld [vmem:[%s3466_s1 + $0x48] sm:$0xff] }
0x1452   :  { %2697 = vtanh.f32 %v1052_v54  ;;  %v2237_v58 = vmul.f32 -1.442695, %v1052_v54  ;;  %vm1355_vm10 = vcmp.gt.f32.partialorder %v2248_v55, 0.0 }
0x1454   :  { %2699 = vpow2.f32 %v2237_v58 }
0x145c   :  { %v2698_v56 = vpop.eup %2697 }
0x145d   :  { %1066 = vrot.lane.b32.xlu0 %v2698_v56, %s2773_s21 }
0x145e   :  { %v2700_v59 = vpop.eup %2699 }
0x145f   :  { %v1056_v60 = vadd.f32 1.0, %v2700_v59  ;;  %v1356_v59 = vsel %vm1355_vm10, 1, %v2772_v13 }
0x1461   :  { %2701 = vrcp.f32 %v1056_v60 }
0x146b   :  { %v2702_v61 = vpop.eup %2701 }
0x146c   :  { %v1064_v8 = vmul.f32 %v2702_v61, %v1062_v1 }
0x14cf   :  { %v1067_v62 = vpop.permute.xlu0 %1066 }
0x14d0   :  { %v1069_v63 = vmul.f32 %v2702_v61, %v1067_v62 }
0x14d2   :  { %1071 = vrot.lane.b32.xlu0 %v1069_v63, %s2774_s22 }
0x1544   :  { %v1072_v9 = vpop.permute.xlu0 %1071 }
0x1545   :  { %v1074_v10 = vadd.f32 %v1072_v9, %v1064_v8 }
0x1547   :  { %2703 = vtanh.f32 %v1074_v10  ;;  %v1098_v12 = vsel %vm1088_vm4, %v1074_v10, %v1062_v1  ;;  %v2245_v1 = vld [vmem:[%s3465_s0 + $0x48] sm:$0xff] }
0x1548   :  { %1100 = vrot.lane.b32.xlu1 %v1098_v12, %s2775_s25 }
0x1551   :  { %v2704_v14 = vpop.eup %2703 }
0x1552   :  { %1077 = vrot.lane.b32.xlu0 %v2704_v14, %s2773_s21 }
0x15ba   :  { %v1101_v16 = vpop.permute.xlu1 %1100 }
0x15bb   :  { %1103 = vst.msk [vmem:[#allocation3] sm:$0xff] %vm18_vm0, %v1101_v16 }
0x15c2   :  { %v1112_v18 = vld [vmem:[#allocation3] sm:$0xff] }
0x15c3   :  { %1197 = vrot.lane.b32.xlu1 %v1112_v18, %s2774_s22 }
0x15c4   :  { %v1078_v19 = vpop.permute.xlu0 %1077 }
0x15c5   :  { %v3094_v21 = vmul.f32 %v2702_v61, %v1078_v19 }
0x15c7   :  { %1222 = vperm.xlu1 %2639, %v1220_v20   ;;  %v1092_v23 = vsel %vm1088_vm4, %v3094_v21, %v1090_v15 }
0x15c8   :  { %1094 = vrot.lane.b32.xlu0 %v1092_v23, %s2774_s22 }
0x1635   :  { %v1198_v43 = vpop.permute.xlu1 %1197 }
0x163a   :  { %v1095_v25 = vpop.permute.xlu0 %1094 }
0x163b   :  { %1097 = vst.msk [vmem:[#allocation2] sm:$0xff] %vm18_vm0, %v1095_v25 }
0x1642   :  { %v1111_v26 = vld [vmem:[#allocation2] sm:$0xff] }
0x1643   :  { %1225 = vrot.lane.b32.xlu1 %v1111_v26, %s2775_s25  ;;  %2457 = vmatmul.mubr.msk.f32.vlgmr.msra.gmra.mrb[8].mxu0 %vm18_vm0, %v1111_v26 }
0x1644   :  { %2598 = vmatpush3.bf16.msra.mxu0 %v2812_v5  ;;  %2478 = vmatprep.mubr.msk.f32.mxu0 %vm2770_vm1, %v2771_v4 }
0x1645   :  { %2599 = vmatprep.subr.bf16.mxu0 %v2769_v0 }
0x1646   :  { %v3114_v44 = vpop.permute.xlu1 %1222 }
0x1647   :  { %vm1224_vm8 = vcmp.eq.s32.totalorder %v3114_v44, 1 }
0x1648   :  { %2601 = vmatpush3.bf16.msra.mxu0 %v2821_v7 }
0x1649   :  { %2608 = vmatprep.subr.bf16.mxu0 %v2769_v0 }
0x16b5   :  { %v1226_v51 = vpop.permute.xlu1 %1225 }
0x1716   :  { %v1184_v28 = vpop.f32.mrb[8].mxu0 }
0x1717   :  { %v1188_v30 = vadd.f32 %v2240_v27, %v1184_v28  ;;  %v2458_v32 = vpop.f32.mrb[9].mxu0 }
0x1719   :  { %2705 = vtanh.f32 %v1188_v30  ;;  %v2242_v35 = vmul.f32 -1.442695, %v1188_v30 }
0x171b   :  { %2707 = vpow2.f32 %v2242_v35  ;;  %v2253_v35 = vld [vmem:[%s3466_s1 + $0x50] sm:$0xff] }
0x171c   :  { %vm1491_vm14 = vcmp.gt.f32.partialorder %v2253_v35, 0.0 }
0x1723   :  { %v2706_v34 = vpop.eup %2705 }
0x1724   :  { %1202 = vrot.lane.b32.xlu0 %v2706_v34, %s2773_s21 }
0x1725   :  { %v2708_v37 = vpop.eup %2707 }
0x1726   :  { %v1192_v38 = vadd.f32 1.0, %v2708_v37 }
0x1728   :  { %2709 = vrcp.f32 %v1192_v38 }
0x1732   :  { %v2710_v40 = vpop.eup %2709 }
0x1733   :  { %v1200_v45 = vmul.f32 %v2710_v40, %v1198_v43 }
0x1796   :  { %v1203_v41 = vpop.permute.xlu0 %1202 }
0x1797   :  { %v1205_v42 = vmul.f32 %v2710_v40, %v1203_v41 }
0x1799   :  { %1207 = vrot.lane.b32.xlu0 %v1205_v42, %s2774_s22 }
0x180b   :  { %v1208_v47 = vpop.permute.xlu0 %1207 }
0x180c   :  { %v1210_v48 = vadd.f32 %v1208_v47, %v1200_v45  ;;  %v2250_v47 = vld [vmem:[%s3465_s0 + $0x50] sm:$0xff] }
0x180e   :  { %2711 = vtanh.f32 %v1210_v48  ;;  %v1234_v49 = vsel %vm1224_vm8, %v1210_v48, %v1198_v43 }
0x180f   :  { %1236 = vrot.lane.b32.xlu1 %v1234_v49, %s2775_s25 }
0x1818   :  { %v2712_v50 = vpop.eup %2711 }
0x1819   :  { %1213 = vrot.lane.b32.xlu0 %v2712_v50, %s2773_s21 }
0x1881   :  { %v1237_v54 = vpop.permute.xlu1 %1236 }
0x1882   :  { %1239 = vst.msk [vmem:[#allocation3] sm:$0xff] %vm18_vm0, %v1237_v54 }
0x1889   :  { %v1248_v56 = vld [vmem:[#allocation3] sm:$0xff] }
0x188a   :  { %1333 = vrot.lane.b32.xlu1 %v1248_v56, %s2774_s22 }
0x188b   :  { %v1214_v58 = vpop.permute.xlu0 %1213 }
0x188c   :  { %v3127_v60 = vmul.f32 %v2710_v40, %v1214_v58  ;;  %v1492_v40 = vsel %vm1491_vm14, 1, %v2772_v13 }
0x188e   :  { %1358 = vperm.xlu1 %2639, %v1356_v59   ;;  %v1228_v61 = vsel %vm1224_vm8, %v3127_v60, %v1226_v51  ;;  %v1240_v29 = vsel %vm1224_vm8, %v3127_v60, 0.0 }
0x188f   :  { %1230 = vrot.lane.b32.xlu0 %v1228_v61, %s2774_s22 }
0x18fc   :  { %v1334_v20 = vpop.permute.xlu1 %1333 }
0x1901   :  { %v1231_v62 = vpop.permute.xlu0 %1230 }
0x1902   :  { %1233 = vst.msk [vmem:[#allocation2] sm:$0xff] %vm18_vm0, %v1231_v62 }
0x1909   :  { %v1247_v63 = vld [vmem:[#allocation2] sm:$0xff] }
0x190a   :  { %1361 = vrot.lane.b32.xlu1 %v1247_v63, %s2775_s25  ;;  %2468 = vmatmul.mubr.msk.f32.vlgmr.msra.gmra.mrb[8].mxu1 %vm18_vm0, %v1247_v63 }
0x190b   :  { %2604 = vmatpush3.bf16.msra.mxu1 %v2812_v5  ;;  %2489 = vmatprep.mubr.msk.f32.mxu1 %vm2770_vm1, %v2771_v4 }
0x190c   :  { %2605 = vmatprep.subr.bf16.mxu1 %v2769_v0 }
0x190d   :  { %v3147_v23 = vpop.permute.xlu1 %1358 }
0x190e   :  { %vm1360_vm12 = vcmp.eq.s32.totalorder %v3147_v23, 1 }
0x190f   :  { %2607 = vmatpush3.bf16.msra.mxu1 %v2821_v7 }
0x1910   :  { %2614 = vmatprep.subr.bf16.mxu1 %v2769_v0 }
0x197c   :  { %v1362_v32 = vpop.permute.xlu1 %1361 }
0x19dd   :  { %v1320_v8 = vpop.f32.mrb[8].mxu1 }
0x19de   :  { %v1324_v9 = vadd.f32 %v2245_v1, %v1320_v8  ;;  %v2469_v10 = vpop.f32.mrb[9].mxu1 }
0x19e0   :  { %2713 = vtanh.f32 %v1324_v9  ;;  %v2247_v14 = vmul.f32 -1.442695, %v1324_v9 }
0x19e2   :  { %2715 = vpow2.f32 %v2247_v14 }
0x19ea   :  { %v2714_v12 = vpop.eup %2713 }
0x19eb   :  { %1338 = vrot.lane.b32.xlu0 %v2714_v12, %s2773_s21 }
0x19ec   :  { %v2716_v15 = vpop.eup %2715 }
0x19ed   :  { %v1328_v16 = vadd.f32 1.0, %v2716_v15 }
0x19ef   :  { %2717 = vrcp.f32 %v1328_v16  ;;  %v2258_v16 = vld [vmem:[%s3466_s1 + $0x58] sm:$0xff] }
0x19f0   :  { %vm1627_vm6 = vcmp.gt.f32.partialorder %v2258_v16, 0.0 }
0x19f9   :  { %v2718_v17 = vpop.eup %2717 }
0x19fa   :  { %v1336_v25 = vmul.f32 %v2718_v17, %v1334_v20 }
0x1a5d   :  { %v1339_v18 = vpop.permute.xlu0 %1338 }
0x1a5e   :  { %v1341_v19 = vmul.f32 %v2718_v17, %v1339_v18 }
0x1a60   :  { %1343 = vrot.lane.b32.xlu0 %v1341_v19, %s2774_s22  ;;  %v1628_v19 = vsel %vm1627_vm6, 1, %v2772_v13 }
0x1ad2   :  { %v1344_v26 = vpop.permute.xlu0 %1343 }
0x1ad3   :  { %v1346_v27 = vadd.f32 %v1344_v26, %v1336_v25 }
0x1ad5   :  { %2719 = vtanh.f32 %v1346_v27  ;;  %v1370_v28 = vsel %vm1360_vm12, %v1346_v27, %v1334_v20 }
0x1ad6   :  { %1372 = vrot.lane.b32.xlu1 %v1370_v28, %s2775_s25  ;;  %v2255_v28 = vld [vmem:[%s3465_s0 + $0x58] sm:$0xff] }
0x1adf   :  { %v2720_v30 = vpop.eup %2719 }
0x1ae0   :  { %1349 = vrot.lane.b32.xlu0 %v2720_v30, %s2773_s21 }
0x1b48   :  { %v1373_v34 = vpop.permute.xlu1 %1372 }
0x1b49   :  { %1375 = vst.msk [vmem:[#allocation3] sm:$0xff] %vm18_vm0, %v1373_v34 }
0x1b50   :  { %v1384_v37 = vld [vmem:[#allocation3] sm:$0xff] }
0x1b51   :  { %1469 = vrot.lane.b32.xlu1 %v1384_v37, %s2774_s22 }
0x1b52   :  { %v1350_v38 = vpop.permute.xlu0 %1349 }
0x1b53   :  { %v3160_v41 = vmul.f32 %v2718_v17, %v1350_v38 }
0x1b55   :  { %1494 = vperm.xlu1 %2639, %v1492_v40   ;;  %v1364_v42 = vsel %vm1360_vm12, %v3160_v41, %v1362_v32  ;;  %v1376_v53 = vsel %vm1360_vm12, %v3160_v41, 0.0 }
0x1b56   :  { %1366 = vrot.lane.b32.xlu0 %v1364_v42, %s2774_s22 }
0x1bc3   :  { %v1470_v62 = vpop.permute.xlu1 %1469 }
0x1bc8   :  { %v1367_v43 = vpop.permute.xlu0 %1366 }
0x1bc9   :  { %1369 = vst.msk [vmem:[#allocation2] sm:$0xff] %vm18_vm0, %v1367_v43 }
0x1bd0   :  { %v1383_v45 = vld [vmem:[#allocation2] sm:$0xff] }
0x1bd1   :  { %1497 = vrot.lane.b32.xlu1 %v1383_v45, %s2775_s25  ;;  %2479 = vmatmul.mubr.msk.f32.vlgmr.msra.gmra.mrb[10].mxu0 %vm18_vm0, %v1383_v45 }
0x1bd2   :  { %2610 = vmatpush3.bf16.msra.mxu0 %v2812_v5  ;;  %2500 = vmatprep.mubr.msk.f32.mxu0 %vm2770_vm1, %v2771_v4 }
0x1bd3   :  { %2611 = vmatprep.subr.bf16.mxu0 %v2769_v0 }
0x1bd4   :  { %v3180_v63 = vpop.permute.xlu1 %1494 }
0x1bd5   :  { %vm1496_vm2 = vcmp.eq.s32.totalorder %v3180_v63, 1 }
0x1bd6   :  { %2613 = vmatpush3.bf16.msra.mxu0 %v2821_v7 }
0x1bd7   :  { %2620 = vmatprep.subr.bf16.mxu0 %v2769_v0 }
0x1c43   :  { %v1498_v14 = vpop.permute.xlu1 %1497 }
0x1ca4   :  { %v1456_v48 = vpop.f32.mrb[10].mxu0 }
0x1ca5   :  { %v1460_v49 = vadd.f32 %v2250_v47, %v1456_v48  ;;  %v2480_v50 = vpop.f32.mrb[11].mxu0 }
0x1ca7   :  { %2721 = vtanh.f32 %v1460_v49  ;;  %v2252_v54 = vmul.f32 -1.442695, %v1460_v49 }
0x1ca9   :  { %2723 = vpow2.f32 %v2252_v54 }
0x1cb1   :  { %v2722_v51 = vpop.eup %2721 }
0x1cb2   :  { %1474 = vrot.lane.b32.xlu0 %v2722_v51, %s2773_s21 }
0x1cb3   :  { %v2724_v55 = vpop.eup %2723 }
0x1cb4   :  { %v1464_v56 = vadd.f32 1.0, %v2724_v55 }
0x1cb6   :  { %2725 = vrcp.f32 %v1464_v56 }
0x1cc0   :  { %v2726_v58 = vpop.eup %2725 }
0x1cc1   :  { %v1472_v1 = vmul.f32 %v2726_v58, %v1470_v62 }
0x1d24   :  { %v1475_v59 = vpop.permute.xlu0 %1474 }
0x1d25   :  { %v1477_v61 = vmul.f32 %v2726_v58, %v1475_v59  ;;  %v2263_v59 = vld [vmem:[%s3466_s1 + $0x60] sm:$0xff] }
0x1d26   :  { %vm1763_vm14 = vcmp.gt.f32.partialorder %v2263_v59, 0.0  ;;  %v2265_v59 = vld [vmem:[%s3465_s0 + $0x68] sm:$0xff] }
0x1d27   :  { %1479 = vrot.lane.b32.xlu0 %v1477_v61, %s2774_s22 }
0x1d99   :  { %v1480_v8 = vpop.permute.xlu0 %1479 }
0x1d9a   :  { %v1482_v9 = vadd.f32 %v1480_v8, %v1472_v1  ;;  %v1764_v1 = vsel %vm1763_vm14, 1, %v2772_v13 }
0x1d9c   :  { %2727 = vtanh.f32 %v1482_v9  ;;  %v1506_v10 = vsel %vm1496_vm2, %v1482_v9, %v1470_v62 }
0x1d9d   :  { %1508 = vrot.lane.b32.xlu1 %v1506_v10, %s2775_s25 }
0x1da6   :  { %v2728_v12 = vpop.eup %2727 }
0x1da7   :  { %1485 = vrot.lane.b32.xlu0 %v2728_v12, %s2773_s21 }
0x1e0f   :  { %v1509_v15 = vpop.permute.xlu1 %1508 }
0x1e10   :  { %1511 = vst.msk [vmem:[#allocation3] sm:$0xff] %vm18_vm0, %v1509_v15 }
0x1e17   :  { %v1520_v17 = vld [vmem:[#allocation3] sm:$0xff] }
0x1e18   :  { %1605 = vrot.lane.b32.xlu1 %v1520_v17, %s2774_s22 }
0x1e19   :  { %v1486_v18 = vpop.permute.xlu0 %1485 }
0x1e1a   :  { %v3193_v20 = vmul.f32 %v2726_v58, %v1486_v18 }
0x1e1c   :  { %1630 = vperm.xlu1 %2639, %v1628_v19   ;;  %v1500_v25 = vsel %vm1496_vm2, %v3193_v20, %v1498_v14  ;;  %v2260_v14 = vld [vmem:[%s3465_s0 + $0x60] sm:$0xff] }
0x1e1d   :  { %1502 = vrot.lane.b32.xlu0 %v1500_v25, %s2774_s22 }
0x1e8a   :  { %v1606_v47 = vpop.permute.xlu1 %1605 }
0x1e8f   :  { %v1503_v26 = vpop.permute.xlu0 %1502 }
0x1e90   :  { %1505 = vst.msk [vmem:[#allocation2] sm:$0xff] %vm18_vm0, %v1503_v26 }
0x1e97   :  { %v1519_v27 = vld [vmem:[#allocation2] sm:$0xff] }
0x1e98   :  { %1633 = vrot.lane.b32.xlu1 %v1519_v27, %s2775_s25  ;;  %2490 = vmatmul.mubr.msk.f32.vlgmr.msra.gmra.mrb[10].mxu1 %vm18_vm0, %v1519_v27 }
0x1e99   :  { %2616 = vmatpush3.bf16.msra.mxu1 %v2812_v5  ;;  %2511 = vmatprep.mubr.msk.f32.mxu1 %vm2770_vm1, %v2771_v4 }
0x1e9a   :  { %2617 = vmatprep.subr.bf16.mxu1 %v2769_v0 }
0x1e9b   :  { %v3213_v48 = vpop.permute.xlu1 %1630 }
0x1e9c   :  { %vm1632_vm10 = vcmp.eq.s32.totalorder %v3213_v48, 1 }
0x1e9d   :  { %2619 = vmatpush3.bf16.msra.mxu1 %v2821_v7 }
0x1e9e   :  { %2626 = vmatprep.subr.bf16.mxu1 %v2769_v0 }
0x1f0a   :  { %v1634_v56 = vpop.permute.xlu1 %1633 }
0x1f6b   :  { %v1592_v30 = vpop.f32.mrb[10].mxu1 }
0x1f6c   :  { %v1596_v32 = vadd.f32 %v2255_v28, %v1592_v30  ;;  %v2491_v34 = vpop.f32.mrb[11].mxu1 }
0x1f6e   :  { %2729 = vtanh.f32 %v1596_v32  ;;  %v2257_v37 = vmul.f32 -1.442695, %v1596_v32 }
0x1f70   :  { %2731 = vpow2.f32 %v2257_v37 }
0x1f78   :  { %v2730_v35 = vpop.eup %2729 }
0x1f79   :  { %1610 = vrot.lane.b32.xlu0 %v2730_v35, %s2773_s21 }
0x1f7a   :  { %v2732_v38 = vpop.eup %2731 }
0x1f7b   :  { %v1600_v40 = vadd.f32 1.0, %v2732_v38 }
0x1f7d   :  { %2733 = vrcp.f32 %v1600_v40 }
0x1f87   :  { %v2734_v42 = vpop.eup %2733 }
0x1f88   :  { %v1608_v49 = vmul.f32 %v2734_v42, %v1606_v47 }
0x1feb   :  { %v1611_v43 = vpop.permute.xlu0 %1610 }
0x1fec   :  { %v1613_v45 = vmul.f32 %v2734_v42, %v1611_v43 }
0x1fee   :  { %1615 = vrot.lane.b32.xlu0 %v1613_v45, %s2774_s22 }
0x2060   :  { %v1616_v50 = vpop.permute.xlu0 %1615 }
0x2061   :  { %v1618_v51 = vadd.f32 %v1616_v50, %v1608_v49 }
0x2063   :  { %2735 = vtanh.f32 %v1618_v51  ;;  %v1642_v54 = vsel %vm1632_vm10, %v1618_v51, %v1606_v47  ;;  %v2268_v47 = vld [vmem:[%s3466_s1 + $0x68] sm:$0xff] }
0x2064   :  { %1644 = vrot.lane.b32.xlu1 %v1642_v54, %s2775_s25  ;;  %vm1899_vm14 = vcmp.gt.f32.partialorder %v2268_v47, 0.0 }
0x2065   :  { %v1900_v51 = vsel %vm1899_vm14, 1, %v2772_v13 }
0x206d   :  { %v2736_v55 = vpop.eup %2735 }
0x206e   :  { %1621 = vrot.lane.b32.xlu0 %v2736_v55, %s2773_s21 }
0x20d6   :  { %v1645_v58 = vpop.permute.xlu1 %1644 }
0x20d7   :  { %1647 = vst.msk [vmem:[#allocation3] sm:$0xff] %vm18_vm0, %v1645_v58 }
0x20de   :  { %v1656_v61 = vld [vmem:[#allocation3] sm:$0xff] }
0x20df   :  { %1741 = vrot.lane.b32.xlu1 %v1656_v61, %s2774_s22 }
0x20e0   :  { %v1622_v62 = vpop.permute.xlu0 %1621 }
0x20e1   :  { %v3226_v8 = vmul.f32 %v2734_v42, %v1622_v62 }
0x20e3   :  { %1766 = vperm.xlu1 %2639, %v1764_v1   ;;  %v1636_v9 = vsel %vm1632_vm10, %v3226_v8, %v1634_v56 }
0x20e4   :  { %1638 = vrot.lane.b32.xlu0 %v1636_v9, %s2774_s22 }
0x2151   :  { %v1742_v32 = vpop.permute.xlu1 %1741 }
0x2156   :  { %v1639_v10 = vpop.permute.xlu0 %1638 }
0x2157   :  { %1641 = vst.msk [vmem:[#allocation2] sm:$0xff] %vm18_vm0, %v1639_v10 }
0x215e   :  { %v1655_v12 = vld [vmem:[#allocation2] sm:$0xff] }
0x215f   :  { %1769 = vrot.lane.b32.xlu1 %v1655_v12, %s2775_s25  ;;  %2501 = vmatmul.mubr.msk.f32.vlgmr.msra.gmra.mrb[12].mxu0 %vm18_vm0, %v1655_v12 }
0x2160   :  { %2622 = vmatpush3.bf16.msra.mxu0 %v2812_v5  ;;  %2522 = vmatprep.mubr.msk.f32.mxu0 %vm2770_vm1, %v2771_v4 }
0x2161   :  { %2623 = vmatprep.subr.bf16.mxu0 %v2769_v0 }
0x2162   :  { %v3245_v34 = vpop.permute.xlu1 %1766 }
0x2163   :  { %vm3468_vm6 = vcmp.eq.s32.totalorder %v3245_v34, 1 }
0x2164   :  { %2625 = vmatpush3.bf16.msra.mxu0 %v2821_v7 }
0x21d1   :  { %v1770_v43 = vpop.permute.xlu1 %1769 }
0x2232   :  { %v1728_v15 = vpop.f32.mrb[12].mxu0 }
0x2233   :  { %v1732_v16 = vadd.f32 %v2260_v14, %v1728_v15  ;;  %v2502_v17 = vpop.f32.mrb[13].mxu0 }
0x2235   :  { %2737 = vtanh.f32 %v1732_v16  ;;  %v2262_v19 = vmul.f32 -1.442695, %v1732_v16 }
0x2237   :  { %2739 = vpow2.f32 %v2262_v19 }
0x223f   :  { %v2738_v18 = vpop.eup %2737 }
0x2240   :  { %1746 = vrot.lane.b32.xlu0 %v2738_v18, %s2773_s21 }
0x2241   :  { %v2740_v25 = vpop.eup %2739 }
0x2242   :  { %v1736_v26 = vadd.f32 1.0, %v2740_v25 }
0x2244   :  { %2741 = vrcp.f32 %v1736_v26 }
0x224e   :  { %v2742_v27 = vpop.eup %2741 }
0x224f   :  { %v1744_v35 = vmul.f32 %v2742_v27, %v1742_v32 }
0x22b2   :  { %v1747_v28 = vpop.permute.xlu0 %1746 }
0x22b3   :  { %v1749_v30 = vmul.f32 %v2742_v27, %v1747_v28  ;;  %v2273_v28 = vld [vmem:[%s3466_s1 + $0x70] sm:$0xff] }
0x22b4   :  { %vm2035_vm14 = vcmp.gt.f32.partialorder %v2273_v28, 0.0  ;;  %v560_v28 = vsel %vm544_vm9, %v2962_v3, 0.0 }
0x22b5   :  { %1751 = vrot.lane.b32.xlu0 %v1749_v30, %s2774_s22 }
0x2327   :  { %v1752_v37 = vpop.permute.xlu0 %1751 }
0x2328   :  { %v1754_v38 = vadd.f32 %v1752_v37, %v1744_v35  ;;  %v2036_v35 = vsel %vm2035_vm14, 1, %v2772_v13 }
0x232a   :  { %2743 = vtanh.f32 %v1754_v38  ;;  %v1778_v40 = vsel %vm3468_vm6, %v1754_v38, %v1742_v32 }
0x232b   :  { %1780 = vrot.lane.b32.xlu1 %v1778_v40, %s2775_s25 }
0x2334   :  { %v2744_v42 = vpop.eup %2743 }
0x2335   :  { %1757 = vrot.lane.b32.xlu0 %v2744_v42, %s2773_s21 }
0x239d   :  { %v1781_v45 = vpop.permute.xlu1 %1780 }
0x239e   :  { %1783 = vst.msk [vmem:[#allocation3] sm:$0xff] %vm18_vm0, %v1781_v45 }
0x23a5   :  { %v1792_v49 = vld [vmem:[#allocation3] sm:$0xff] }
0x23a6   :  { %1877 = vrot.lane.b32.xlu1 %v1792_v49, %s2774_s22 }
0x23a7   :  { %v1758_v50 = vpop.permute.xlu0 %1757 }
0x23a8   :  { %v3258_v54 = vmul.f32 %v2742_v27, %v1758_v50 }
0x23aa   :  { %1902 = vperm.xlu1 %2639, %v1900_v51   ;;  %v1772_v55 = vsel %vm3468_vm6, %v3258_v54, %v1770_v43  ;;  %v2270_v43 = vld [vmem:[%s3465_s0 + $0x70] sm:$0xff] }
0x23ab   :  { %1774 = vrot.lane.b32.xlu0 %v1772_v55, %s2774_s22 }
0x241d   :  { %v1775_v56 = vpop.permute.xlu0 %1774 }
0x241e   :  { %1777 = vst.msk [vmem:[#allocation2] sm:$0xff] %vm18_vm0, %v1775_v56 }
0x2425   :  { %v1791_v58 = vld [vmem:[#allocation2] sm:$0xff] }
0x2426   :  { %1905 = vrot.lane.b32.xlu1 %v1791_v58, %s2775_s25  ;;  %2512 = vmatmul.mubr.msk.f32.vlgmr.msra.gmra.mrb[12].mxu1 %vm18_vm0, %v1791_v58 }
0x2427   :  { %2628 = vmatpush3.bf16.msra.mxu1 %v2812_v5  ;;  %2533 = vmatprep.mubr.msk.f32.mxu1 %vm2770_vm1, %v2771_v4 }
0x2428   :  { %2629 = vmatprep.subr.bf16.mxu1 %v2769_v0 }
0x242b   :  { %2631 = vmatpush3.bf16.msra.mxu1 %v2821_v7  ;;  %v1878_v7 = vpop.permute.xlu1 %1877 }
0x242f   :  { %v3277_v15 = vpop.permute.xlu1 %1902 }
0x2430   :  { %vm1904_vm1 = vcmp.eq.s32.totalorder %v3277_v15, 1 }
0x2498   :  { %v1906_v26 = vpop.permute.xlu1 %1905 }
0x24f9   :  { %v1864_v61 = vpop.f32.mrb[12].mxu1 }
0x24fa   :  { %v1868_v62 = vadd.f32 %v2265_v59, %v1864_v61  ;;  %v2513_v1 = vpop.f32.mrb[13].mxu1 }
0x24fc   :  { %2745 = vtanh.f32 %v1868_v62  ;;  %v2267_v10 = vmul.f32 -1.442695, %v1868_v62 }
0x24fe   :  { %2747 = vpow2.f32 %v2267_v10 }
0x2506   :  { %v2746_v9 = vpop.eup %2745 }
0x2507   :  { %1882 = vrot.lane.b32.xlu0 %v2746_v9, %s2773_s21 }
0x2508   :  { %v2748_v5 = vpop.eup %2747 }
0x2509   :  { %v1872_v12 = vadd.f32 1.0, %v2748_v5 }
0x250b   :  { %2749 = vrcp.f32 %v1872_v12 }
0x2515   :  { %v2750_v4 = vpop.eup %2749 }
0x2516   :  { %v1880_v16 = vmul.f32 %v2750_v4, %v1878_v7 }
0x2579   :  { %v1883_v0 = vpop.permute.xlu0 %1882 }
0x257a   :  { %v1885_v14 = vmul.f32 %v2750_v4, %v1883_v0 }
0x257c   :  { %1887 = vrot.lane.b32.xlu0 %v1885_v14, %s2774_s22 }
0x25ee   :  { %v1888_v17 = vpop.permute.xlu0 %1887 }
0x25ef   :  { %v1890_v18 = vadd.f32 %v1888_v17, %v1880_v16 }
0x25f1   :  { %2751 = vtanh.f32 %v1890_v18  ;;  %v1914_v19 = vsel %vm1904_vm1, %v1890_v18, %v1878_v7  ;;  %v2278_v7 = vld [vmem:[%s3466_s1 + $0x78] sm:$0xff] }
0x25f2   :  { %1916 = vrot.lane.b32.xlu1 %v1914_v19, %s2775_s25  ;;  %vm2171_vm6 = vcmp.gt.f32.partialorder %v2278_v7, 0.0 }
0x25f3   :  { %v2172_v18 = vsel %vm2171_vm6, 1, %v2772_v13  ;;  %v288_v13 = vsel %vm272_vm5, %v2896_v2, 0.0  ;;  %v1648_v2 = vsel %vm1632_vm10, %v3226_v8, 0.0 }
0x25fb   :  { %v2752_v25 = vpop.eup %2751 }
0x25fc   :  { %1893 = vrot.lane.b32.xlu0 %v2752_v25, %s2773_s21 }
0x2664   :  { %v1917_v27 = vpop.permute.xlu1 %1916 }
0x2665   :  { %1919 = vst.msk [vmem:[#allocation3] sm:$0xff] %vm18_vm0, %v1917_v27 }
0x266c   :  { %v1928_v30 = vld [vmem:[#allocation3] sm:$0xff] }
0x266d   :  { %2013 = vrot.lane.b32.xlu1 %v1928_v30, %s2774_s22  ;;  %v832_v30 = vsel %vm816_vm13, %v3028_v11, 0.0 }
0x266e   :  { %v1894_v32 = vpop.permute.xlu0 %1893 }
0x266f   :  { %v3290_v37 = vmul.f32 %v2750_v4, %v1894_v32  ;;  %v1104_v32 = vsel %vm1088_vm4, %v3094_v21, 0.0 }
0x2671   :  { %2038 = vperm.xlu1 %2639, %v2036_v35   ;;  %v1908_v38 = vsel %vm1904_vm1, %v3290_v37, %v1906_v26  ;;  %v1920_v52 = vsel %vm1904_vm1, %v3290_v37, 0.0  ;;  %v2275_v35 = vld [vmem:[%s3465_s0 + $0x78] sm:$0xff] }
0x2672   :  { %1910 = vrot.lane.b32.xlu0 %v1908_v38, %s2774_s22 }
0x26df   :  { %v2014_v62 = vpop.permute.xlu1 %2013 }
0x26e4   :  { %v1911_v40 = vpop.permute.xlu0 %1910 }
0x26e5   :  { %1913 = vst.msk [vmem:[#allocation2] sm:$0xff] %vm18_vm0, %v1911_v40 }
0x26ec   :  { %v1927_v42 = vld [vmem:[#allocation2] sm:$0xff] }
0x26ed   :  { %2041 = vrot.lane.b32.xlu1 %v1927_v42, %s2775_s25  ;;  %2523 = vmatmul.mubr.msk.f32.vlgmr.msra.gmra.mrb[14].mxu0 %vm18_vm0, %v1927_v42 }
0x26f0   :  { %v3304_v1 = vpop.permute.xlu1 %2038 }
0x26f1   :  { %vm2040_vm14 = vcmp.eq.s32.totalorder %v3304_v1, 1 }
0x275f   :  { %v2042_v0 = vpop.permute.xlu1 %2041 }
0x27c0   :  { %v2000_v45 = vpop.f32.mrb[14].mxu0 }
0x27c1   :  { %v2004_v47 = vadd.f32 %v2270_v43, %v2000_v45  ;;  %v2524_v49 = vpop.f32.mrb[15].mxu0 }
0x27c3   :  { %2753 = vtanh.f32 %v2004_v47  ;;  %v2272_v51 = vmul.f32 -1.442695, %v2004_v47 }
0x27c5   :  { %2755 = vpow2.f32 %v2272_v51 }
0x27cd   :  { %v2754_v50 = vpop.eup %2753 }
0x27ce   :  { %2018 = vrot.lane.b32.xlu0 %v2754_v50, %s2773_s21 }
0x27cf   :  { %v2756_v55 = vpop.eup %2755 }
0x27d0   :  { %v2008_v56 = vadd.f32 1.0, %v2756_v55 }
0x27d2   :  { %2757 = vrcp.f32 %v2008_v56 }
0x27dc   :  { %v2758_v58 = vpop.eup %2757 }
0x27dd   :  { %v2016_v9 = vmul.f32 %v2758_v58, %v2014_v62 }
0x2840   :  { %v2019_v59 = vpop.permute.xlu0 %2018 }
0x2841   :  { %v2021_v61 = vmul.f32 %v2758_v58, %v2019_v59 }
0x2843   :  { %2023 = vrot.lane.b32.xlu0 %v2021_v61, %s2774_s22  ;;  %v153_v61 = vsel %vm137_vm3, %v2857_v33, 0.0  ;;  %v1512_v33 = vsel %vm1496_vm2, %v3193_v20, 0.0  ;;  %vm3469_vm3 = vcmp.eq.s32.totalorder %v3245_v34, 1 }
0x2844   :  { %v1784_v22 = vsel %vm3469_vm3, %v3258_v54, 0.0 }
0x28b5   :  { %v2024_v10 = vpop.permute.xlu0 %2023 }
0x28b6   :  { %v2026_v5 = vadd.f32 %v2024_v10, %v2016_v9  ;;  %v696_v9 = vsel %vm680_vm11, %v2995_v39, 0.0  ;;  %v968_v10 = vsel %vm952_vm15, %v3061_v46, 0.0 }
0x28b8   :  { %2759 = vtanh.f32 %v2026_v5  ;;  %v2050_v12 = vsel %vm2040_vm14, %v2026_v5, %v2014_v62  ;;  %v424_v62 = vsel %vm408_vm7, %v2929_v36, 0.0 }
0x28b9   :  { %2052 = vrot.lane.b32.xlu1 %v2050_v12, %s2775_s25 }
0x28c2   :  { %v2760_v4 = vpop.eup %2759 }
0x28c3   :  { %2029 = vrot.lane.b32.xlu0 %v2760_v4, %s2773_s21 }
0x292b   :  { %v2053_v14 = vpop.permute.xlu1 %2052 }
0x292c   :  { %2055 = vst.msk [vmem:[#allocation3] sm:$0xff] %vm18_vm0, %v2053_v14 }
0x2933   :  { %v2064_v16 = vld [vmem:[#allocation3] sm:$0xff] }
0x2934   :  { %2149 = vrot.lane.b32.xlu1 %v2064_v16, %s2774_s22 }
0x2935   :  { %v2030_v17 = vpop.permute.xlu0 %2029 }
0x2936   :  { %v3317_v19 = vmul.f32 %v2758_v58, %v2030_v17 }
0x2938   :  { %2174 = vperm.xlu1 %2639, %v2172_v18   ;;  %v2044_v25 = vsel %vm2040_vm14, %v3317_v19, %v2042_v0  ;;  %v2056_v36 = vsel %vm2040_vm14, %v3317_v19, 0.0 }
0x2939   :  { %2046 = vrot.lane.b32.xlu0 %v2044_v25, %s2774_s22 }
0x29a6   :  { %v2150_v3 = vpop.permute.xlu1 %2149 }
0x29ab   :  { %v2047_v26 = vpop.permute.xlu0 %2046 }
0x29ac   :  { %2049 = vst.msk [vmem:[#allocation2] sm:$0xff] %vm18_vm0, %v2047_v26 }
0x29b3   :  { %v2063_v27 = vld [vmem:[#allocation2] sm:$0xff] }
0x29b4   :  { %2177 = vrot.lane.b32.xlu1 %v2063_v27, %s2775_s25  ;;  %2534 = vmatmul.mubr.msk.f32.vlgmr.msra.gmra.mrb[14].mxu1 %vm18_vm0, %v2063_v27 }
0x29b7   :  { %v3354_v57 = vpop.permute.xlu1 %2174 }
0x29b8   :  { %290 = vrot.lane.b32.xlu1 %v288_v13, %s2774_s22  ;;  %vm2176_vm5 = vcmp.eq.s32.totalorder %v3354_v57, 1 }
0x29bc   :  { %562 = vrot.lane.b32.xlu1 %v560_v28, %s2774_s22 }
0x29c0   :  { %834 = vrot.lane.b32.xlu1 %v832_v30, %s2774_s22 }
0x29c4   :  { %1106 = vrot.lane.b32.xlu1 %v1104_v32, %s2774_s22 }
0x29c8   :  { %1378 = vrot.lane.b32.xlu1 %v1376_v53, %s2774_s22 }
0x29cc   :  { %1650 = vrot.lane.b32.xlu1 %v1648_v2, %s2774_s22 }
0x29d0   :  { %1922 = vrot.lane.b32.xlu1 %v1920_v52, %s2774_s22 }
0x2a26   :  { %v2178_v11 = vpop.permute.xlu1 %2177 }
0x2a2a   :  { %v291_v6 = vpop.permute.xlu1 %290 }
0x2a2b   :  { %2209 = vst.msk [vmem:[%s3467_s3 + $0x8] sm:$0xff] %vm18_vm0, %v291_v6 }
0x2a2e   :  { %v563_v21 = vpop.permute.xlu1 %562 }
0x2a2f   :  { %2219 = vst.msk [vmem:[%s3467_s3 + $0x18] sm:$0xff] %vm18_vm0, %v563_v21 }
0x2a32   :  { %v835_v23 = vpop.permute.xlu1 %834 }
0x2a33   :  { %2229 = vst.msk [vmem:[%s3467_s3 + $0x28] sm:$0xff] %vm18_vm0, %v835_v23 }
0x2a36   :  { %v1107_v41 = vpop.permute.xlu1 %1106 }
0x2a37   :  { %2239 = vst.msk [vmem:[%s3467_s3 + $0x38] sm:$0xff] %vm18_vm0, %v1107_v41 }
0x2a3a   :  { %v1379_v48 = vpop.permute.xlu1 %1378 }
0x2a3b   :  { %2249 = vst.msk [vmem:[%s3467_s3 + $0x48] sm:$0xff] %vm18_vm0, %v1379_v48 }
0x2a3e   :  { %v1651_v8 = vpop.permute.xlu1 %1650 }
0x2a3f   :  { %2259 = vst.msk [vmem:[%s3467_s3 + $0x58] sm:$0xff] %vm18_vm0, %v1651_v8 }
0x2a42   :  { %v1923_v15 = vpop.permute.xlu1 %1922 }
0x2a43   :  { %2269 = vst.msk [vmem:[%s3467_s3 + $0x68] sm:$0xff] %vm18_vm0, %v1923_v15 }
0x2a87   :  { %v2136_v37 = vpop.f32.mrb[14].mxu1 }
0x2a88   :  { %v2140_v38 = vadd.f32 %v2275_v35, %v2136_v37  ;;  %v2535_v40 = vpop.f32.mrb[15].mxu1 }
0x2a8a   :  { %2761 = vtanh.f32 %v2140_v38  ;;  %v2277_v43 = vmul.f32 -1.442695, %v2140_v38 }
0x2a8c   :  { %2763 = vpow2.f32 %v2277_v43 }
0x2a94   :  { %v2762_v42 = vpop.eup %2761 }
0x2a95   :  { %2154 = vrot.lane.b32.xlu0 %v2762_v42, %s2773_s21 }
0x2a96   :  { %v2764_v45 = vpop.eup %2763 }
0x2a97   :  { %v2144_v47 = vadd.f32 1.0, %v2764_v45 }
0x2a99   :  { %2765 = vrcp.f32 %v2144_v47 }
0x2aa3   :  { %v2766_v49 = vpop.eup %2765 }
0x2aa4   :  { %v2152_v55 = vmul.f32 %v2766_v49, %v2150_v3 }
0x2b07   :  { %v2155_v50 = vpop.permute.xlu0 %2154 }
0x2b08   :  { %v2157_v51 = vmul.f32 %v2766_v49, %v2155_v50 }
0x2b0a   :  { %2159 = vrot.lane.b32.xlu0 %v2157_v51, %s2774_s22 }
0x2b7c   :  { %v2160_v56 = vpop.permute.xlu0 %2159 }
0x2b7d   :  { %v2162_v58 = vadd.f32 %v2160_v56, %v2152_v55 }
0x2b7f   :  { %2767 = vtanh.f32 %v2162_v58  ;;  %v2186_v24 = vsel %vm2176_vm5, %v2162_v58, %v2150_v3 }
0x2b89   :  { %v2768_v59 = vpop.eup %2767 }
0x2b8a   :  { %2165 = vrot.lane.b32.xlu0 %v2768_v59, %s2773_s21 }
0x2b8e   :  { %155 = vrot.lane.b32.xlu0 %v153_v61, %s2774_s22 }
0x2b92   :  { %426 = vrot.lane.b32.xlu0 %v424_v62, %s2774_s22 }
0x2b96   :  { %698 = vrot.lane.b32.xlu0 %v696_v9, %s2774_s22 }
0x2b9a   :  { %970 = vrot.lane.b32.xlu0 %v968_v10, %s2774_s22 }
0x2b9e   :  { %1242 = vrot.lane.b32.xlu0 %v1240_v29, %s2774_s22 }
0x2ba2   :  { %1514 = vrot.lane.b32.xlu0 %v1512_v33, %s2774_s22 }
0x2ba6   :  { %1786 = vrot.lane.b32.xlu0 %v1784_v22, %s2774_s22 }
0x2baa   :  { %2058 = vrot.lane.b32.xlu0 %v2056_v36, %s2774_s22 }
0x2bae   :  { %2188 = vrot.lane.b32.xlu0 %v2186_v24, %s2775_s25 }
0x2bfc   :  { %v2166_v39 = vpop.permute.xlu0 %2165 }
0x2bfd   :  { %v2168_v31 = vmul.f32 %v2766_v49, %v2166_v39 }
0x2bff   :  { %v2180_v46 = vsel %vm2176_vm5, %v2168_v31, %v2178_v11  ;;  %v2192_v60 = vsel %vm2176_vm5, %v2168_v31, 0.0 }
0x2c00   :  { %2182 = vrot.lane.b32.xlu1 %v2180_v46, %s2774_s22  ;;  %v156_v44 = vpop.permute.xlu0 %155 }
0x2c01   :  { %158 = vst.msk [vmem:[%s3467_s3] sm:$0xff] %vm18_vm0, %v156_v44 }
0x2c04   :  { %2194 = vrot.lane.b32.xlu1 %v2192_v60, %s2774_s22  ;;  %v427_v63 = vpop.permute.xlu0 %426 }
0x2c05   :  { %2214 = vst.msk [vmem:[%s3467_s3 + $0x10] sm:$0xff] %vm18_vm0, %v427_v63 }
0x2c08   :  { %v699_v20 = vpop.permute.xlu0 %698 }
0x2c09   :  { %2224 = vst.msk [vmem:[%s3467_s3 + $0x20] sm:$0xff] %vm18_vm0, %v699_v20 }
0x2c0c   :  { %v971_v34 = vpop.permute.xlu0 %970 }
0x2c0d   :  { %2234 = vst.msk [vmem:[%s3467_s3 + $0x30] sm:$0xff] %vm18_vm0, %v971_v34 }
0x2c10   :  { %v1243_v54 = vpop.permute.xlu0 %1242 }
0x2c11   :  { %2244 = vst.msk [vmem:[%s3467_s3 + $0x40] sm:$0xff] %vm18_vm0, %v1243_v54 }
0x2c14   :  { %v1515_v1 = vpop.permute.xlu0 %1514 }
0x2c15   :  { %2254 = vst.msk [vmem:[%s3467_s3 + $0x50] sm:$0xff] %vm18_vm0, %v1515_v1 }
0x2c18   :  { %v1787_v5 = vpop.permute.xlu0 %1786 }
0x2c19   :  { %2264 = vst.msk [vmem:[%s3467_s3 + $0x60] sm:$0xff] %vm18_vm0, %v1787_v5 }
0x2c1c   :  { %v2059_v12 = vpop.permute.xlu0 %2058 }
0x2c1d   :  { %2274 = vst.msk [vmem:[%s3467_s3 + $0x70] sm:$0xff] %vm18_vm0, %v2059_v12 }
0x2c20   :  { %v2189_v4 = vpop.permute.xlu0 %2188 }
0x2c21   :  { %2191 = vst.msk [vmem:[#allocation3] sm:$0xff] %vm18_vm0, %v2189_v4 }
0x2c72   :  { %v2183_v0 = vpop.permute.xlu1 %2182 }
0x2c73   :  { %2185 = vst.msk [vmem:[#allocation2] sm:$0xff] %vm18_vm0, %v2183_v0 }
0x2c76   :  { %v2195_v14 = vpop.permute.xlu1 %2194 }
0x2c77   :  { %2279 = vst.msk [vmem:[%s3467_s3 + $0x78] sm:$0xff] %vm18_vm0, %v2195_v14 }

</bundles_post_ra>
